<compile_context>
chip_gen: v6e
topology: v6e:2x2x1
jax: 0.10.0
libtpu: 0.0.40
codegen_flags: <defaults>
</compile_context>

<pallas_src>
import functools
import math

import jax
import jax.numpy as jnp
from jax.experimental import pallas as pl
from jax.experimental.pallas import tpu as pltpu

EPS = 1e-5  # PyTorch LayerNorm default eps


def _layer_norm(x, gamma, beta):
    mu = jnp.mean(x, axis=-1, keepdims=True)
    xc = x - mu
    var = jnp.mean(xc * xc, axis=-1, keepdims=True)
    return xc * jax.lax.rsqrt(var + EPS) * gamma + beta


def _mha_proj(q, k, v, wo_heads, hd):
    """Scaled-dot-product attention fused with the output projection.

    q/k/v: (B, Sq/Sk, E) bf16 (q already pre-scaled -- 1/sqrt(hd) is folded
    into the Q projection weights).  wo_heads: list of (hd, E) bf16 slices of
    the output-projection weight.  Returns f32 (B, Sq, E): sum over heads of
    attn_h @ Wo_h -- no per-head lane concatenate is ever materialized.
    """
    B, Sq, E = q.shape
    acc = jnp.zeros((B, Sq, E), jnp.float32)
    for h, wo_h in enumerate(wo_heads):
        sl = slice(h * hd, (h + 1) * hd)
        s = jnp.einsum('bqd,bkd->bqk', q[:, :, sl], k[:, :, sl],
                       preferred_element_type=jnp.float32)
        s = s - jnp.max(s, axis=-1, keepdims=True)
        p = jnp.exp(s)
        p = p * pl.reciprocal(jnp.sum(p, axis=-1, keepdims=True), approx=True)
        attn = jnp.einsum('bqk,bkd->bqd', p.astype(jnp.bfloat16), v[:, :, sl],
                          preferred_element_type=jnp.float32)
        acc = acc + jnp.einsum('bqd,de->bqe', attn.astype(jnp.bfloat16), wo_h,
                               preferred_element_type=jnp.float32)
    return acc


def decoder_kernel(cfg, tgt_ref, mem_ref, w_ref, vec_ref, out_ref):
    B, St, Sm, E, ff, nhead, num_layers = cfg
    hd = E // nhead
    Mt = B * St

    x = tgt_ref[...].astype(jnp.float32)            # (B*St, E) residual stream, f32
    m = mem_ref[...].astype(jnp.bfloat16)           # (B*Sm, E) only feeds a matmul

    # --- bf16 weight slab, row-sliced (all transposed to x @ W orientation,
    #     1/sqrt(hd) already folded into the Q columns) ---
    w = w_ref[...]
    wqkv_sa = w[0:E, :3 * E]
    wo_sa = w[E:2 * E, :E]
    wqkv_ca = w[2 * E:3 * E, :3 * E]
    wq_ca = wqkv_ca[:, :E]
    wkv_ca = wqkv_ca[:, E:]
    wo_ca = w[3 * E:4 * E, :E]
    w1 = w[4 * E:5 * E, :ff]
    w2 = w[5 * E:5 * E + ff, :E]

    # Hoist the per-head output-projection row slices out of the layer loop.
    wo_sa_h = [wo_sa[h * hd:(h + 1) * hd, :] for h in range(nhead)]
    wo_ca_h = [wo_ca[h * hd:(h + 1) * hd, :] for h in range(nhead)]

    # --- f32 bias / LayerNorm slab; (1,N)->(M,N) broadcasts hoisted ---
    vec = vec_ref[...].astype(jnp.float32)
    b_qkv_sa = jnp.broadcast_to(vec[0:1, :3 * E], (Mt, 3 * E))
    b_o_sa = jnp.broadcast_to(vec[1:2, :E], (Mt, E))
    b_q_ca = jnp.broadcast_to(vec[2:3, :E], (Mt, E))
    b_kv_ca = vec[2:3, E:3 * E]
    b_o_ca = jnp.broadcast_to(vec[3:4, :E], (Mt, E))
    b1 = jnp.broadcast_to(vec[4:5, :ff], (Mt, ff))
    b2 = jnp.broadcast_to(vec[5:6, :E], (Mt, E))
    g1, be1 = vec[6:7, :E], vec[7:8, :E]
    g2, be2 = vec[8:9, :E], vec[9:10, :E]
    g3, be3 = vec[10:11, :E], vec[11:12, :E]

    # Cross-attention K/V depend only on memory + shared weights -> compute
    # once, cast to bf16 once, reuse in every layer.
    kv_m = jnp.dot(m, wkv_ca, preferred_element_type=jnp.float32) + b_kv_ca
    k_m = kv_m[:, :E].reshape(B, Sm, E).astype(jnp.bfloat16)
    v_m = kv_m[:, E:].reshape(B, Sm, E).astype(jnp.bfloat16)

    for _ in range(num_layers):  # deepcopy semantics => all layers share weights
        # ---- self-attention + add & norm (post-norm) ----
        xb = x.astype(jnp.bfloat16)
        qkv = jnp.dot(xb, wqkv_sa, preferred_element_type=jnp.float32) + b_qkv_sa
        q = qkv[:, :E].reshape(B, St, E).astype(jnp.bfloat16)
        k = qkv[:, E:2 * E].reshape(B, St, E).astype(jnp.bfloat16)
        v = qkv[:, 2 * E:].reshape(B, St, E).astype(jnp.bfloat16)
        sa = _mha_proj(q, k, v, wo_sa_h, hd).reshape(Mt, E)
        x = _layer_norm(x + sa + b_o_sa, g1, be1)

        # ---- cross-attention + add & norm ----
        xb = x.astype(jnp.bfloat16)
        qc = jnp.dot(xb, wq_ca, preferred_element_type=jnp.float32) + b_q_ca
        qc = qc.reshape(B, St, E).astype(jnp.bfloat16)
        ca = _mha_proj(qc, k_m, v_m, wo_ca_h, hd).reshape(Mt, E)
        x = _layer_norm(x + ca + b_o_ca, g2, be2)

        # ---- feed-forward (ReLU) + add & norm ----
        xb = x.astype(jnp.bfloat16)
        h = jnp.maximum(jnp.dot(xb, w1, preferred_element_type=jnp.float32) + b1, 0.0)
        ffo = jnp.dot(h.astype(jnp.bfloat16), w2,
                      preferred_element_type=jnp.float32) + b2
        x = _layer_norm(x + ffo, g3, be3)

    out_ref[...] = x.astype(out_ref.dtype)


def transformer_decoder(tgt, memory, layer_params, nhead, num_layers):
    """TransformerDecoder.forward: tgt (S_tgt, B, E), memory (S_mem, B, E)."""
    (w_in_sa, b_in_sa, w_o_sa, b_o_sa,
     w_in_ca, b_in_ca, w_o_ca, b_o_ca,
     w1, b1, w2, b2,
     g1, be1, g2, be2, g3, be3) = layer_params

    St, B, E = tgt.shape
    Sm = memory.shape[0]
    ff = w1.shape[0]
    hd = E // nhead
    scale = 1.0 / math.sqrt(hd)

    # Seq-first -> batch-first -> flattened (M, E): pure layout plumbing so the
    # kernel never reshapes on the load/store path.
    tgt_2d = jnp.transpose(tgt, (1, 0, 2)).reshape(B * St, E)
    mem_2d = jnp.transpose(memory, (1, 0, 2)).reshape(B * Sm, E)

    # Pre-transpose to x @ W orientation and fold 1/sqrt(hd) into the Q
    # columns / Q bias (removes the per-layer '* scale' VPU multiplies).
    w_qkv_sa = jnp.concatenate([w_in_sa[:E].T * scale, w_in_sa[E:].T], axis=1)
    w_qkv_ca = jnp.concatenate([w_in_ca[:E].T * scale, w_in_ca[E:].T], axis=1)
    b_in_sa2 = b_in_sa.reshape(1, -1)
    b_in_ca2 = b_in_ca.reshape(1, -1)
    b_in_sa_f = jnp.concatenate([b_in_sa2[:, :E] * scale, b_in_sa2[:, E:]], axis=1)
    b_in_ca_f = jnp.concatenate([b_in_ca2[:, :E] * scale, b_in_ca2[:, E:]], axis=1)

    # Pack the six weight matrices into ONE bf16 row-stacked slab (single DMA).
    Wpad = max(3 * E, ff, 128)

    def pad_cols(mat):
        return jnp.pad(mat, ((0, 0), (0, Wpad - mat.shape[1])))

    w_slab = jnp.concatenate([
        pad_cols(w_qkv_sa),   # rows [0,  E)   (E, 3E)
        pad_cols(w_o_sa.T),   # rows [E, 2E)   (E, E)
        pad_cols(w_qkv_ca),   # rows [2E,3E)   (E, 3E)
        pad_cols(w_o_ca.T),   # rows [3E,4E)   (E, E)
        pad_cols(w1.T),       # rows [4E,5E)   (E, ff)
        pad_cols(w2.T),       # rows [5E,5E+ff) (ff, E)
    ], axis=0).astype(jnp.bfloat16)

    # Pack the 12 bias / LayerNorm vectors into one f32 slab (single DMA).
    Wv = max(3 * E, ff)

    def row(v):
        v = v.reshape(-1).astype(jnp.float32)
        return jnp.pad(v, (0, Wv - v.shape[0]))

    vec = jnp.stack([row(b_in_sa_f), row(b_o_sa), row(b_in_ca_f), row(b_o_ca),
                     row(b1), row(b2),
                     row(g1), row(be1), row(g2), row(be2), row(g3), row(be3)])

    cfg = (B, St, Sm, E, ff, nhead, num_layers)

    in_specs = [
        pl.BlockSpec((B * St, E), lambda i: (0, 0)),
        pl.BlockSpec((B * Sm, E), lambda i: (0, 0)),
        pl.BlockSpec(w_slab.shape, lambda i: (0, 0)),
        pl.BlockSpec(vec.shape, lambda i: (0, 0)),
    ]
    out_spec = pl.BlockSpec((B * St, E), lambda i: (0, 0))

    out2d = pl.pallas_call(
        functools.partial(decoder_kernel, cfg),
        out_shape=jax.ShapeDtypeStruct((B * St, E), tgt.dtype),
        grid_spec=pltpu.PrefetchScalarGridSpec(
            num_scalar_prefetch=0,
            grid=(1,),                       # whole problem in one fused step
            in_specs=in_specs,
            out_specs=out_spec,
        ),
        compiler_params=pltpu.CompilerParams(
            dimension_semantics=("arbitrary",)),
    )(tgt_2d, mem_2d, w_slab, vec)

    return jnp.transpose(out2d.reshape(B, St, E), (1, 0, 2))  # back to (S, B, E)


def init_layer_params(key, d_model, nhead, dim_feedforward):
    E, ff = d_model, dim_feedforward
    ks = jax.random.split(key, 8)
    scale = 0.05

    def rnd(k, shape):
        return (scale * jax.random.normal(k, shape)).astype(jnp.float32)

    zeros = lambda shape: jnp.zeros(shape, jnp.float32)
    ones = lambda shape: jnp.ones(shape, jnp.float32)

    params = [
        # self-attention (PyTorch packed in_proj convention)
        rnd(ks[0], (3 * E, E)), zeros((1, 3 * E)),
        rnd(ks[1], (E, E)), zeros((1, E)),
        # cross-attention
        rnd(ks[2], (3 * E, E)), zeros((1, 3 * E)),
        rnd(ks[3], (E, E)), zeros((1, E)),
        # feed-forward
        rnd(ks[4], (ff, E)), zeros((1, ff)),
        rnd(ks[5], (E, ff)), zeros((1, E)),
        # layer norms 1, 2, 3
        ones((1, E)), zeros((1, E)),
        ones((1, E)), zeros((1, E)),
        ones((1, E)), zeros((1, E)),
    ]
    return params


if __name__ == "__main__":
    B, S_tgt, S_mem = 2, 8, 8
    d_model, nhead, dim_ff = 32, 4, 64
    num_layers = 2

    key = jax.random.PRNGKey(0)
    k_tgt, k_mem, k_par = jax.random.split(key, 3)

    # PyTorch seq-first convention: (S, B, E)
    tgt = jax.random.normal(k_tgt, (S_tgt, B, d_model), jnp.float32)
    memory = jax.random.normal(k_mem, (S_mem, B, d_model), jnp.float32)

    layer_params = init_layer_params(k_par, d_model, nhead, dim_ff)

    out = transformer_decoder(tgt, memory, layer_params, nhead, num_layers)
    out = jax.block_until_ready(out)

    assert out.shape == (S_tgt, B, d_model), out.shape
    assert bool(jnp.all(jnp.isfinite(out)))
    print("KERNEL_OK")
</pallas_src>

<mosaic_0001>
module attributes {stable_mosaic.version = 11 : i64} {
  func.func @decoder_kernel(%arg0: i32, %arg1: memref<16x32xf32, #tpu.memory_space<vmem>>, %arg2: memref<16x32xf32, #tpu.memory_space<vmem>>, %arg3: memref<224x128xbf16, #tpu.memory_space<vmem>>, %arg4: memref<12x96xf32, #tpu.memory_space<vmem>>, %arg5: memref<16x32xf32, #tpu.memory_space<vmem>>) attributes {dimension_semantics = [#tpu.dimension_semantics<arbitrary>], iteration_bounds = array<i64: 1>, scalar_prefetch = 0 : i64, scratch_operands = 0 : i64, tpu.core_type = #tpu.core_type<tc>, window_params = [{pipeline_mode = #tpu.pipeline_mode<synchronous>, transform_indices = @transform_0, window_bounds = array<i64: 16, 32>}, {pipeline_mode = #tpu.pipeline_mode<synchronous>, transform_indices = @transform_1, window_bounds = array<i64: 16, 32>}, {pipeline_mode = #tpu.pipeline_mode<synchronous>, transform_indices = @transform_2, window_bounds = array<i64: 224, 128>}, {pipeline_mode = #tpu.pipeline_mode<synchronous>, transform_indices = @transform_3, window_bounds = array<i64: 12, 96>}, {pipeline_mode = #tpu.pipeline_mode<synchronous>, transform_indices = @transform_4, window_bounds = array<i64: 16, 32>}]} {
    %c0 = arith.constant 0 : index
    %c0_0 = arith.constant 0 : index
    %0 = vector.load %arg1[%c0, %c0_0] : memref<16x32xf32, #tpu.memory_space<vmem>>, vector<16x32xf32>
    %c0_1 = arith.constant 0 : index
    %c0_2 = arith.constant 0 : index
    %1 = vector.load %arg2[%c0_1, %c0_2] : memref<16x32xf32, #tpu.memory_space<vmem>>, vector<16x32xf32>
    %2 = arith.truncf %1 : vector<16x32xf32> to vector<16x32xbf16>
    %c0_3 = arith.constant 0 : index
    %c0_4 = arith.constant 0 : index
    %3 = vector.load %arg3[%c0_3, %c0_4] : memref<224x128xbf16, #tpu.memory_space<vmem>>, vector<224x128xbf16>
    %4 = vector.extract_strided_slice %3 {offsets = [0, 0], sizes = [32, 96], strides = [1, 1]} : vector<224x128xbf16> to vector<32x96xbf16>
    %5 = vector.extract_strided_slice %3 {offsets = [32, 0], sizes = [32, 32], strides = [1, 1]} : vector<224x128xbf16> to vector<32x32xbf16>
    %6 = vector.extract_strided_slice %3 {offsets = [64, 0], sizes = [32, 96], strides = [1, 1]} : vector<224x128xbf16> to vector<32x96xbf16>
    %7 = vector.extract_strided_slice %6 {offsets = [0, 0], sizes = [32, 32], strides = [1, 1]} : vector<32x96xbf16> to vector<32x32xbf16>
    %8 = vector.extract_strided_slice %6 {offsets = [0, 32], sizes = [32, 64], strides = [1, 1]} : vector<32x96xbf16> to vector<32x64xbf16>
    %9 = vector.extract_strided_slice %3 {offsets = [96, 0], sizes = [32, 32], strides = [1, 1]} : vector<224x128xbf16> to vector<32x32xbf16>
    %10 = vector.extract_strided_slice %3 {offsets = [128, 0], sizes = [32, 64], strides = [1, 1]} : vector<224x128xbf16> to vector<32x64xbf16>
    %11 = vector.extract_strided_slice %3 {offsets = [160, 0], sizes = [64, 32], strides = [1, 1]} : vector<224x128xbf16> to vector<64x32xbf16>
    %12 = vector.extract_strided_slice %5 {offsets = [0, 0], sizes = [8, 32], strides = [1, 1]} : vector<32x32xbf16> to vector<8x32xbf16>
    %13 = vector.extract_strided_slice %5 {offsets = [8, 0], sizes = [8, 32], strides = [1, 1]} : vector<32x32xbf16> to vector<8x32xbf16>
    %14 = vector.extract_strided_slice %5 {offsets = [16, 0], sizes = [8, 32], strides = [1, 1]} : vector<32x32xbf16> to vector<8x32xbf16>
    %15 = vector.extract_strided_slice %5 {offsets = [24, 0], sizes = [8, 32], strides = [1, 1]} : vector<32x32xbf16> to vector<8x32xbf16>
    %16 = vector.extract_strided_slice %9 {offsets = [0, 0], sizes = [8, 32], strides = [1, 1]} : vector<32x32xbf16> to vector<8x32xbf16>
    %17 = vector.extract_strided_slice %9 {offsets = [8, 0], sizes = [8, 32], strides = [1, 1]} : vector<32x32xbf16> to vector<8x32xbf16>
    %18 = vector.extract_strided_slice %9 {offsets = [16, 0], sizes = [8, 32], strides = [1, 1]} : vector<32x32xbf16> to vector<8x32xbf16>
    %19 = vector.extract_strided_slice %9 {offsets = [24, 0], sizes = [8, 32], strides = [1, 1]} : vector<32x32xbf16> to vector<8x32xbf16>
    %c0_5 = arith.constant 0 : index
    %c0_6 = arith.constant 0 : index
    %20 = vector.load %arg4[%c0_5, %c0_6] : memref<12x96xf32, #tpu.memory_space<vmem>>, vector<12x96xf32>
    %21 = vector.extract_strided_slice %20 {offsets = [0, 0], sizes = [1, 96], strides = [1, 1]} : vector<12x96xf32> to vector<1x96xf32>
    %22 = vector.shape_cast %21 : vector<1x96xf32> to vector<1x96xf32>
    %23 = vector.broadcast %22 : vector<1x96xf32> to vector<16x96xf32>
    %24 = vector.extract_strided_slice %20 {offsets = [1, 0], sizes = [1, 32], strides = [1, 1]} : vector<12x96xf32> to vector<1x32xf32>
    %25 = vector.shape_cast %24 : vector<1x32xf32> to vector<1x32xf32>
    %26 = vector.broadcast %25 : vector<1x32xf32> to vector<16x32xf32>
    %27 = vector.extract_strided_slice %20 {offsets = [2, 0], sizes = [1, 32], strides = [1, 1]} : vector<12x96xf32> to vector<1x32xf32>
    %28 = vector.shape_cast %27 : vector<1x32xf32> to vector<1x32xf32>
    %29 = vector.broadcast %28 : vector<1x32xf32> to vector<16x32xf32>
    %30 = vector.extract_strided_slice %20 {offsets = [2, 32], sizes = [1, 64], strides = [1, 1]} : vector<12x96xf32> to vector<1x64xf32>
    %31 = vector.extract_strided_slice %20 {offsets = [3, 0], sizes = [1, 32], strides = [1, 1]} : vector<12x96xf32> to vector<1x32xf32>
    %32 = vector.shape_cast %31 : vector<1x32xf32> to vector<1x32xf32>
    %33 = vector.broadcast %32 : vector<1x32xf32> to vector<16x32xf32>
    %34 = vector.extract_strided_slice %20 {offsets = [4, 0], sizes = [1, 64], strides = [1, 1]} : vector<12x96xf32> to vector<1x64xf32>
    %35 = vector.shape_cast %34 : vector<1x64xf32> to vector<1x64xf32>
    %36 = vector.broadcast %35 : vector<1x64xf32> to vector<16x64xf32>
    %37 = vector.extract_strided_slice %20 {offsets = [5, 0], sizes = [1, 32], strides = [1, 1]} : vector<12x96xf32> to vector<1x32xf32>
    %38 = vector.shape_cast %37 : vector<1x32xf32> to vector<1x32xf32>
    %39 = vector.broadcast %38 : vector<1x32xf32> to vector<16x32xf32>
    %40 = vector.extract_strided_slice %20 {offsets = [6, 0], sizes = [1, 32], strides = [1, 1]} : vector<12x96xf32> to vector<1x32xf32>
    %41 = vector.extract_strided_slice %20 {offsets = [7, 0], sizes = [1, 32], strides = [1, 1]} : vector<12x96xf32> to vector<1x32xf32>
    %42 = vector.extract_strided_slice %20 {offsets = [8, 0], sizes = [1, 32], strides = [1, 1]} : vector<12x96xf32> to vector<1x32xf32>
    %43 = vector.extract_strided_slice %20 {offsets = [9, 0], sizes = [1, 32], strides = [1, 1]} : vector<12x96xf32> to vector<1x32xf32>
    %44 = vector.extract_strided_slice %20 {offsets = [10, 0], sizes = [1, 32], strides = [1, 1]} : vector<12x96xf32> to vector<1x32xf32>
    %45 = vector.extract_strided_slice %20 {offsets = [11, 0], sizes = [1, 32], strides = [1, 1]} : vector<12x96xf32> to vector<1x32xf32>
    %cst = arith.constant dense<0.000000e+00> : vector<16x64xf32>
    %46 = tpu.matmul %2, %8, %cst {dimension_numbers = #tpu.dot_dimension_numbers<[1], [0], [0], [1], [0, 0, 1, 1], [], []>} : vector<16x32xbf16>, vector<32x64xbf16>, vector<16x64xf32> -> vector<16x64xf32>
    %47 = vector.broadcast %30 : vector<1x64xf32> to vector<16x64xf32>
    %48 = arith.addf %46, %47 : vector<16x64xf32>
    %49 = vector.extract_strided_slice %48 {offsets = [0, 0], sizes = [16, 32], strides = [1, 1]} : vector<16x64xf32> to vector<16x32xf32>
    %50 = vector.shape_cast %49 : vector<16x32xf32> to vector<2x8x32xf32>
    %51 = arith.truncf %50 : vector<2x8x32xf32> to vector<2x8x32xbf16>
    %52 = vector.extract_strided_slice %48 {offsets = [0, 32], sizes = [16, 32], strides = [1, 1]} : vector<16x64xf32> to vector<16x32xf32>
    %53 = vector.shape_cast %52 : vector<16x32xf32> to vector<2x8x32xf32>
    %54 = arith.truncf %53 : vector<2x8x32xf32> to vector<2x8x32xbf16>
    %55 = arith.truncf %0 : vector<16x32xf32> to vector<16x32xbf16>
    %cst_7 = arith.constant dense<0.000000e+00> : vector<16x96xf32>
    %56 = tpu.matmul %55, %4, %cst_7 {dimension_numbers = #tpu.dot_dimension_numbers<[1], [0], [0], [1], [0, 0, 1, 1], [], []>} : vector<16x32xbf16>, vector<32x96xbf16>, vector<16x96xf32> -> vector<16x96xf32>
    %57 = arith.addf %56, %23 : vector<16x96xf32>
    %58 = vector.extract_strided_slice %57 {offsets = [0, 0], sizes = [16, 32], strides = [1, 1]} : vector<16x96xf32> to vector<16x32xf32>
    %59 = vector.shape_cast %58 : vector<16x32xf32> to vector<2x8x32xf32>
    %60 = arith.truncf %59 : vector<2x8x32xf32> to vector<2x8x32xbf16>
    %61 = vector.extract_strided_slice %57 {offsets = [0, 32], sizes = [16, 32], strides = [1, 1]} : vector<16x96xf32> to vector<16x32xf32>
    %62 = vector.shape_cast %61 : vector<16x32xf32> to vector<2x8x32xf32>
    %63 = arith.truncf %62 : vector<2x8x32xf32> to vector<2x8x32xbf16>
    %64 = vector.extract_strided_slice %57 {offsets = [0, 64], sizes = [16, 32], strides = [1, 1]} : vector<16x96xf32> to vector<16x32xf32>
    %65 = vector.shape_cast %64 : vector<16x32xf32> to vector<2x8x32xf32>
    %66 = arith.truncf %65 : vector<2x8x32xf32> to vector<2x8x32xbf16>
    %cst_8 = arith.constant 0.000000e+00 : f32
    %67 = vector.broadcast %cst_8 : f32 to vector<2x8x32xf32>
    %68 = vector.extract_strided_slice %60 {offsets = [0, 0, 0], sizes = [2, 8, 8], strides = [1, 1, 1]} : vector<2x8x32xbf16> to vector<2x8x8xbf16>
    %69 = vector.extract_strided_slice %63 {offsets = [0, 0, 0], sizes = [2, 8, 8], strides = [1, 1, 1]} : vector<2x8x32xbf16> to vector<2x8x8xbf16>
    "tpu.trace_start"() <{level = 10 : i32, message = "bqd,bkd->bqk"}> : () -> ()
    %cst_9 = arith.constant dense<0.000000e+00> : vector<2x8x8xf32>
    %70 = tpu.matmul %68, %69, %cst_9 {dimension_numbers = #tpu.dot_dimension_numbers<[2], [2], [1], [1], [0, 0, 0, 1, 1, 1], [0], [0]>} : vector<2x8x8xbf16>, vector<2x8x8xbf16>, vector<2x8x8xf32> -> vector<2x8x8xf32>
    "tpu.trace_stop"() : () -> ()
    %cst_10 = arith.constant dense<0xFF800000> : vector<2x8xf32>
    %71 = vector.multi_reduction <maximumf>, %70, %cst_10 [2] : vector<2x8x8xf32> to vector<2x8xf32>
    %72 = vector.shape_cast %71 : vector<2x8xf32> to vector<2x8x1xf32>
    %73 = vector.broadcast %72 : vector<2x8x1xf32> to vector<2x8x8xf32>
    %74 = arith.subf %70, %73 : vector<2x8x8xf32>
    %75 = math.exp %74 : vector<2x8x8xf32>
    %cst_11 = arith.constant dense<0.000000e+00> : vector<2x8xf32>
    %76 = vector.multi_reduction <add>, %75, %cst_11 [2] : vector<2x8x8xf32> to vector<2x8xf32>
    %77 = vector.shape_cast %76 : vector<2x8xf32> to vector<2x8x1xf32>
    %78 = tpu.reciprocal %77 {approx = true} : vector<2x8x1xf32> -> vector<2x8x1xf32>
    %79 = vector.broadcast %78 : vector<2x8x1xf32> to vector<2x8x8xf32>
    %80 = arith.mulf %75, %79 : vector<2x8x8xf32>
    %81 = arith.truncf %80 : vector<2x8x8xf32> to vector<2x8x8xbf16>
    %82 = vector.extract_strided_slice %66 {offsets = [0, 0, 0], sizes = [2, 8, 8], strides = [1, 1, 1]} : vector<2x8x32xbf16> to vector<2x8x8xbf16>
    "tpu.trace_start"() <{level = 10 : i32, message = "bqk,bkd->bqd"}> : () -> ()
    %cst_12 = arith.constant dense<0.000000e+00> : vector<2x8x8xf32>
    %83 = tpu.matmul %81, %82, %cst_12 {dimension_numbers = #tpu.dot_dimension_numbers<[2], [1], [1], [2], [0, 0, 0, 1, 1, 2], [0], [0]>} : vector<2x8x8xbf16>, vector<2x8x8xbf16>, vector<2x8x8xf32> -> vector<2x8x8xf32>
    "tpu.trace_stop"() : () -> ()
    %84 = arith.truncf %83 : vector<2x8x8xf32> to vector<2x8x8xbf16>
    "tpu.trace_start"() <{level = 10 : i32, message = "bqd,de->bqe"}> : () -> ()
    %cst_13 = arith.constant dense<0.000000e+00> : vector<2x8x32xf32>
    %85 = tpu.matmul %84, %12, %cst_13 {dimension_numbers = #tpu.dot_dimension_numbers<[2], [0], [0, 1], [1], [0, 0, 0, 1, 1, 1], [], []>} : vector<2x8x8xbf16>, vector<8x32xbf16>, vector<2x8x32xf32> -> vector<2x8x32xf32>
    "tpu.trace_stop"() : () -> ()
    %86 = arith.addf %67, %85 : vector<2x8x32xf32>
    %87 = vector.extract_strided_slice %60 {offsets = [0, 0, 8], sizes = [2, 8, 8], strides = [1, 1, 1]} : vector<2x8x32xbf16> to vector<2x8x8xbf16>
    %88 = vector.extract_strided_slice %63 {offsets = [0, 0, 8], sizes = [2, 8, 8], strides = [1, 1, 1]} : vector<2x8x32xbf16> to vector<2x8x8xbf16>
    "tpu.trace_start"() <{level = 10 : i32, message = "bqd,bkd->bqk"}> : () -> ()
    %cst_14 = arith.constant dense<0.000000e+00> : vector<2x8x8xf32>
    %89 = tpu.matmul %87, %88, %cst_14 {dimension_numbers = #tpu.dot_dimension_numbers<[2], [2], [1], [1], [0, 0, 0, 1, 1, 1], [0], [0]>} : vector<2x8x8xbf16>, vector<2x8x8xbf16>, vector<2x8x8xf32> -> vector<2x8x8xf32>
    "tpu.trace_stop"() : () -> ()
    %cst_15 = arith.constant dense<0xFF800000> : vector<2x8xf32>
    %90 = vector.multi_reduction <maximumf>, %89, %cst_15 [2] : vector<2x8x8xf32> to vector<2x8xf32>
    %91 = vector.shape_cast %90 : vector<2x8xf32> to vector<2x8x1xf32>
    %92 = vector.broadcast %91 : vector<2x8x1xf32> to vector<2x8x8xf32>
    %93 = arith.subf %89, %92 : vector<2x8x8xf32>
    %94 = math.exp %93 : vector<2x8x8xf32>
    %cst_16 = arith.constant dense<0.000000e+00> : vector<2x8xf32>
    %95 = vector.multi_reduction <add>, %94, %cst_16 [2] : vector<2x8x8xf32> to vector<2x8xf32>
    %96 = vector.shape_cast %95 : vector<2x8xf32> to vector<2x8x1xf32>
    %97 = tpu.reciprocal %96 {approx = true} : vector<2x8x1xf32> -> vector<2x8x1xf32>
    %98 = vector.broadcast %97 : vector<2x8x1xf32> to vector<2x8x8xf32>
    %99 = arith.mulf %94, %98 : vector<2x8x8xf32>
    %100 = arith.truncf %99 : vector<2x8x8xf32> to vector<2x8x8xbf16>
    %101 = vector.extract_strided_slice %66 {offsets = [0, 0, 8], sizes = [2, 8, 8], strides = [1, 1, 1]} : vector<2x8x32xbf16> to vector<2x8x8xbf16>
    "tpu.trace_start"() <{level = 10 : i32, message = "bqk,bkd->bqd"}> : () -> ()
    %cst_17 = arith.constant dense<0.000000e+00> : vector<2x8x8xf32>
    %102 = tpu.matmul %100, %101, %cst_17 {dimension_numbers = #tpu.dot_dimension_numbers<[2], [1], [1], [2], [0, 0, 0, 1, 1, 2], [0], [0]>} : vector<2x8x8xbf16>, vector<2x8x8xbf16>, vector<2x8x8xf32> -> vector<2x8x8xf32>
    "tpu.trace_stop"() : () -> ()
    %103 = arith.truncf %102 : vector<2x8x8xf32> to vector<2x8x8xbf16>
    "tpu.trace_start"() <{level = 10 : i32, message = "bqd,de->bqe"}> : () -> ()
    %cst_18 = arith.constant dense<0.000000e+00> : vector<2x8x32xf32>
    %104 = tpu.matmul %103, %13, %cst_18 {dimension_numbers = #tpu.dot_dimension_numbers<[2], [0], [0, 1], [1], [0, 0, 0, 1, 1, 1], [], []>} : vector<2x8x8xbf16>, vector<8x32xbf16>, vector<2x8x32xf32> -> vector<2x8x32xf32>
    "tpu.trace_stop"() : () -> ()
    %105 = arith.addf %86, %104 : vector<2x8x32xf32>
    %106 = vector.extract_strided_slice %60 {offsets = [0, 0, 16], sizes = [2, 8, 8], strides = [1, 1, 1]} : vector<2x8x32xbf16> to vector<2x8x8xbf16>
    %107 = vector.extract_strided_slice %63 {offsets = [0, 0, 16], sizes = [2, 8, 8], strides = [1, 1, 1]} : vector<2x8x32xbf16> to vector<2x8x8xbf16>
    "tpu.trace_start"() <{level = 10 : i32, message = "bqd,bkd->bqk"}> : () -> ()
    %cst_19 = arith.constant dense<0.000000e+00> : vector<2x8x8xf32>
    %108 = tpu.matmul %106, %107, %cst_19 {dimension_numbers = #tpu.dot_dimension_numbers<[2], [2], [1], [1], [0, 0, 0, 1, 1, 1], [0], [0]>} : vector<2x8x8xbf16>, vector<2x8x8xbf16>, vector<2x8x8xf32> -> vector<2x8x8xf32>
    "tpu.trace_stop"() : () -> ()
    %cst_20 = arith.constant dense<0xFF800000> : vector<2x8xf32>
    %109 = vector.multi_reduction <maximumf>, %108, %cst_20 [2] : vector<2x8x8xf32> to vector<2x8xf32>
    %110 = vector.shape_cast %109 : vector<2x8xf32> to vector<2x8x1xf32>
    %111 = vector.broadcast %110 : vector<2x8x1xf32> to vector<2x8x8xf32>
    %112 = arith.subf %108, %111 : vector<2x8x8xf32>
    %113 = math.exp %112 : vector<2x8x8xf32>
    %cst_21 = arith.constant dense<0.000000e+00> : vector<2x8xf32>
    %114 = vector.multi_reduction <add>, %113, %cst_21 [2] : vector<2x8x8xf32> to vector<2x8xf32>
    %115 = vector.shape_cast %114 : vector<2x8xf32> to vector<2x8x1xf32>
    %116 = tpu.reciprocal %115 {approx = true} : vector<2x8x1xf32> -> vector<2x8x1xf32>
    %117 = vector.broadcast %116 : vector<2x8x1xf32> to vector<2x8x8xf32>
    %118 = arith.mulf %113, %117 : vector<2x8x8xf32>
    %119 = arith.truncf %118 : vector<2x8x8xf32> to vector<2x8x8xbf16>
    %120 = vector.extract_strided_slice %66 {offsets = [0, 0, 16], sizes = [2, 8, 8], strides = [1, 1, 1]} : vector<2x8x32xbf16> to vector<2x8x8xbf16>
    "tpu.trace_start"() <{level = 10 : i32, message = "bqk,bkd->bqd"}> : () -> ()
    %cst_22 = arith.constant dense<0.000000e+00> : vector<2x8x8xf32>
    %121 = tpu.matmul %119, %120, %cst_22 {dimension_numbers = #tpu.dot_dimension_numbers<[2], [1], [1], [2], [0, 0, 0, 1, 1, 2], [0], [0]>} : vector<2x8x8xbf16>, vector<2x8x8xbf16>, vector<2x8x8xf32> -> vector<2x8x8xf32>
    "tpu.trace_stop"() : () -> ()
    %122 = arith.truncf %121 : vector<2x8x8xf32> to vector<2x8x8xbf16>
    "tpu.trace_start"() <{level = 10 : i32, message = "bqd,de->bqe"}> : () -> ()
    %cst_23 = arith.constant dense<0.000000e+00> : vector<2x8x32xf32>
    %123 = tpu.matmul %122, %14, %cst_23 {dimension_numbers = #tpu.dot_dimension_numbers<[2], [0], [0, 1], [1], [0, 0, 0, 1, 1, 1], [], []>} : vector<2x8x8xbf16>, vector<8x32xbf16>, vector<2x8x32xf32> -> vector<2x8x32xf32>
    "tpu.trace_stop"() : () -> ()
    %124 = arith.addf %105, %123 : vector<2x8x32xf32>
    %125 = vector.extract_strided_slice %60 {offsets = [0, 0, 24], sizes = [2, 8, 8], strides = [1, 1, 1]} : vector<2x8x32xbf16> to vector<2x8x8xbf16>
    %126 = vector.extract_strided_slice %63 {offsets = [0, 0, 24], sizes = [2, 8, 8], strides = [1, 1, 1]} : vector<2x8x32xbf16> to vector<2x8x8xbf16>
    "tpu.trace_start"() <{level = 10 : i32, message = "bqd,bkd->bqk"}> : () -> ()
    %cst_24 = arith.constant dense<0.000000e+00> : vector<2x8x8xf32>
    %127 = tpu.matmul %125, %126, %cst_24 {dimension_numbers = #tpu.dot_dimension_numbers<[2], [2], [1], [1], [0, 0, 0, 1, 1, 1], [0], [0]>} : vector<2x8x8xbf16>, vector<2x8x8xbf16>, vector<2x8x8xf32> -> vector<2x8x8xf32>
    "tpu.trace_stop"() : () -> ()
    %cst_25 = arith.constant dense<0xFF800000> : vector<2x8xf32>
    %128 = vector.multi_reduction <maximumf>, %127, %cst_25 [2] : vector<2x8x8xf32> to vector<2x8xf32>
    %129 = vector.shape_cast %128 : vector<2x8xf32> to vector<2x8x1xf32>
    %130 = vector.broadcast %129 : vector<2x8x1xf32> to vector<2x8x8xf32>
    %131 = arith.subf %127, %130 : vector<2x8x8xf32>
    %132 = math.exp %131 : vector<2x8x8xf32>
    %cst_26 = arith.constant dense<0.000000e+00> : vector<2x8xf32>
    %133 = vector.multi_reduction <add>, %132, %cst_26 [2] : vector<2x8x8xf32> to vector<2x8xf32>
    %134 = vector.shape_cast %133 : vector<2x8xf32> to vector<2x8x1xf32>
    %135 = tpu.reciprocal %134 {approx = true} : vector<2x8x1xf32> -> vector<2x8x1xf32>
    %136 = vector.broadcast %135 : vector<2x8x1xf32> to vector<2x8x8xf32>
    %137 = arith.mulf %132, %136 : vector<2x8x8xf32>
    %138 = arith.truncf %137 : vector<2x8x8xf32> to vector<2x8x8xbf16>
    %139 = vector.extract_strided_slice %66 {offsets = [0, 0, 24], sizes = [2, 8, 8], strides = [1, 1, 1]} : vector<2x8x32xbf16> to vector<2x8x8xbf16>
    "tpu.trace_start"() <{level = 10 : i32, message = "bqk,bkd->bqd"}> : () -> ()
    %cst_27 = arith.constant dense<0.000000e+00> : vector<2x8x8xf32>
    %140 = tpu.matmul %138, %139, %cst_27 {dimension_numbers = #tpu.dot_dimension_numbers<[2], [1], [1], [2], [0, 0, 0, 1, 1, 2], [0], [0]>} : vector<2x8x8xbf16>, vector<2x8x8xbf16>, vector<2x8x8xf32> -> vector<2x8x8xf32>
    "tpu.trace_stop"() : () -> ()
    %141 = arith.truncf %140 : vector<2x8x8xf32> to vector<2x8x8xbf16>
    "tpu.trace_start"() <{level = 10 : i32, message = "bqd,de->bqe"}> : () -> ()
    %cst_28 = arith.constant dense<0.000000e+00> : vector<2x8x32xf32>
    %142 = tpu.matmul %141, %15, %cst_28 {dimension_numbers = #tpu.dot_dimension_numbers<[2], [0], [0, 1], [1], [0, 0, 0, 1, 1, 1], [], []>} : vector<2x8x8xbf16>, vector<8x32xbf16>, vector<2x8x32xf32> -> vector<2x8x32xf32>
    "tpu.trace_stop"() : () -> ()
    %143 = arith.addf %124, %142 : vector<2x8x32xf32>
    %144 = vector.shape_cast %143 : vector<2x8x32xf32> to vector<16x32xf32>
    %145 = arith.addf %0, %144 : vector<16x32xf32>
    %146 = arith.addf %145, %26 : vector<16x32xf32>
    %cst_29 = arith.constant dense<0.000000e+00> : vector<16xf32>
    %147 = vector.multi_reduction <add>, %146, %cst_29 [1] : vector<16x32xf32> to vector<16xf32>
    %148 = vector.shape_cast %147 : vector<16xf32> to vector<16x1xf32>
    %cst_30 = arith.constant 3.200000e+01 : f32
    %149 = vector.broadcast %cst_30 : f32 to vector<16x1xf32>
    %150 = arith.divf %148, %149 : vector<16x1xf32>
    %151 = vector.broadcast %150 : vector<16x1xf32> to vector<16x32xf32>
    %152 = arith.subf %146, %151 : vector<16x32xf32>
    %153 = arith.mulf %152, %152 : vector<16x32xf32>
    %cst_31 = arith.constant dense<0.000000e+00> : vector<16xf32>
    %154 = vector.multi_reduction <add>, %153, %cst_31 [1] : vector<16x32xf32> to vector<16xf32>
    %155 = vector.shape_cast %154 : vector<16xf32> to vector<16x1xf32>
    %cst_32 = arith.constant 3.200000e+01 : f32
    %156 = vector.broadcast %cst_32 : f32 to vector<16x1xf32>
    %157 = arith.divf %155, %156 : vector<16x1xf32>
    %cst_33 = arith.constant 9.99999974E-6 : f32
    %158 = vector.broadcast %cst_33 : f32 to vector<16x1xf32>
    %159 = arith.addf %157, %158 : vector<16x1xf32>
    %160 = math.rsqrt %159 : vector<16x1xf32>
    %161 = vector.broadcast %160 : vector<16x1xf32> to vector<16x32xf32>
    %162 = arith.mulf %152, %161 : vector<16x32xf32>
    %163 = vector.broadcast %40 : vector<1x32xf32> to vector<16x32xf32>
    %164 = arith.mulf %162, %163 : vector<16x32xf32>
    %165 = vector.broadcast %41 : vector<1x32xf32> to vector<16x32xf32>
    %166 = arith.addf %164, %165 : vector<16x32xf32>
    %167 = arith.truncf %166 : vector<16x32xf32> to vector<16x32xbf16>
    %cst_34 = arith.constant dense<0.000000e+00> : vector<16x32xf32>
    %168 = tpu.matmul %167, %7, %cst_34 {dimension_numbers = #tpu.dot_dimension_numbers<[1], [0], [0], [1], [0, 0, 1, 1], [], []>} : vector<16x32xbf16>, vector<32x32xbf16>, vector<16x32xf32> -> vector<16x32xf32>
    %169 = arith.addf %168, %29 : vector<16x32xf32>
    %170 = vector.shape_cast %169 : vector<16x32xf32> to vector<2x8x32xf32>
    %171 = arith.truncf %170 : vector<2x8x32xf32> to vector<2x8x32xbf16>
    %cst_35 = arith.constant 0.000000e+00 : f32
    %172 = vector.broadcast %cst_35 : f32 to vector<2x8x32xf32>
    %173 = vector.extract_strided_slice %171 {offsets = [0, 0, 0], sizes = [2, 8, 8], strides = [1, 1, 1]} : vector<2x8x32xbf16> to vector<2x8x8xbf16>
    %174 = vector.extract_strided_slice %51 {offsets = [0, 0, 0], sizes = [2, 8, 8], strides = [1, 1, 1]} : vector<2x8x32xbf16> to vector<2x8x8xbf16>
    "tpu.trace_start"() <{level = 10 : i32, message = "bqd,bkd->bqk"}> : () -> ()
    %cst_36 = arith.constant dense<0.000000e+00> : vector<2x8x8xf32>
    %175 = tpu.matmul %173, %174, %cst_36 {dimension_numbers = #tpu.dot_dimension_numbers<[2], [2], [1], [1], [0, 0, 0, 1, 1, 1], [0], [0]>} : vector<2x8x8xbf16>, vector<2x8x8xbf16>, vector<2x8x8xf32> -> vector<2x8x8xf32>
    "tpu.trace_stop"() : () -> ()
    %cst_37 = arith.constant dense<0xFF800000> : vector<2x8xf32>
    %176 = vector.multi_reduction <maximumf>, %175, %cst_37 [2] : vector<2x8x8xf32> to vector<2x8xf32>
    %177 = vector.shape_cast %176 : vector<2x8xf32> to vector<2x8x1xf32>
    %178 = vector.broadcast %177 : vector<2x8x1xf32> to vector<2x8x8xf32>
    %179 = arith.subf %175, %178 : vector<2x8x8xf32>
    %180 = math.exp %179 : vector<2x8x8xf32>
    %cst_38 = arith.constant dense<0.000000e+00> : vector<2x8xf32>
    %181 = vector.multi_reduction <add>, %180, %cst_38 [2] : vector<2x8x8xf32> to vector<2x8xf32>
    %182 = vector.shape_cast %181 : vector<2x8xf32> to vector<2x8x1xf32>
    %183 = tpu.reciprocal %182 {approx = true} : vector<2x8x1xf32> -> vector<2x8x1xf32>
    %184 = vector.broadcast %183 : vector<2x8x1xf32> to vector<2x8x8xf32>
    %185 = arith.mulf %180, %184 : vector<2x8x8xf32>
    %186 = arith.truncf %185 : vector<2x8x8xf32> to vector<2x8x8xbf16>
    %187 = vector.extract_strided_slice %54 {offsets = [0, 0, 0], sizes = [2, 8, 8], strides = [1, 1, 1]} : vector<2x8x32xbf16> to vector<2x8x8xbf16>
    "tpu.trace_start"() <{level = 10 : i32, message = "bqk,bkd->bqd"}> : () -> ()
    %cst_39 = arith.constant dense<0.000000e+00> : vector<2x8x8xf32>
    %188 = tpu.matmul %186, %187, %cst_39 {dimension_numbers = #tpu.dot_dimension_numbers<[2], [1], [1], [2], [0, 0, 0, 1, 1, 2], [0], [0]>} : vector<2x8x8xbf16>, vector<2x8x8xbf16>, vector<2x8x8xf32> -> vector<2x8x8xf32>
    "tpu.trace_stop"() : () -> ()
    %189 = arith.truncf %188 : vector<2x8x8xf32> to vector<2x8x8xbf16>
    "tpu.trace_start"() <{level = 10 : i32, message = "bqd,de->bqe"}> : () -> ()
    %cst_40 = arith.constant dense<0.000000e+00> : vector<2x8x32xf32>
    %190 = tpu.matmul %189, %16, %cst_40 {dimension_numbers = #tpu.dot_dimension_numbers<[2], [0], [0, 1], [1], [0, 0, 0, 1, 1, 1], [], []>} : vector<2x8x8xbf16>, vector<8x32xbf16>, vector<2x8x32xf32> -> vector<2x8x32xf32>
    "tpu.trace_stop"() : () -> ()
    %191 = arith.addf %172, %190 : vector<2x8x32xf32>
    %192 = vector.extract_strided_slice %171 {offsets = [0, 0, 8], sizes = [2, 8, 8], strides = [1, 1, 1]} : vector<2x8x32xbf16> to vector<2x8x8xbf16>
    %193 = vector.extract_strided_slice %51 {offsets = [0, 0, 8], sizes = [2, 8, 8], strides = [1, 1, 1]} : vector<2x8x32xbf16> to vector<2x8x8xbf16>
    "tpu.trace_start"() <{level = 10 : i32, message = "bqd,bkd->bqk"}> : () -> ()
    %cst_41 = arith.constant dense<0.000000e+00> : vector<2x8x8xf32>
    %194 = tpu.matmul %192, %193, %cst_41 {dimension_numbers = #tpu.dot_dimension_numbers<[2], [2], [1], [1], [0, 0, 0, 1, 1, 1], [0], [0]>} : vector<2x8x8xbf16>, vector<2x8x8xbf16>, vector<2x8x8xf32> -> vector<2x8x8xf32>
    "tpu.trace_stop"() : () -> ()
    %cst_42 = arith.constant dense<0xFF800000> : vector<2x8xf32>
    %195 = vector.multi_reduction <maximumf>, %194, %cst_42 [2] : vector<2x8x8xf32> to vector<2x8xf32>
    %196 = vector.shape_cast %195 : vector<2x8xf32> to vector<2x8x1xf32>
    %197 = vector.broadcast %196 : vector<2x8x1xf32> to vector<2x8x8xf32>
    %198 = arith.subf %194, %197 : vector<2x8x8xf32>
    %199 = math.exp %198 : vector<2x8x8xf32>
    %cst_43 = arith.constant dense<0.000000e+00> : vector<2x8xf32>
    %200 = vector.multi_reduction <add>, %199, %cst_43 [2] : vector<2x8x8xf32> to vector<2x8xf32>
    %201 = vector.shape_cast %200 : vector<2x8xf32> to vector<2x8x1xf32>
    %202 = tpu.reciprocal %201 {approx = true} : vector<2x8x1xf32> -> vector<2x8x1xf32>
    %203 = vector.broadcast %202 : vector<2x8x1xf32> to vector<2x8x8xf32>
    %204 = arith.mulf %199, %203 : vector<2x8x8xf32>
    %205 = arith.truncf %204 : vector<2x8x8xf32> to vector<2x8x8xbf16>
    %206 = vector.extract_strided_slice %54 {offsets = [0, 0, 8], sizes = [2, 8, 8], strides = [1, 1, 1]} : vector<2x8x32xbf16> to vector<2x8x8xbf16>
    "tpu.trace_start"() <{level = 10 : i32, message = "bqk,bkd->bqd"}> : () -> ()
    %cst_44 = arith.constant dense<0.000000e+00> : vector<2x8x8xf32>
    %207 = tpu.matmul %205, %206, %cst_44 {dimension_numbers = #tpu.dot_dimension_numbers<[2], [1], [1], [2], [0, 0, 0, 1, 1, 2], [0], [0]>} : vector<2x8x8xbf16>, vector<2x8x8xbf16>, vector<2x8x8xf32> -> vector<2x8x8xf32>
    "tpu.trace_stop"() : () -> ()
    %208 = arith.truncf %207 : vector<2x8x8xf32> to vector<2x8x8xbf16>
    "tpu.trace_start"() <{level = 10 : i32, message = "bqd,de->bqe"}> : () -> ()
    %cst_45 = arith.constant dense<0.000000e+00> : vector<2x8x32xf32>
    %209 = tpu.matmul %208, %17, %cst_45 {dimension_numbers = #tpu.dot_dimension_numbers<[2], [0], [0, 1], [1], [0, 0, 0, 1, 1, 1], [], []>} : vector<2x8x8xbf16>, vector<8x32xbf16>, vector<2x8x32xf32> -> vector<2x8x32xf32>
    "tpu.trace_stop"() : () -> ()
    %210 = arith.addf %191, %209 : vector<2x8x32xf32>
    %211 = vector.extract_strided_slice %171 {offsets = [0, 0, 16], sizes = [2, 8, 8], strides = [1, 1, 1]} : vector<2x8x32xbf16> to vector<2x8x8xbf16>
    %212 = vector.extract_strided_slice %51 {offsets = [0, 0, 16], sizes = [2, 8, 8], strides = [1, 1, 1]} : vector<2x8x32xbf16> to vector<2x8x8xbf16>
    "tpu.trace_start"() <{level = 10 : i32, message = "bqd,bkd->bqk"}> : () -> ()
    %cst_46 = arith.constant dense<0.000000e+00> : vector<2x8x8xf32>
    %213 = tpu.matmul %211, %212, %cst_46 {dimension_numbers = #tpu.dot_dimension_numbers<[2], [2], [1], [1], [0, 0, 0, 1, 1, 1], [0], [0]>} : vector<2x8x8xbf16>, vector<2x8x8xbf16>, vector<2x8x8xf32> -> vector<2x8x8xf32>
    "tpu.trace_stop"() : () -> ()
    %cst_47 = arith.constant dense<0xFF800000> : vector<2x8xf32>
    %214 = vector.multi_reduction <maximumf>, %213, %cst_47 [2] : vector<2x8x8xf32> to vector<2x8xf32>
    %215 = vector.shape_cast %214 : vector<2x8xf32> to vector<2x8x1xf32>
    %216 = vector.broadcast %215 : vector<2x8x1xf32> to vector<2x8x8xf32>
    %217 = arith.subf %213, %216 : vector<2x8x8xf32>
    %218 = math.exp %217 : vector<2x8x8xf32>
    %cst_48 = arith.constant dense<0.000000e+00> : vector<2x8xf32>
    %219 = vector.multi_reduction <add>, %218, %cst_48 [2] : vector<2x8x8xf32> to vector<2x8xf32>
    %220 = vector.shape_cast %219 : vector<2x8xf32> to vector<2x8x1xf32>
    %221 = tpu.reciprocal %220 {approx = true} : vector<2x8x1xf32> -> vector<2x8x1xf32>
    %222 = vector.broadcast %221 : vector<2x8x1xf32> to vector<2x8x8xf32>
    %223 = arith.mulf %218, %222 : vector<2x8x8xf32>
    %224 = arith.truncf %223 : vector<2x8x8xf32> to vector<2x8x8xbf16>
    %225 = vector.extract_strided_slice %54 {offsets = [0, 0, 16], sizes = [2, 8, 8], strides = [1, 1, 1]} : vector<2x8x32xbf16> to vector<2x8x8xbf16>
    "tpu.trace_start"() <{level = 10 : i32, message = "bqk,bkd->bqd"}> : () -> ()
    %cst_49 = arith.constant dense<0.000000e+00> : vector<2x8x8xf32>
    %226 = tpu.matmul %224, %225, %cst_49 {dimension_numbers = #tpu.dot_dimension_numbers<[2], [1], [1], [2], [0, 0, 0, 1, 1, 2], [0], [0]>} : vector<2x8x8xbf16>, vector<2x8x8xbf16>, vector<2x8x8xf32> -> vector<2x8x8xf32>
    "tpu.trace_stop"() : () -> ()
    %227 = arith.truncf %226 : vector<2x8x8xf32> to vector<2x8x8xbf16>
    "tpu.trace_start"() <{level = 10 : i32, message = "bqd,de->bqe"}> : () -> ()
    %cst_50 = arith.constant dense<0.000000e+00> : vector<2x8x32xf32>
    %228 = tpu.matmul %227, %18, %cst_50 {dimension_numbers = #tpu.dot_dimension_numbers<[2], [0], [0, 1], [1], [0, 0, 0, 1, 1, 1], [], []>} : vector<2x8x8xbf16>, vector<8x32xbf16>, vector<2x8x32xf32> -> vector<2x8x32xf32>
    "tpu.trace_stop"() : () -> ()
    %229 = arith.addf %210, %228 : vector<2x8x32xf32>
    %230 = vector.extract_strided_slice %171 {offsets = [0, 0, 24], sizes = [2, 8, 8], strides = [1, 1, 1]} : vector<2x8x32xbf16> to vector<2x8x8xbf16>
    %231 = vector.extract_strided_slice %51 {offsets = [0, 0, 24], sizes = [2, 8, 8], strides = [1, 1, 1]} : vector<2x8x32xbf16> to vector<2x8x8xbf16>
    "tpu.trace_start"() <{level = 10 : i32, message = "bqd,bkd->bqk"}> : () -> ()
    %cst_51 = arith.constant dense<0.000000e+00> : vector<2x8x8xf32>
    %232 = tpu.matmul %230, %231, %cst_51 {dimension_numbers = #tpu.dot_dimension_numbers<[2], [2], [1], [1], [0, 0, 0, 1, 1, 1], [0], [0]>} : vector<2x8x8xbf16>, vector<2x8x8xbf16>, vector<2x8x8xf32> -> vector<2x8x8xf32>
    "tpu.trace_stop"() : () -> ()
    %cst_52 = arith.constant dense<0xFF800000> : vector<2x8xf32>
    %233 = vector.multi_reduction <maximumf>, %232, %cst_52 [2] : vector<2x8x8xf32> to vector<2x8xf32>
    %234 = vector.shape_cast %233 : vector<2x8xf32> to vector<2x8x1xf32>
    %235 = vector.broadcast %234 : vector<2x8x1xf32> to vector<2x8x8xf32>
    %236 = arith.subf %232, %235 : vector<2x8x8xf32>
    %237 = math.exp %236 : vector<2x8x8xf32>
    %cst_53 = arith.constant dense<0.000000e+00> : vector<2x8xf32>
    %238 = vector.multi_reduction <add>, %237, %cst_53 [2] : vector<2x8x8xf32> to vector<2x8xf32>
    %239 = vector.shape_cast %238 : vector<2x8xf32> to vector<2x8x1xf32>
    %240 = tpu.reciprocal %239 {approx = true} : vector<2x8x1xf32> -> vector<2x8x1xf32>
    %241 = vector.broadcast %240 : vector<2x8x1xf32> to vector<2x8x8xf32>
    %242 = arith.mulf %237, %241 : vector<2x8x8xf32>
    %243 = arith.truncf %242 : vector<2x8x8xf32> to vector<2x8x8xbf16>
    %244 = vector.extract_strided_slice %54 {offsets = [0, 0, 24], sizes = [2, 8, 8], strides = [1, 1, 1]} : vector<2x8x32xbf16> to vector<2x8x8xbf16>
    "tpu.trace_start"() <{level = 10 : i32, message = "bqk,bkd->bqd"}> : () -> ()
    %cst_54 = arith.constant dense<0.000000e+00> : vector<2x8x8xf32>
    %245 = tpu.matmul %243, %244, %cst_54 {dimension_numbers = #tpu.dot_dimension_numbers<[2], [1], [1], [2], [0, 0, 0, 1, 1, 2], [0], [0]>} : vector<2x8x8xbf16>, vector<2x8x8xbf16>, vector<2x8x8xf32> -> vector<2x8x8xf32>
    "tpu.trace_stop"() : () -> ()
    %246 = arith.truncf %245 : vector<2x8x8xf32> to vector<2x8x8xbf16>
    "tpu.trace_start"() <{level = 10 : i32, message = "bqd,de->bqe"}> : () -> ()
    %cst_55 = arith.constant dense<0.000000e+00> : vector<2x8x32xf32>
    %247 = tpu.matmul %246, %19, %cst_55 {dimension_numbers = #tpu.dot_dimension_numbers<[2], [0], [0, 1], [1], [0, 0, 0, 1, 1, 1], [], []>} : vector<2x8x8xbf16>, vector<8x32xbf16>, vector<2x8x32xf32> -> vector<2x8x32xf32>
    "tpu.trace_stop"() : () -> ()
    %248 = arith.addf %229, %247 : vector<2x8x32xf32>
    %249 = vector.shape_cast %248 : vector<2x8x32xf32> to vector<16x32xf32>
    %250 = arith.addf %166, %249 : vector<16x32xf32>
    %251 = arith.addf %250, %33 : vector<16x32xf32>
    %cst_56 = arith.constant dense<0.000000e+00> : vector<16xf32>
    %252 = vector.multi_reduction <add>, %251, %cst_56 [1] : vector<16x32xf32> to vector<16xf32>
    %253 = vector.shape_cast %252 : vector<16xf32> to vector<16x1xf32>
    %cst_57 = arith.constant 3.200000e+01 : f32
    %254 = vector.broadcast %cst_57 : f32 to vector<16x1xf32>
    %255 = arith.divf %253, %254 : vector<16x1xf32>
    %256 = vector.broadcast %255 : vector<16x1xf32> to vector<16x32xf32>
    %257 = arith.subf %251, %256 : vector<16x32xf32>
    %258 = arith.mulf %257, %257 : vector<16x32xf32>
    %cst_58 = arith.constant dense<0.000000e+00> : vector<16xf32>
    %259 = vector.multi_reduction <add>, %258, %cst_58 [1] : vector<16x32xf32> to vector<16xf32>
    %260 = vector.shape_cast %259 : vector<16xf32> to vector<16x1xf32>
    %cst_59 = arith.constant 3.200000e+01 : f32
    %261 = vector.broadcast %cst_59 : f32 to vector<16x1xf32>
    %262 = arith.divf %260, %261 : vector<16x1xf32>
    %cst_60 = arith.constant 9.99999974E-6 : f32
    %263 = vector.broadcast %cst_60 : f32 to vector<16x1xf32>
    %264 = arith.addf %262, %263 : vector<16x1xf32>
    %265 = math.rsqrt %264 : vector<16x1xf32>
    %266 = vector.broadcast %265 : vector<16x1xf32> to vector<16x32xf32>
    %267 = arith.mulf %257, %266 : vector<16x32xf32>
    %268 = vector.broadcast %42 : vector<1x32xf32> to vector<16x32xf32>
    %269 = arith.mulf %267, %268 : vector<16x32xf32>
    %270 = vector.broadcast %43 : vector<1x32xf32> to vector<16x32xf32>
    %271 = arith.addf %269, %270 : vector<16x32xf32>
    %272 = arith.truncf %271 : vector<16x32xf32> to vector<16x32xbf16>
    %cst_61 = arith.constant dense<0.000000e+00> : vector<16x64xf32>
    %273 = tpu.matmul %272, %10, %cst_61 {dimension_numbers = #tpu.dot_dimension_numbers<[1], [0], [0], [1], [0, 0, 1, 1], [], []>} : vector<16x32xbf16>, vector<32x64xbf16>, vector<16x64xf32> -> vector<16x64xf32>
    %274 = arith.addf %273, %36 : vector<16x64xf32>
    %cst_62 = arith.constant 0.000000e+00 : f32
    %275 = vector.broadcast %cst_62 : f32 to vector<16x64xf32>
    %276 = arith.maximumf %274, %275 : vector<16x64xf32>
    %277 = arith.truncf %276 : vector<16x64xf32> to vector<16x64xbf16>
    %cst_63 = arith.constant dense<0.000000e+00> : vector<16x32xf32>
    %278 = tpu.matmul %277, %11, %cst_63 {dimension_numbers = #tpu.dot_dimension_numbers<[1], [0], [0], [1], [0, 0, 1, 1], [], []>} : vector<16x64xbf16>, vector<64x32xbf16>, vector<16x32xf32> -> vector<16x32xf32>
    %279 = arith.addf %278, %39 : vector<16x32xf32>
    %280 = arith.addf %271, %279 : vector<16x32xf32>
    %cst_64 = arith.constant dense<0.000000e+00> : vector<16xf32>
    %281 = vector.multi_reduction <add>, %280, %cst_64 [1] : vector<16x32xf32> to vector<16xf32>
    %282 = vector.shape_cast %281 : vector<16xf32> to vector<16x1xf32>
    %cst_65 = arith.constant 3.200000e+01 : f32
    %283 = vector.broadcast %cst_65 : f32 to vector<16x1xf32>
    %284 = arith.divf %282, %283 : vector<16x1xf32>
    %285 = vector.broadcast %284 : vector<16x1xf32> to vector<16x32xf32>
    %286 = arith.subf %280, %285 : vector<16x32xf32>
    %287 = arith.mulf %286, %286 : vector<16x32xf32>
    %cst_66 = arith.constant dense<0.000000e+00> : vector<16xf32>
    %288 = vector.multi_reduction <add>, %287, %cst_66 [1] : vector<16x32xf32> to vector<16xf32>
    %289 = vector.shape_cast %288 : vector<16xf32> to vector<16x1xf32>
    %cst_67 = arith.constant 3.200000e+01 : f32
    %290 = vector.broadcast %cst_67 : f32 to vector<16x1xf32>
    %291 = arith.divf %289, %290 : vector<16x1xf32>
    %cst_68 = arith.constant 9.99999974E-6 : f32
    %292 = vector.broadcast %cst_68 : f32 to vector<16x1xf32>
    %293 = arith.addf %291, %292 : vector<16x1xf32>
    %294 = math.rsqrt %293 : vector<16x1xf32>
    %295 = vector.broadcast %294 : vector<16x1xf32> to vector<16x32xf32>
    %296 = arith.mulf %286, %295 : vector<16x32xf32>
    %297 = vector.broadcast %44 : vector<1x32xf32> to vector<16x32xf32>
    %298 = arith.mulf %296, %297 : vector<16x32xf32>
    %299 = vector.broadcast %45 : vector<1x32xf32> to vector<16x32xf32>
    %300 = arith.addf %298, %299 : vector<16x32xf32>
    %301 = arith.truncf %300 : vector<16x32xf32> to vector<16x32xbf16>
    %cst_69 = arith.constant dense<0.000000e+00> : vector<16x96xf32>
    %302 = tpu.matmul %301, %4, %cst_69 {dimension_numbers = #tpu.dot_dimension_numbers<[1], [0], [0], [1], [0, 0, 1, 1], [], []>} : vector<16x32xbf16>, vector<32x96xbf16>, vector<16x96xf32> -> vector<16x96xf32>
    %303 = arith.addf %302, %23 : vector<16x96xf32>
    %304 = vector.extract_strided_slice %303 {offsets = [0, 0], sizes = [16, 32], strides = [1, 1]} : vector<16x96xf32> to vector<16x32xf32>
    %305 = vector.shape_cast %304 : vector<16x32xf32> to vector<2x8x32xf32>
    %306 = arith.truncf %305 : vector<2x8x32xf32> to vector<2x8x32xbf16>
    %307 = vector.extract_strided_slice %303 {offsets = [0, 32], sizes = [16, 32], strides = [1, 1]} : vector<16x96xf32> to vector<16x32xf32>
    %308 = vector.shape_cast %307 : vector<16x32xf32> to vector<2x8x32xf32>
    %309 = arith.truncf %308 : vector<2x8x32xf32> to vector<2x8x32xbf16>
    %310 = vector.extract_strided_slice %303 {offsets = [0, 64], sizes = [16, 32], strides = [1, 1]} : vector<16x96xf32> to vector<16x32xf32>
    %311 = vector.shape_cast %310 : vector<16x32xf32> to vector<2x8x32xf32>
    %312 = arith.truncf %311 : vector<2x8x32xf32> to vector<2x8x32xbf16>
    %cst_70 = arith.constant 0.000000e+00 : f32
    %313 = vector.broadcast %cst_70 : f32 to vector<2x8x32xf32>
    %314 = vector.extract_strided_slice %306 {offsets = [0, 0, 0], sizes = [2, 8, 8], strides = [1, 1, 1]} : vector<2x8x32xbf16> to vector<2x8x8xbf16>
    %315 = vector.extract_strided_slice %309 {offsets = [0, 0, 0], sizes = [2, 8, 8], strides = [1, 1, 1]} : vector<2x8x32xbf16> to vector<2x8x8xbf16>
    "tpu.trace_start"() <{level = 10 : i32, message = "bqd,bkd->bqk"}> : () -> ()
    %cst_71 = arith.constant dense<0.000000e+00> : vector<2x8x8xf32>
    %316 = tpu.matmul %314, %315, %cst_71 {dimension_numbers = #tpu.dot_dimension_numbers<[2], [2], [1], [1], [0, 0, 0, 1, 1, 1], [0], [0]>} : vector<2x8x8xbf16>, vector<2x8x8xbf16>, vector<2x8x8xf32> -> vector<2x8x8xf32>
    "tpu.trace_stop"() : () -> ()
    %cst_72 = arith.constant dense<0xFF800000> : vector<2x8xf32>
    %317 = vector.multi_reduction <maximumf>, %316, %cst_72 [2] : vector<2x8x8xf32> to vector<2x8xf32>
    %318 = vector.shape_cast %317 : vector<2x8xf32> to vector<2x8x1xf32>
    %319 = vector.broadcast %318 : vector<2x8x1xf32> to vector<2x8x8xf32>
    %320 = arith.subf %316, %319 : vector<2x8x8xf32>
    %321 = math.exp %320 : vector<2x8x8xf32>
    %cst_73 = arith.constant dense<0.000000e+00> : vector<2x8xf32>
    %322 = vector.multi_reduction <add>, %321, %cst_73 [2] : vector<2x8x8xf32> to vector<2x8xf32>
    %323 = vector.shape_cast %322 : vector<2x8xf32> to vector<2x8x1xf32>
    %324 = tpu.reciprocal %323 {approx = true} : vector<2x8x1xf32> -> vector<2x8x1xf32>
    %325 = vector.broadcast %324 : vector<2x8x1xf32> to vector<2x8x8xf32>
    %326 = arith.mulf %321, %325 : vector<2x8x8xf32>
    %327 = arith.truncf %326 : vector<2x8x8xf32> to vector<2x8x8xbf16>
    %328 = vector.extract_strided_slice %312 {offsets = [0, 0, 0], sizes = [2, 8, 8], strides = [1, 1, 1]} : vector<2x8x32xbf16> to vector<2x8x8xbf16>
    "tpu.trace_start"() <{level = 10 : i32, message = "bqk,bkd->bqd"}> : () -> ()
    %cst_74 = arith.constant dense<0.000000e+00> : vector<2x8x8xf32>
    %329 = tpu.matmul %327, %328, %cst_74 {dimension_numbers = #tpu.dot_dimension_numbers<[2], [1], [1], [2], [0, 0, 0, 1, 1, 2], [0], [0]>} : vector<2x8x8xbf16>, vector<2x8x8xbf16>, vector<2x8x8xf32> -> vector<2x8x8xf32>
    "tpu.trace_stop"() : () -> ()
    %330 = arith.truncf %329 : vector<2x8x8xf32> to vector<2x8x8xbf16>
    "tpu.trace_start"() <{level = 10 : i32, message = "bqd,de->bqe"}> : () -> ()
    %cst_75 = arith.constant dense<0.000000e+00> : vector<2x8x32xf32>
    %331 = tpu.matmul %330, %12, %cst_75 {dimension_numbers = #tpu.dot_dimension_numbers<[2], [0], [0, 1], [1], [0, 0, 0, 1, 1, 1], [], []>} : vector<2x8x8xbf16>, vector<8x32xbf16>, vector<2x8x32xf32> -> vector<2x8x32xf32>
    "tpu.trace_stop"() : () -> ()
    %332 = arith.addf %313, %331 : vector<2x8x32xf32>
    %333 = vector.extract_strided_slice %306 {offsets = [0, 0, 8], sizes = [2, 8, 8], strides = [1, 1, 1]} : vector<2x8x32xbf16> to vector<2x8x8xbf16>
    %334 = vector.extract_strided_slice %309 {offsets = [0, 0, 8], sizes = [2, 8, 8], strides = [1, 1, 1]} : vector<2x8x32xbf16> to vector<2x8x8xbf16>
    "tpu.trace_start"() <{level = 10 : i32, message = "bqd,bkd->bqk"}> : () -> ()
    %cst_76 = arith.constant dense<0.000000e+00> : vector<2x8x8xf32>
    %335 = tpu.matmul %333, %334, %cst_76 {dimension_numbers = #tpu.dot_dimension_numbers<[2], [2], [1], [1], [0, 0, 0, 1, 1, 1], [0], [0]>} : vector<2x8x8xbf16>, vector<2x8x8xbf16>, vector<2x8x8xf32> -> vector<2x8x8xf32>
    "tpu.trace_stop"() : () -> ()
    %cst_77 = arith.constant dense<0xFF800000> : vector<2x8xf32>
    %336 = vector.multi_reduction <maximumf>, %335, %cst_77 [2] : vector<2x8x8xf32> to vector<2x8xf32>
    %337 = vector.shape_cast %336 : vector<2x8xf32> to vector<2x8x1xf32>
    %338 = vector.broadcast %337 : vector<2x8x1xf32> to vector<2x8x8xf32>
    %339 = arith.subf %335, %338 : vector<2x8x8xf32>
    %340 = math.exp %339 : vector<2x8x8xf32>
    %cst_78 = arith.constant dense<0.000000e+00> : vector<2x8xf32>
    %341 = vector.multi_reduction <add>, %340, %cst_78 [2] : vector<2x8x8xf32> to vector<2x8xf32>
    %342 = vector.shape_cast %341 : vector<2x8xf32> to vector<2x8x1xf32>
    %343 = tpu.reciprocal %342 {approx = true} : vector<2x8x1xf32> -> vector<2x8x1xf32>
    %344 = vector.broadcast %343 : vector<2x8x1xf32> to vector<2x8x8xf32>
    %345 = arith.mulf %340, %344 : vector<2x8x8xf32>
    %346 = arith.truncf %345 : vector<2x8x8xf32> to vector<2x8x8xbf16>
    %347 = vector.extract_strided_slice %312 {offsets = [0, 0, 8], sizes = [2, 8, 8], strides = [1, 1, 1]} : vector<2x8x32xbf16> to vector<2x8x8xbf16>
    "tpu.trace_start"() <{level = 10 : i32, message = "bqk,bkd->bqd"}> : () -> ()
    %cst_79 = arith.constant dense<0.000000e+00> : vector<2x8x8xf32>
    %348 = tpu.matmul %346, %347, %cst_79 {dimension_numbers = #tpu.dot_dimension_numbers<[2], [1], [1], [2], [0, 0, 0, 1, 1, 2], [0], [0]>} : vector<2x8x8xbf16>, vector<2x8x8xbf16>, vector<2x8x8xf32> -> vector<2x8x8xf32>
    "tpu.trace_stop"() : () -> ()
    %349 = arith.truncf %348 : vector<2x8x8xf32> to vector<2x8x8xbf16>
    "tpu.trace_start"() <{level = 10 : i32, message = "bqd,de->bqe"}> : () -> ()
    %cst_80 = arith.constant dense<0.000000e+00> : vector<2x8x32xf32>
    %350 = tpu.matmul %349, %13, %cst_80 {dimension_numbers = #tpu.dot_dimension_numbers<[2], [0], [0, 1], [1], [0, 0, 0, 1, 1, 1], [], []>} : vector<2x8x8xbf16>, vector<8x32xbf16>, vector<2x8x32xf32> -> vector<2x8x32xf32>
    "tpu.trace_stop"() : () -> ()
    %351 = arith.addf %332, %350 : vector<2x8x32xf32>
    %352 = vector.extract_strided_slice %306 {offsets = [0, 0, 16], sizes = [2, 8, 8], strides = [1, 1, 1]} : vector<2x8x32xbf16> to vector<2x8x8xbf16>
    %353 = vector.extract_strided_slice %309 {offsets = [0, 0, 16], sizes = [2, 8, 8], strides = [1, 1, 1]} : vector<2x8x32xbf16> to vector<2x8x8xbf16>
    "tpu.trace_start"() <{level = 10 : i32, message = "bqd,bkd->bqk"}> : () -> ()
    %cst_81 = arith.constant dense<0.000000e+00> : vector<2x8x8xf32>
    %354 = tpu.matmul %352, %353, %cst_81 {dimension_numbers = #tpu.dot_dimension_numbers<[2], [2], [1], [1], [0, 0, 0, 1, 1, 1], [0], [0]>} : vector<2x8x8xbf16>, vector<2x8x8xbf16>, vector<2x8x8xf32> -> vector<2x8x8xf32>
    "tpu.trace_stop"() : () -> ()
    %cst_82 = arith.constant dense<0xFF800000> : vector<2x8xf32>
    %355 = vector.multi_reduction <maximumf>, %354, %cst_82 [2] : vector<2x8x8xf32> to vector<2x8xf32>
    %356 = vector.shape_cast %355 : vector<2x8xf32> to vector<2x8x1xf32>
    %357 = vector.broadcast %356 : vector<2x8x1xf32> to vector<2x8x8xf32>
    %358 = arith.subf %354, %357 : vector<2x8x8xf32>
    %359 = math.exp %358 : vector<2x8x8xf32>
    %cst_83 = arith.constant dense<0.000000e+00> : vector<2x8xf32>
    %360 = vector.multi_reduction <add>, %359, %cst_83 [2] : vector<2x8x8xf32> to vector<2x8xf32>
    %361 = vector.shape_cast %360 : vector<2x8xf32> to vector<2x8x1xf32>
    %362 = tpu.reciprocal %361 {approx = true} : vector<2x8x1xf32> -> vector<2x8x1xf32>
    %363 = vector.broadcast %362 : vector<2x8x1xf32> to vector<2x8x8xf32>
    %364 = arith.mulf %359, %363 : vector<2x8x8xf32>
    %365 = arith.truncf %364 : vector<2x8x8xf32> to vector<2x8x8xbf16>
    %366 = vector.extract_strided_slice %312 {offsets = [0, 0, 16], sizes = [2, 8, 8], strides = [1, 1, 1]} : vector<2x8x32xbf16> to vector<2x8x8xbf16>
    "tpu.trace_start"() <{level = 10 : i32, message = "bqk,bkd->bqd"}> : () -> ()
    %cst_84 = arith.constant dense<0.000000e+00> : vector<2x8x8xf32>
    %367 = tpu.matmul %365, %366, %cst_84 {dimension_numbers = #tpu.dot_dimension_numbers<[2], [1], [1], [2], [0, 0, 0, 1, 1, 2], [0], [0]>} : vector<2x8x8xbf16>, vector<2x8x8xbf16>, vector<2x8x8xf32> -> vector<2x8x8xf32>
    "tpu.trace_stop"() : () -> ()
    %368 = arith.truncf %367 : vector<2x8x8xf32> to vector<2x8x8xbf16>
    "tpu.trace_start"() <{level = 10 : i32, message = "bqd,de->bqe"}> : () -> ()
    %cst_85 = arith.constant dense<0.000000e+00> : vector<2x8x32xf32>
    %369 = tpu.matmul %368, %14, %cst_85 {dimension_numbers = #tpu.dot_dimension_numbers<[2], [0], [0, 1], [1], [0, 0, 0, 1, 1, 1], [], []>} : vector<2x8x8xbf16>, vector<8x32xbf16>, vector<2x8x32xf32> -> vector<2x8x32xf32>
    "tpu.trace_stop"() : () -> ()
    %370 = arith.addf %351, %369 : vector<2x8x32xf32>
    %371 = vector.extract_strided_slice %306 {offsets = [0, 0, 24], sizes = [2, 8, 8], strides = [1, 1, 1]} : vector<2x8x32xbf16> to vector<2x8x8xbf16>
    %372 = vector.extract_strided_slice %309 {offsets = [0, 0, 24], sizes = [2, 8, 8], strides = [1, 1, 1]} : vector<2x8x32xbf16> to vector<2x8x8xbf16>
    "tpu.trace_start"() <{level = 10 : i32, message = "bqd,bkd->bqk"}> : () -> ()
    %cst_86 = arith.constant dense<0.000000e+00> : vector<2x8x8xf32>
    %373 = tpu.matmul %371, %372, %cst_86 {dimension_numbers = #tpu.dot_dimension_numbers<[2], [2], [1], [1], [0, 0, 0, 1, 1, 1], [0], [0]>} : vector<2x8x8xbf16>, vector<2x8x8xbf16>, vector<2x8x8xf32> -> vector<2x8x8xf32>
    "tpu.trace_stop"() : () -> ()
    %cst_87 = arith.constant dense<0xFF800000> : vector<2x8xf32>
    %374 = vector.multi_reduction <maximumf>, %373, %cst_87 [2] : vector<2x8x8xf32> to vector<2x8xf32>
    %375 = vector.shape_cast %374 : vector<2x8xf32> to vector<2x8x1xf32>
    %376 = vector.broadcast %375 : vector<2x8x1xf32> to vector<2x8x8xf32>
    %377 = arith.subf %373, %376 : vector<2x8x8xf32>
    %378 = math.exp %377 : vector<2x8x8xf32>
    %cst_88 = arith.constant dense<0.000000e+00> : vector<2x8xf32>
    %379 = vector.multi_reduction <add>, %378, %cst_88 [2] : vector<2x8x8xf32> to vector<2x8xf32>
    %380 = vector.shape_cast %379 : vector<2x8xf32> to vector<2x8x1xf32>
    %381 = tpu.reciprocal %380 {approx = true} : vector<2x8x1xf32> -> vector<2x8x1xf32>
    %382 = vector.broadcast %381 : vector<2x8x1xf32> to vector<2x8x8xf32>
    %383 = arith.mulf %378, %382 : vector<2x8x8xf32>
    %384 = arith.truncf %383 : vector<2x8x8xf32> to vector<2x8x8xbf16>
    %385 = vector.extract_strided_slice %312 {offsets = [0, 0, 24], sizes = [2, 8, 8], strides = [1, 1, 1]} : vector<2x8x32xbf16> to vector<2x8x8xbf16>
    "tpu.trace_start"() <{level = 10 : i32, message = "bqk,bkd->bqd"}> : () -> ()
    %cst_89 = arith.constant dense<0.000000e+00> : vector<2x8x8xf32>
    %386 = tpu.matmul %384, %385, %cst_89 {dimension_numbers = #tpu.dot_dimension_numbers<[2], [1], [1], [2], [0, 0, 0, 1, 1, 2], [0], [0]>} : vector<2x8x8xbf16>, vector<2x8x8xbf16>, vector<2x8x8xf32> -> vector<2x8x8xf32>
    "tpu.trace_stop"() : () -> ()
    %387 = arith.truncf %386 : vector<2x8x8xf32> to vector<2x8x8xbf16>
    "tpu.trace_start"() <{level = 10 : i32, message = "bqd,de->bqe"}> : () -> ()
    %cst_90 = arith.constant dense<0.000000e+00> : vector<2x8x32xf32>
    %388 = tpu.matmul %387, %15, %cst_90 {dimension_numbers = #tpu.dot_dimension_numbers<[2], [0], [0, 1], [1], [0, 0, 0, 1, 1, 1], [], []>} : vector<2x8x8xbf16>, vector<8x32xbf16>, vector<2x8x32xf32> -> vector<2x8x32xf32>
    "tpu.trace_stop"() : () -> ()
    %389 = arith.addf %370, %388 : vector<2x8x32xf32>
    %390 = vector.shape_cast %389 : vector<2x8x32xf32> to vector<16x32xf32>
    %391 = arith.addf %300, %390 : vector<16x32xf32>
    %392 = arith.addf %391, %26 : vector<16x32xf32>
    %cst_91 = arith.constant dense<0.000000e+00> : vector<16xf32>
    %393 = vector.multi_reduction <add>, %392, %cst_91 [1] : vector<16x32xf32> to vector<16xf32>
    %394 = vector.shape_cast %393 : vector<16xf32> to vector<16x1xf32>
    %cst_92 = arith.constant 3.200000e+01 : f32
    %395 = vector.broadcast %cst_92 : f32 to vector<16x1xf32>
    %396 = arith.divf %394, %395 : vector<16x1xf32>
    %397 = vector.broadcast %396 : vector<16x1xf32> to vector<16x32xf32>
    %398 = arith.subf %392, %397 : vector<16x32xf32>
    %399 = arith.mulf %398, %398 : vector<16x32xf32>
    %cst_93 = arith.constant dense<0.000000e+00> : vector<16xf32>
    %400 = vector.multi_reduction <add>, %399, %cst_93 [1] : vector<16x32xf32> to vector<16xf32>
    %401 = vector.shape_cast %400 : vector<16xf32> to vector<16x1xf32>
    %cst_94 = arith.constant 3.200000e+01 : f32
    %402 = vector.broadcast %cst_94 : f32 to vector<16x1xf32>
    %403 = arith.divf %401, %402 : vector<16x1xf32>
    %cst_95 = arith.constant 9.99999974E-6 : f32
    %404 = vector.broadcast %cst_95 : f32 to vector<16x1xf32>
    %405 = arith.addf %403, %404 : vector<16x1xf32>
    %406 = math.rsqrt %405 : vector<16x1xf32>
    %407 = vector.broadcast %406 : vector<16x1xf32> to vector<16x32xf32>
    %408 = arith.mulf %398, %407 : vector<16x32xf32>
    %409 = vector.broadcast %40 : vector<1x32xf32> to vector<16x32xf32>
    %410 = arith.mulf %408, %409 : vector<16x32xf32>
    %411 = vector.broadcast %41 : vector<1x32xf32> to vector<16x32xf32>
    %412 = arith.addf %410, %411 : vector<16x32xf32>
    %413 = arith.truncf %412 : vector<16x32xf32> to vector<16x32xbf16>
    %cst_96 = arith.constant dense<0.000000e+00> : vector<16x32xf32>
    %414 = tpu.matmul %413, %7, %cst_96 {dimension_numbers = #tpu.dot_dimension_numbers<[1], [0], [0], [1], [0, 0, 1, 1], [], []>} : vector<16x32xbf16>, vector<32x32xbf16>, vector<16x32xf32> -> vector<16x32xf32>
    %415 = arith.addf %414, %29 : vector<16x32xf32>
    %416 = vector.shape_cast %415 : vector<16x32xf32> to vector<2x8x32xf32>
    %417 = arith.truncf %416 : vector<2x8x32xf32> to vector<2x8x32xbf16>
    %cst_97 = arith.constant 0.000000e+00 : f32
    %418 = vector.broadcast %cst_97 : f32 to vector<2x8x32xf32>
    %419 = vector.extract_strided_slice %417 {offsets = [0, 0, 0], sizes = [2, 8, 8], strides = [1, 1, 1]} : vector<2x8x32xbf16> to vector<2x8x8xbf16>
    %420 = vector.extract_strided_slice %51 {offsets = [0, 0, 0], sizes = [2, 8, 8], strides = [1, 1, 1]} : vector<2x8x32xbf16> to vector<2x8x8xbf16>
    "tpu.trace_start"() <{level = 10 : i32, message = "bqd,bkd->bqk"}> : () -> ()
    %cst_98 = arith.constant dense<0.000000e+00> : vector<2x8x8xf32>
    %421 = tpu.matmul %419, %420, %cst_98 {dimension_numbers = #tpu.dot_dimension_numbers<[2], [2], [1], [1], [0, 0, 0, 1, 1, 1], [0], [0]>} : vector<2x8x8xbf16>, vector<2x8x8xbf16>, vector<2x8x8xf32> -> vector<2x8x8xf32>
    "tpu.trace_stop"() : () -> ()
    %cst_99 = arith.constant dense<0xFF800000> : vector<2x8xf32>
    %422 = vector.multi_reduction <maximumf>, %421, %cst_99 [2] : vector<2x8x8xf32> to vector<2x8xf32>
    %423 = vector.shape_cast %422 : vector<2x8xf32> to vector<2x8x1xf32>
    %424 = vector.broadcast %423 : vector<2x8x1xf32> to vector<2x8x8xf32>
    %425 = arith.subf %421, %424 : vector<2x8x8xf32>
    %426 = math.exp %425 : vector<2x8x8xf32>
    %cst_100 = arith.constant dense<0.000000e+00> : vector<2x8xf32>
    %427 = vector.multi_reduction <add>, %426, %cst_100 [2] : vector<2x8x8xf32> to vector<2x8xf32>
    %428 = vector.shape_cast %427 : vector<2x8xf32> to vector<2x8x1xf32>
    %429 = tpu.reciprocal %428 {approx = true} : vector<2x8x1xf32> -> vector<2x8x1xf32>
    %430 = vector.broadcast %429 : vector<2x8x1xf32> to vector<2x8x8xf32>
    %431 = arith.mulf %426, %430 : vector<2x8x8xf32>
    %432 = arith.truncf %431 : vector<2x8x8xf32> to vector<2x8x8xbf16>
    %433 = vector.extract_strided_slice %54 {offsets = [0, 0, 0], sizes = [2, 8, 8], strides = [1, 1, 1]} : vector<2x8x32xbf16> to vector<2x8x8xbf16>
    "tpu.trace_start"() <{level = 10 : i32, message = "bqk,bkd->bqd"}> : () -> ()
    %cst_101 = arith.constant dense<0.000000e+00> : vector<2x8x8xf32>
    %434 = tpu.matmul %432, %433, %cst_101 {dimension_numbers = #tpu.dot_dimension_numbers<[2], [1], [1], [2], [0, 0, 0, 1, 1, 2], [0], [0]>} : vector<2x8x8xbf16>, vector<2x8x8xbf16>, vector<2x8x8xf32> -> vector<2x8x8xf32>
    "tpu.trace_stop"() : () -> ()
    %435 = arith.truncf %434 : vector<2x8x8xf32> to vector<2x8x8xbf16>
    "tpu.trace_start"() <{level = 10 : i32, message = "bqd,de->bqe"}> : () -> ()
    %cst_102 = arith.constant dense<0.000000e+00> : vector<2x8x32xf32>
    %436 = tpu.matmul %435, %16, %cst_102 {dimension_numbers = #tpu.dot_dimension_numbers<[2], [0], [0, 1], [1], [0, 0, 0, 1, 1, 1], [], []>} : vector<2x8x8xbf16>, vector<8x32xbf16>, vector<2x8x32xf32> -> vector<2x8x32xf32>
    "tpu.trace_stop"() : () -> ()
    %437 = arith.addf %418, %436 : vector<2x8x32xf32>
    %438 = vector.extract_strided_slice %417 {offsets = [0, 0, 8], sizes = [2, 8, 8], strides = [1, 1, 1]} : vector<2x8x32xbf16> to vector<2x8x8xbf16>
    %439 = vector.extract_strided_slice %51 {offsets = [0, 0, 8], sizes = [2, 8, 8], strides = [1, 1, 1]} : vector<2x8x32xbf16> to vector<2x8x8xbf16>
    "tpu.trace_start"() <{level = 10 : i32, message = "bqd,bkd->bqk"}> : () -> ()
    %cst_103 = arith.constant dense<0.000000e+00> : vector<2x8x8xf32>
    %440 = tpu.matmul %438, %439, %cst_103 {dimension_numbers = #tpu.dot_dimension_numbers<[2], [2], [1], [1], [0, 0, 0, 1, 1, 1], [0], [0]>} : vector<2x8x8xbf16>, vector<2x8x8xbf16>, vector<2x8x8xf32> -> vector<2x8x8xf32>
    "tpu.trace_stop"() : () -> ()
    %cst_104 = arith.constant dense<0xFF800000> : vector<2x8xf32>
    %441 = vector.multi_reduction <maximumf>, %440, %cst_104 [2] : vector<2x8x8xf32> to vector<2x8xf32>
    %442 = vector.shape_cast %441 : vector<2x8xf32> to vector<2x8x1xf32>
    %443 = vector.broadcast %442 : vector<2x8x1xf32> to vector<2x8x8xf32>
    %444 = arith.subf %440, %443 : vector<2x8x8xf32>
    %445 = math.exp %444 : vector<2x8x8xf32>
    %cst_105 = arith.constant dense<0.000000e+00> : vector<2x8xf32>
    %446 = vector.multi_reduction <add>, %445, %cst_105 [2] : vector<2x8x8xf32> to vector<2x8xf32>
    %447 = vector.shape_cast %446 : vector<2x8xf32> to vector<2x8x1xf32>
    %448 = tpu.reciprocal %447 {approx = true} : vector<2x8x1xf32> -> vector<2x8x1xf32>
    %449 = vector.broadcast %448 : vector<2x8x1xf32> to vector<2x8x8xf32>
    %450 = arith.mulf %445, %449 : vector<2x8x8xf32>
    %451 = arith.truncf %450 : vector<2x8x8xf32> to vector<2x8x8xbf16>
    %452 = vector.extract_strided_slice %54 {offsets = [0, 0, 8], sizes = [2, 8, 8], strides = [1, 1, 1]} : vector<2x8x32xbf16> to vector<2x8x8xbf16>
    "tpu.trace_start"() <{level = 10 : i32, message = "bqk,bkd->bqd"}> : () -> ()
    %cst_106 = arith.constant dense<0.000000e+00> : vector<2x8x8xf32>
    %453 = tpu.matmul %451, %452, %cst_106 {dimension_numbers = #tpu.dot_dimension_numbers<[2], [1], [1], [2], [0, 0, 0, 1, 1, 2], [0], [0]>} : vector<2x8x8xbf16>, vector<2x8x8xbf16>, vector<2x8x8xf32> -> vector<2x8x8xf32>
    "tpu.trace_stop"() : () -> ()
    %454 = arith.truncf %453 : vector<2x8x8xf32> to vector<2x8x8xbf16>
    "tpu.trace_start"() <{level = 10 : i32, message = "bqd,de->bqe"}> : () -> ()
    %cst_107 = arith.constant dense<0.000000e+00> : vector<2x8x32xf32>
    %455 = tpu.matmul %454, %17, %cst_107 {dimension_numbers = #tpu.dot_dimension_numbers<[2], [0], [0, 1], [1], [0, 0, 0, 1, 1, 1], [], []>} : vector<2x8x8xbf16>, vector<8x32xbf16>, vector<2x8x32xf32> -> vector<2x8x32xf32>
    "tpu.trace_stop"() : () -> ()
    %456 = arith.addf %437, %455 : vector<2x8x32xf32>
    %457 = vector.extract_strided_slice %417 {offsets = [0, 0, 16], sizes = [2, 8, 8], strides = [1, 1, 1]} : vector<2x8x32xbf16> to vector<2x8x8xbf16>
    %458 = vector.extract_strided_slice %51 {offsets = [0, 0, 16], sizes = [2, 8, 8], strides = [1, 1, 1]} : vector<2x8x32xbf16> to vector<2x8x8xbf16>
    "tpu.trace_start"() <{level = 10 : i32, message = "bqd,bkd->bqk"}> : () -> ()
    %cst_108 = arith.constant dense<0.000000e+00> : vector<2x8x8xf32>
    %459 = tpu.matmul %457, %458, %cst_108 {dimension_numbers = #tpu.dot_dimension_numbers<[2], [2], [1], [1], [0, 0, 0, 1, 1, 1], [0], [0]>} : vector<2x8x8xbf16>, vector<2x8x8xbf16>, vector<2x8x8xf32> -> vector<2x8x8xf32>
    "tpu.trace_stop"() : () -> ()
    %cst_109 = arith.constant dense<0xFF800000> : vector<2x8xf32>
    %460 = vector.multi_reduction <maximumf>, %459, %cst_109 [2] : vector<2x8x8xf32> to vector<2x8xf32>
    %461 = vector.shape_cast %460 : vector<2x8xf32> to vector<2x8x1xf32>
    %462 = vector.broadcast %461 : vector<2x8x1xf32> to vector<2x8x8xf32>
    %463 = arith.subf %459, %462 : vector<2x8x8xf32>
    %464 = math.exp %463 : vector<2x8x8xf32>
    %cst_110 = arith.constant dense<0.000000e+00> : vector<2x8xf32>
    %465 = vector.multi_reduction <add>, %464, %cst_110 [2] : vector<2x8x8xf32> to vector<2x8xf32>
    %466 = vector.shape_cast %465 : vector<2x8xf32> to vector<2x8x1xf32>
    %467 = tpu.reciprocal %466 {approx = true} : vector<2x8x1xf32> -> vector<2x8x1xf32>
    %468 = vector.broadcast %467 : vector<2x8x1xf32> to vector<2x8x8xf32>
    %469 = arith.mulf %464, %468 : vector<2x8x8xf32>
    %470 = arith.truncf %469 : vector<2x8x8xf32> to vector<2x8x8xbf16>
    %471 = vector.extract_strided_slice %54 {offsets = [0, 0, 16], sizes = [2, 8, 8], strides = [1, 1, 1]} : vector<2x8x32xbf16> to vector<2x8x8xbf16>
    "tpu.trace_start"() <{level = 10 : i32, message = "bqk,bkd->bqd"}> : () -> ()
    %cst_111 = arith.constant dense<0.000000e+00> : vector<2x8x8xf32>
    %472 = tpu.matmul %470, %471, %cst_111 {dimension_numbers = #tpu.dot_dimension_numbers<[2], [1], [1], [2], [0, 0, 0, 1, 1, 2], [0], [0]>} : vector<2x8x8xbf16>, vector<2x8x8xbf16>, vector<2x8x8xf32> -> vector<2x8x8xf32>
    "tpu.trace_stop"() : () -> ()
    %473 = arith.truncf %472 : vector<2x8x8xf32> to vector<2x8x8xbf16>
    "tpu.trace_start"() <{level = 10 : i32, message = "bqd,de->bqe"}> : () -> ()
    %cst_112 = arith.constant dense<0.000000e+00> : vector<2x8x32xf32>
    %474 = tpu.matmul %473, %18, %cst_112 {dimension_numbers = #tpu.dot_dimension_numbers<[2], [0], [0, 1], [1], [0, 0, 0, 1, 1, 1], [], []>} : vector<2x8x8xbf16>, vector<8x32xbf16>, vector<2x8x32xf32> -> vector<2x8x32xf32>
    "tpu.trace_stop"() : () -> ()
    %475 = arith.addf %456, %474 : vector<2x8x32xf32>
    %476 = vector.extract_strided_slice %417 {offsets = [0, 0, 24], sizes = [2, 8, 8], strides = [1, 1, 1]} : vector<2x8x32xbf16> to vector<2x8x8xbf16>
    %477 = vector.extract_strided_slice %51 {offsets = [0, 0, 24], sizes = [2, 8, 8], strides = [1, 1, 1]} : vector<2x8x32xbf16> to vector<2x8x8xbf16>
    "tpu.trace_start"() <{level = 10 : i32, message = "bqd,bkd->bqk"}> : () -> ()
    %cst_113 = arith.constant dense<0.000000e+00> : vector<2x8x8xf32>
    %478 = tpu.matmul %476, %477, %cst_113 {dimension_numbers = #tpu.dot_dimension_numbers<[2], [2], [1], [1], [0, 0, 0, 1, 1, 1], [0], [0]>} : vector<2x8x8xbf16>, vector<2x8x8xbf16>, vector<2x8x8xf32> -> vector<2x8x8xf32>
    "tpu.trace_stop"() : () -> ()
    %cst_114 = arith.constant dense<0xFF800000> : vector<2x8xf32>
    %479 = vector.multi_reduction <maximumf>, %478, %cst_114 [2] : vector<2x8x8xf32> to vector<2x8xf32>
    %480 = vector.shape_cast %479 : vector<2x8xf32> to vector<2x8x1xf32>
    %481 = vector.broadcast %480 : vector<2x8x1xf32> to vector<2x8x8xf32>
    %482 = arith.subf %478, %481 : vector<2x8x8xf32>
    %483 = math.exp %482 : vector<2x8x8xf32>
    %cst_115 = arith.constant dense<0.000000e+00> : vector<2x8xf32>
    %484 = vector.multi_reduction <add>, %483, %cst_115 [2] : vector<2x8x8xf32> to vector<2x8xf32>
    %485 = vector.shape_cast %484 : vector<2x8xf32> to vector<2x8x1xf32>
    %486 = tpu.reciprocal %485 {approx = true} : vector<2x8x1xf32> -> vector<2x8x1xf32>
    %487 = vector.broadcast %486 : vector<2x8x1xf32> to vector<2x8x8xf32>
    %488 = arith.mulf %483, %487 : vector<2x8x8xf32>
    %489 = arith.truncf %488 : vector<2x8x8xf32> to vector<2x8x8xbf16>
    %490 = vector.extract_strided_slice %54 {offsets = [0, 0, 24], sizes = [2, 8, 8], strides = [1, 1, 1]} : vector<2x8x32xbf16> to vector<2x8x8xbf16>
    "tpu.trace_start"() <{level = 10 : i32, message = "bqk,bkd->bqd"}> : () -> ()
    %cst_116 = arith.constant dense<0.000000e+00> : vector<2x8x8xf32>
    %491 = tpu.matmul %489, %490, %cst_116 {dimension_numbers = #tpu.dot_dimension_numbers<[2], [1], [1], [2], [0, 0, 0, 1, 1, 2], [0], [0]>} : vector<2x8x8xbf16>, vector<2x8x8xbf16>, vector<2x8x8xf32> -> vector<2x8x8xf32>
    "tpu.trace_stop"() : () -> ()
    %492 = arith.truncf %491 : vector<2x8x8xf32> to vector<2x8x8xbf16>
    "tpu.trace_start"() <{level = 10 : i32, message = "bqd,de->bqe"}> : () -> ()
    %cst_117 = arith.constant dense<0.000000e+00> : vector<2x8x32xf32>
    %493 = tpu.matmul %492, %19, %cst_117 {dimension_numbers = #tpu.dot_dimension_numbers<[2], [0], [0, 1], [1], [0, 0, 0, 1, 1, 1], [], []>} : vector<2x8x8xbf16>, vector<8x32xbf16>, vector<2x8x32xf32> -> vector<2x8x32xf32>
    "tpu.trace_stop"() : () -> ()
    %494 = arith.addf %475, %493 : vector<2x8x32xf32>
    %495 = vector.shape_cast %494 : vector<2x8x32xf32> to vector<16x32xf32>
    %496 = arith.addf %412, %495 : vector<16x32xf32>
    %497 = arith.addf %496, %33 : vector<16x32xf32>
    %cst_118 = arith.constant dense<0.000000e+00> : vector<16xf32>
    %498 = vector.multi_reduction <add>, %497, %cst_118 [1] : vector<16x32xf32> to vector<16xf32>
    %499 = vector.shape_cast %498 : vector<16xf32> to vector<16x1xf32>
    %cst_119 = arith.constant 3.200000e+01 : f32
    %500 = vector.broadcast %cst_119 : f32 to vector<16x1xf32>
    %501 = arith.divf %499, %500 : vector<16x1xf32>
    %502 = vector.broadcast %501 : vector<16x1xf32> to vector<16x32xf32>
    %503 = arith.subf %497, %502 : vector<16x32xf32>
    %504 = arith.mulf %503, %503 : vector<16x32xf32>
    %cst_120 = arith.constant dense<0.000000e+00> : vector<16xf32>
    %505 = vector.multi_reduction <add>, %504, %cst_120 [1] : vector<16x32xf32> to vector<16xf32>
    %506 = vector.shape_cast %505 : vector<16xf32> to vector<16x1xf32>
    %cst_121 = arith.constant 3.200000e+01 : f32
    %507 = vector.broadcast %cst_121 : f32 to vector<16x1xf32>
    %508 = arith.divf %506, %507 : vector<16x1xf32>
    %cst_122 = arith.constant 9.99999974E-6 : f32
    %509 = vector.broadcast %cst_122 : f32 to vector<16x1xf32>
    %510 = arith.addf %508, %509 : vector<16x1xf32>
    %511 = math.rsqrt %510 : vector<16x1xf32>
    %512 = vector.broadcast %511 : vector<16x1xf32> to vector<16x32xf32>
    %513 = arith.mulf %503, %512 : vector<16x32xf32>
    %514 = vector.broadcast %42 : vector<1x32xf32> to vector<16x32xf32>
    %515 = arith.mulf %513, %514 : vector<16x32xf32>
    %516 = vector.broadcast %43 : vector<1x32xf32> to vector<16x32xf32>
    %517 = arith.addf %515, %516 : vector<16x32xf32>
    %518 = arith.truncf %517 : vector<16x32xf32> to vector<16x32xbf16>
    %cst_123 = arith.constant dense<0.000000e+00> : vector<16x64xf32>
    %519 = tpu.matmul %518, %10, %cst_123 {dimension_numbers = #tpu.dot_dimension_numbers<[1], [0], [0], [1], [0, 0, 1, 1], [], []>} : vector<16x32xbf16>, vector<32x64xbf16>, vector<16x64xf32> -> vector<16x64xf32>
    %520 = arith.addf %519, %36 : vector<16x64xf32>
    %cst_124 = arith.constant 0.000000e+00 : f32
    %521 = vector.broadcast %cst_124 : f32 to vector<16x64xf32>
    %522 = arith.maximumf %520, %521 : vector<16x64xf32>
    %523 = arith.truncf %522 : vector<16x64xf32> to vector<16x64xbf16>
    %cst_125 = arith.constant dense<0.000000e+00> : vector<16x32xf32>
    %524 = tpu.matmul %523, %11, %cst_125 {dimension_numbers = #tpu.dot_dimension_numbers<[1], [0], [0], [1], [0, 0, 1, 1], [], []>} : vector<16x64xbf16>, vector<64x32xbf16>, vector<16x32xf32> -> vector<16x32xf32>
    %525 = arith.addf %524, %39 : vector<16x32xf32>
    %526 = arith.addf %517, %525 : vector<16x32xf32>
    %cst_126 = arith.constant dense<0.000000e+00> : vector<16xf32>
    %527 = vector.multi_reduction <add>, %526, %cst_126 [1] : vector<16x32xf32> to vector<16xf32>
    %528 = vector.shape_cast %527 : vector<16xf32> to vector<16x1xf32>
    %cst_127 = arith.constant 3.200000e+01 : f32
    %529 = vector.broadcast %cst_127 : f32 to vector<16x1xf32>
    %530 = arith.divf %528, %529 : vector<16x1xf32>
    %531 = vector.broadcast %530 : vector<16x1xf32> to vector<16x32xf32>
    %532 = arith.subf %526, %531 : vector<16x32xf32>
    %533 = arith.mulf %532, %532 : vector<16x32xf32>
    %cst_128 = arith.constant dense<0.000000e+00> : vector<16xf32>
    %534 = vector.multi_reduction <add>, %533, %cst_128 [1] : vector<16x32xf32> to vector<16xf32>
    %535 = vector.shape_cast %534 : vector<16xf32> to vector<16x1xf32>
    %cst_129 = arith.constant 3.200000e+01 : f32
    %536 = vector.broadcast %cst_129 : f32 to vector<16x1xf32>
    %537 = arith.divf %535, %536 : vector<16x1xf32>
    %cst_130 = arith.constant 9.99999974E-6 : f32
    %538 = vector.broadcast %cst_130 : f32 to vector<16x1xf32>
    %539 = arith.addf %537, %538 : vector<16x1xf32>
    %540 = math.rsqrt %539 : vector<16x1xf32>
    %541 = vector.broadcast %540 : vector<16x1xf32> to vector<16x32xf32>
    %542 = arith.mulf %532, %541 : vector<16x32xf32>
    %543 = vector.broadcast %44 : vector<1x32xf32> to vector<16x32xf32>
    %544 = arith.mulf %542, %543 : vector<16x32xf32>
    %545 = vector.broadcast %45 : vector<1x32xf32> to vector<16x32xf32>
    %546 = arith.addf %544, %545 : vector<16x32xf32>
    %c0_131 = arith.constant 0 : index
    %c0_132 = arith.constant 0 : index
    %547 = vector.load %arg5[%c0_131, %c0_132] : memref<16x32xf32, #tpu.memory_space<vmem>>, vector<16x32xf32>
    tpu.vector_store %arg5[%c0_131, %c0_132], %546 {strides = array<i32>} : memref<16x32xf32, #tpu.memory_space<vmem>>, vector<16x32xf32>,
    return
  }
  func.func @transform_0(%arg0: i32) -> (i32, i32) {
    %c0_i32 = arith.constant 0 : i32
    %c0_i32_0 = arith.constant 0 : i32
    %c0_i32_1 = arith.constant 0 : i32
    return %c0_i32, %c0_i32_0 : i32, i32
  }
  func.func @transform_1(%arg0: i32) -> (i32, i32) {
    %c0_i32 = arith.constant 0 : i32
    %c0_i32_0 = arith.constant 0 : i32
    %c0_i32_1 = arith.constant 0 : i32
    return %c0_i32, %c0_i32_0 : i32, i32
  }
  func.func @transform_2(%arg0: i32) -> (i32, i32) {
    %c0_i32 = arith.constant 0 : i32
    %c0_i32_0 = arith.constant 0 : i32
    %c0_i32_1 = arith.constant 0 : i32
    return %c0_i32, %c0_i32_0 : i32, i32
  }
  func.func @transform_3(%arg0: i32) -> (i32, i32) {
    %c0_i32 = arith.constant 0 : i32
    %c0_i32_0 = arith.constant 0 : i32
    %c0_i32_1 = arith.constant 0 : i32
    return %c0_i32, %c0_i32_0 : i32, i32
  }
  func.func @transform_4(%arg0: i32) -> (i32, i32) {
    %c0_i32 = arith.constant 0 : i32
    %c0_i32_0 = arith.constant 0 : i32
    %c0_i32_1 = arith.constant 0 : i32
    return %c0_i32, %c0_i32_0 : i32, i32
  }
}

</mosaic_0001>

<bundles_post_ra>
// kernel: tpu_custom_call.1
= control target key start
LH: loop header
LB: loop body
LE: loop exit
PB: predicated region body
PF: predicated region fallthrough
CT: control target
= control target key end

     0   :  { %9 = vsyncpa [#allocation3], 0  ;;  %s7462_s0 = inlined_call_operand.hbm [shape: f32[16,32], index: 0, kind: input, shape index: {}]   ;;  %s7463_s1 = inlined_call_operand.hbm [shape: f32[16,32], index: 1, kind: input, shape index: {}]   ;;  %s7464_s2 = inlined_call_operand.hbm [shape: bf16[224,128], index: 2, kind: input, shape index: {}]   ;;  %s7465_s3 = inlined_call_operand.hbm [shape: f32[12,96], index: 3, kind: input, shape index: {}]   ;;  %s7466_s4 = inlined_call_operand.hbm [shape: f32[16,32], index: 4, kind: output, shape index: {}]  }
   0x1   :  { %10 = vsyncpa [#allocation6], 0 }
   0x2   :  { %11 = vsyncpa [#allocation9], 0 }
   0x3   :  { %12 = vsyncpa [#allocation4], 0  ;;  %s6341_s15 = smov [#allocation5]   ;;  %s6342_s17 = smov [#allocation2]  }
   0x4   :  { %s30_s16 = sshll.u32 %s6341_s15, 4  ;;  %s18_s18 = sshll.u32 %s6342_s17, 4  ;;  %s31_s16 = int_to_ptr.vmem [resolvable:$true] %s30_s16  ;;  %s19_s18 = int_to_ptr.vmem [resolvable:$true] %s18_s18 }
   0x5   :  { %s6241_s19 = scalar_lea.vmem %s31_s16, 256  ;;  %p6246_p1 = scmp.lt.s32.totalorder %s31_s16, %s31_s16 }
   0x6   :  { %p6242_p0 = scmp.ne.s32.totalorder %s31_s16, %s6241_s19  ;;  %p6247_p2 = scmp.lt.s32.totalorder %s6241_s19, %s6241_s19 }
   0x8   :  { %p6248_p3 = por %p6247_p2, %p6246_p1 }
   0xa   :  { %p6249_p4 = pnand %p6248_p3, %p6242_p0 }
   0xc   :  { %6252 = shalt.err (!%p6249_p4)
}
   0xd   :  { %s6343_s20 = smov 128   ;;  %s6344_s21 = smov 8  }
   0xe   :  { %36 = dma.hbm_to_vmem [thread:$0]  %s7463_s1, 256, %s31_s16, [#allocation6], %s6343_s20, %s6343_s20, %s6344_s21  }
   0xf   :  { %s6261_s24 = scalar_lea.vmem %s19_s18, 256  ;;  %p6266_p6 = scmp.lt.s32.totalorder %s19_s18, %s19_s18 }
  0x10   :  { %p6262_p5 = scmp.ne.s32.totalorder %s19_s18, %s6261_s24  ;;  %p6267_p7 = scmp.lt.s32.totalorder %s6261_s24, %s6261_s24 }
  0x12   :  { %p6268_p8 = por %p6267_p7, %p6266_p6 }
  0x14   :  { %p6269_p9 = pnand %p6268_p8, %p6262_p5 }
  0x16   :  { %6272 = shalt.err (!%p6269_p9)
}
  0x17   :  { %24 = dma.hbm_to_vmem [thread:$0]  %s7462_s0, 256, %s19_s18, [#allocation3], %s6343_s20, %s6343_s20, %s6344_s21  }
  0x18   :  { %s6345_s27 = smov [#allocation7]  }
  0x19   :  { %s42_s28 = sshll.u32 %s6345_s27, 4  ;;  %s43_s28 = int_to_ptr.vmem [resolvable:$true] %s42_s28 }
  0x1a   :  { %s6281_s29 = scalar_lea.vmem %s43_s28, 1792  ;;  %p6286_p11 = scmp.lt.s32.totalorder %s43_s28, %s43_s28 }
  0x1b   :  { %p6282_p10 = scmp.ne.s32.totalorder %s43_s28, %s6281_s29  ;;  %p6287_p12 = scmp.lt.s32.totalorder %s6281_s29, %s6281_s29 }
  0x1d   :  { %p6288_p13 = por %p6287_p12, %p6286_p11 }
  0x1f   :  { %p6289_p0 = pnand %p6288_p13, %p6282_p10 }
  0x21   :  { %6292 = shalt.err (!%p6289_p0)
}
  0x22   :  { %s6346_s1 = smov 64   ;;  %s6347_s30 = smov 4  }
  0x23   :  { %48 = dma.hbm_to_vmem [thread:$0]  %s7464_s2, 1792, %s43_s28, [#allocation6], %s6346_s1, %s6346_s1, %s6347_s30  }
  0x24   :  { %s6348_s7 = smov [#allocation8]  }
  0x25   :  { %s54_s0 = sshll.u32 %s6348_s7, 4  ;;  %s55_s0 = int_to_ptr.vmem [resolvable:$true] %s54_s0 }
  0x26   :  { %s6301_s8 = scalar_lea.vmem %s55_s0, 256  ;;  %p6306_p2 = scmp.lt.s32.totalorder %s55_s0, %s55_s0 }
  0x27   :  { %p6302_p1 = scmp.ne.s32.totalorder %s55_s0, %s6301_s8  ;;  %p6307_p3 = scmp.lt.s32.totalorder %s6301_s8, %s6301_s8 }
  0x29   :  { %p6308_p4 = por %p6307_p3, %p6306_p2 }
  0x2b   :  { %p6309_p5 = pnand %p6308_p4, %p6302_p1 }
  0x2d   :  { %6312 = shalt.err (!%p6309_p5)
}
  0x2e   :  { %60 = dma.hbm_to_vmem [thread:$0]  %s7465_s3, 256, %s55_s0, [#allocation9], %s6343_s20, %s6343_s20, %s6344_s21  }
  0x2f   :  { %6333 = dma.done.wait [#allocation3], 256  }
  0x30   :  { %6334 = vsyncadd [#allocation3], 4294967040 }
  0x31   :  { %6335 = dma.done.wait [#allocation6], 2048  }
  0x32   :  { %6336 = vsyncadd [#allocation6], 4294965248 }
  0x33   :  { %6337 = dma.done.wait [#allocation9], 256  }
  0x34   :  { %6338 = vsyncadd [#allocation9], 4294967040  ;;  %v6349_v0 = vmov 0.0   ;;  %vm6350_vm0 = vmmov 0   ;;  %v6060_v1 = vld [vmem:[#allocation7 + $0x8] sm:$0xff]   ;;  %v6061_v2 = vld [vmem:[#allocation7] sm:$0xff]   ;;  %v109_v13 = vlaneseq }
  0x35   :  { %5487 = vmatprep.subr.bf16.mxu1 %v6349_v0  ;;  %5491 = vmatprep.mubr.msk.bf16.mxu1 %vm6350_vm0, %v6349_v0  ;;  %v6416_v3 = vld [vmem:[#allocation2] sm:$0xff]  ;;  %v6418_v4 = vld [vmem:[#allocation2 + $0x8] sm:$0xff]  ;;  %vm153_vm1 = vcmask 261120   ;;  %s6351_s2 = smov 96   ;;  %v76_v9 = vld [vmem:[#allocation5] sm:$0xff]  ;;  %vm262_vm2 = vcmask 64512  }
  0x36   :  { %5479 = vmatprep.subr.bf16.mxu0 %v6349_v0  ;;  %5483 = vmatprep.mubr.msk.bf16.mxu0 %vm6350_vm0, %v6349_v0  ;;  %v6421_v5 = vld [vmem:[#allocation7 + $0x28] sm:$0xff]   ;;  %v200_v6 = vpack.c.bf16 %v6418_v4, %v6416_v3  ;;  %v6427_v7 = vld [vmem:[#allocation7 + $0x20] sm:$0xff]   ;;  %v77_v10 = vld [vmem:[#allocation5 + $0x8] sm:$0xff]  ;;  %v6440_v14 = vshrl.u32 %v109_v13, 7  ;;  %s6352_s3 = smov 88   ;;  %s6353_s11 = smov 120  }
  0x37   :  { %5488 = vmatpush3.bf16.msra.mxu1 %v6060_v1  ;;  %145 = vrot.lane.b32.xlu0 %v6421_v5, %s6351_s2  ;;  %v78_v12 = vpack.c.bf16 %v77_v10, %v76_v9  ;;  %v6443_v16 = vld [vmem:[#allocation8] sm:$0xff]  ;;  %vm387_vm3 = vcmask 1043456   ;;  %s6354_s12 = smov 56   ;;  %s6355_s13 = smov 80   ;;  %vm2673_vm4 = vcmask 523264  }
  0x38   :  { %5489 = vmatprep.subr.bf16.mxu1 %v6349_v0  ;;  %v111_v15 = vsub.s32 0, %v6440_v14  ;;  %s6356_s14 = smov 112   ;;  %s6357_s15 = smov 48  }
  0x39   :  { %s6358_s16 = smov 72   ;;  %s6359_s17 = smov 104  }
  0x3a   :  { %v6448_v17 = vrot.slane %v6443_v16, %v111_v15  ;;  %s6360_s18 = smov 40   ;;  %s6361_s19 = smov [#allocation10]  }
  0x3b   :  { %5490 = vmatpush3.bf16.msra.mxu1 %v6061_v2  ;;  %143 = vrot.lane.b32.xlu0 %v6427_v7, %s6351_s2  ;;  %s5143_s22 = sshll.u32 %s6361_s19, 4  ;;  %s5144_s22 = int_to_ptr.vmem [resolvable:$true] %s5143_s22 }
  0x3c   :  { %5501 = vmatprep.subr.bf16.mxu1 %v6349_v0  ;;  %s6313_s23 = scalar_lea.vmem %s5144_s22, 256  ;;  %p6318_p7 = scmp.lt.s32.totalorder %s5144_s22, %s5144_s22 }
  0x3d   :  { %p6314_p6 = scmp.ne.s32.totalorder %s5144_s22, %s6313_s23  ;;  %p6319_p8 = scmp.lt.s32.totalorder %s6313_s23, %s6313_s23 }
  0x3e   :  { %5492 = vmatmul.mubr.msk.bf16.vlgmr.msra.gmra.mxu1 %vm153_vm1, %v200_v6 }
  0x3f   :  { %5503 = vmatprep.mubr.msk.bf16.mxu1 %vm6350_vm0, %v6349_v0  ;;  %p6320_p9 = por %p6319_p8, %p6318_p7 }
  0x41   :  { %p6321_p10 = pnand %p6320_p9, %p6314_p6 }
  0xa9   :  { %v146_v8 = vpop.permute.xlu0 %145 }
  0xaa   :  { %5480 = vmatpush3.bf16.msra.mxu0 %v146_v8 }
  0xab   :  { %5481 = vmatprep.subr.bf16.mxu0 %v6349_v0 }
  0xad   :  { %v144_v11 = vpop.permute.xlu0 %143 }
  0xae   :  { %5482 = vmatpush3.bf16.msra.mxu0 %v144_v11 }
  0xaf   :  { %5495 = vmatprep.subr.bf16.mxu0 %v6349_v0 }
  0xb1   :  { %5484 = vmatmul.mubr.msk.bf16.vlgmr.msra.gmra.mxu0 %vm153_vm1, %v78_v12 }
  0xb2   :  { %5497 = vmatprep.mubr.msk.bf16.mxu0 %vm6350_vm0, %v6349_v0 }
  0xfe   :  { %v250_v18 = vpop.f32.mrf.mxu1 }
  0xff   :  { %v251_v19 = vadd.f32 %v250_v18, %v6448_v17 }
 0x100   :  { %v5493_v20 = vpop.f32.mrf.mxu1 }
 0x101   :  { %v6451_v21 = vpack.c.bf16 %v251_v19, %v251_v19 }
 0x102   :  { %v253_v22 = vpop.f32.mrf.mxu1 }
 0x103   :  { %v254_v23 = vadd.f32 %v253_v22, %v6448_v17  ;;  %260 = vrot.lane.b32.xlu1 %v6451_v21, %s6351_s2 }
 0x104   :  { %v5494_v24 = vpop.f32.mrf.mxu1 }
 0x105   :  { %v6456_v25 = vpack.c.bf16 %v254_v23, %v254_v23 }
 0x107   :  { %310 = vrot.lane.b32.xlu1 %v6456_v25, %s6351_s2 }
 0x171   :  { %v6460_v26 = vpop.f32.mrf.mxu0 }
 0x173   :  { %v5485_v29 = vpop.f32.mrf.mxu0 }
 0x175   :  { %v261_v27 = vpop.permute.xlu1 %260  ;;  %v6463_v30 = vpop.f32.mrf.mxu0 }
 0x176   :  { %v267_v28 = vsel %vm262_vm2, %v261_v27, 0 }
 0x177   :  { %5496 = vmatpush3.bf16.xpose.msra.mxu0 %v267_v28  ;;  %v5486_v33 = vpop.f32.mrf.mxu0 }
 0x178   :  { %5507 = vmatprep.subr.bf16.mxu0 %v6349_v0 }
 0x179   :  { %v311_v31 = vpop.permute.xlu1 %310 }
 0x17a   :  { %v316_v32 = vsel %vm262_vm2, %v311_v31, 0 }
 0x17b   :  { %5502 = vmatpush3.bf16.xpose.msra.mxu1 %v316_v32 }
 0x17c   :  { %5513 = vmatprep.subr.bf16.mxu1 %v6349_v0 }
 0x17e   :  { %5498 = vmatmul.mubr.msk.bf16.vlgmr.msra.gmra.mxu0 %vm262_vm2, %v6451_v21 }
 0x17f   :  { %5509 = vmatprep.mubr.msk.bf16.mxu0 %vm6350_vm0, %v6349_v0 }
 0x182   :  { %5504 = vmatmul.mubr.msk.bf16.vlgmr.msra.gmra.mxu1 %vm262_vm2, %v6456_v25 }
 0x183   :  { %5515 = vmatprep.mubr.msk.bf16.mxu1 %vm6350_vm0, %v6349_v0 }
 0x23e   :  { %v303_v34 = vpop.f32.mrf.mxu0 }
 0x23f   :  { %v358_v35 = vsel %vm262_vm2, %v303_v34, -inf }
 0x240   :  { %359 = vmax.xlane.f32.xlu0 %v358_v35  ;;  %v5499_v36 = vpop.f32.mrf.mxu0 }
 0x242   :  { %v306_v37 = vpop.f32.mrf.mxu0  ;;  %v352_v38 = vpop.f32.mrf.mxu1 }
 0x243   :  { %v361_v39 = vsel %vm262_vm2, %v352_v38, -inf }
 0x244   :  { %v5500_v40 = vpop.f32.mrf.mxu0  ;;  %362 = vmax.xlane.f32.xlu1 %v361_v39  ;;  %v5505_v41 = vpop.f32.mrf.mxu1 }
 0x246   :  { %v355_v42 = vpop.f32.mrf.mxu1 }
 0x248   :  { %v5506_v43 = vpop.f32.mrf.mxu1 }
 0x255   :  { %382 = vrot.lane.b32.xlu1 %v6451_v21, %s6346_s1 }
 0x259   :  { %483 = vrot.lane.b32.xlu1 %v6451_v21, %s6352_s3 }
 0x25d   :  { %533 = vrot.lane.b32.xlu1 %v6456_v25, %s6352_s3 }
 0x261   :  { %531 = vrot.lane.b32.xlu1 %v6456_v25, %s6353_s11 }
 0x2c9   :  { %v360_v44 = vpop.xlane.xlu0 %359 }
 0x2ca   :  { %v364_v45 = vsub.f32 %v303_v34, %v360_v44 }
 0x2cc   :  { %v366_v46 = vmul.f32 1.442695, %v364_v45 }
 0x2cd   :  { %v363_v47 = vpop.xlane.xlu1 %362 }
 0x2ce   :  { %6070 = vpow2.f32 %v366_v46  ;;  %v365_v48 = vsub.f32 %v352_v38, %v363_v47 }
 0x2d0   :  { %v368_v49 = vmul.f32 1.442695, %v365_v48 }
 0x2d1   :  { %v383_v50 = vpop.permute.xlu1 %382 }
 0x2d2   :  { %6072 = vpow2.f32 %v368_v49  ;;  %v389_v51 = vsel %vm387_vm3, %v383_v50, 0 }
 0x2d3   :  { %5508 = vmatpush3.bf16.msra.mxu0 %v389_v51 }
 0x2d4   :  { %5519 = vmatprep.subr.bf16.mxu0 %v6349_v0 }
 0x2d5   :  { %v484_v61 = vpop.permute.xlu1 %483 }
 0x2d6   :  { %v489_v2 = vsel %vm262_vm2, %v484_v61, 0 }
 0x2d9   :  { %v534_v8 = vpop.permute.xlu1 %533 }
 0x2da   :  { %v539_v10 = vsel %vm262_vm2, %v534_v8, 0 }
 0x2db   :  { %v6071_v52 = vpop.eup %6070 }
 0x2dc   :  { %v370_v53 = vsel %vm262_vm2, %v6071_v52, 0.0 }
 0x2dd   :  { %371 = vadd.xlane.f32.xlu0 %v370_v53  ;;  %v532_v12 = vpop.permute.xlu1 %531 }
 0x2df   :  { %v6073_v54 = vpop.eup %6072 }
 0x2e0   :  { %v373_v55 = vsel %vm262_vm2, %v6073_v54, 0.0 }
 0x2e1   :  { %374 = vadd.xlane.f32.xlu0 %v373_v55 }
 0x2f7   :  { %431 = vrot.lane.b32.xlu0 %v6456_v25, %s6346_s1 }
 0x2fb   :  { %481 = vrot.lane.b32.xlu0 %v6451_v21, %s6353_s11 }
 0x366   :  { %v372_v56 = vpop.xlane.xlu0 %371 }
 0x367   :  { %6074 = vrcp.f32 %v372_v56 }
 0x36a   :  { %v375_v57 = vpop.xlane.xlu0 %374 }
 0x36b   :  { %6076 = vrcp.f32 %v375_v57 }
 0x36e   :  { %v432_v58 = vpop.permute.xlu0 %431 }
 0x36f   :  { %v437_v59 = vsel %vm387_vm3, %v432_v58, 0 }
 0x370   :  { %5514 = vmatpush3.bf16.msra.mxu1 %v437_v59 }
 0x371   :  { %5525 = vmatprep.subr.bf16.mxu1 %v6349_v0 }
 0x372   :  { %v482_v11 = vpop.permute.xlu0 %481 }
 0x374   :  { %v6075_v60 = vpop.eup %6074 }
 0x375   :  { %v378_v62 = vmul.f32 %v6075_v60, %v6071_v52  ;;  %v83_v60 = vld [vmem:[#allocation7 + $0x10] sm:$0xf] }
 0x377   :  { %v380_v63 = vpack.c.bf16 %v378_v62, %v378_v62 }
 0x378   :  { %v6077_v1 = vpop.eup %6076 }
 0x379   :  { %5510 = vmatmul.mubr.msk.bf16.vlgmr.msra.gmra.mxu0 %vm262_vm2, %v380_v63  ;;  %v379_v6 = vmul.f32 %v6077_v1, %v6073_v54  ;;  %v6542_v63 = vsel %vm387_vm3, %v83_v60, 0 }
 0x37a   :  { %5520 = vmatpush3.bf16.xpose.msra.mxu0 %v489_v2  ;;  %5521 = vmatprep.mubr.msk.bf16.mxu0 %vm6350_vm0, %v6349_v0 }
 0x37b   :  { %v381_v9 = vpack.c.bf16 %v379_v6, %v379_v6  ;;  %5531 = vmatprep.subr.bf16.mxu0 %v6349_v0 }
 0x37d   :  { %5516 = vmatmul.mubr.msk.bf16.vlgmr.msra.gmra.mxu1 %vm262_vm2, %v381_v9  ;;  %v84_v9 = vld [vmem:[#allocation7 + $0x14] sm:$0xf] }
 0x37e   :  { %5526 = vmatpush3.bf16.xpose.msra.mxu1 %v539_v10  ;;  %5527 = vmatprep.mubr.msk.bf16.mxu1 %vm6350_vm0, %v6349_v0  ;;  %v6561_v10 = vsel %vm387_vm3, %v84_v9, 0 }
 0x37f   :  { %5537 = vmatprep.subr.bf16.mxu1 %v6349_v0 }
 0x381   :  { %5522 = vmatmul.mubr.msk.bf16.vlgmr.msra.gmra.mxu0 %vm262_vm2, %v482_v11 }
 0x382   :  { %5533 = vmatprep.mubr.msk.bf16.mxu0 %vm6350_vm0, %v6349_v0 }
 0x385   :  { %5528 = vmatmul.mubr.msk.bf16.vlgmr.msra.gmra.mxu1 %vm262_vm2, %v532_v12 }
 0x386   :  { %5539 = vmatprep.mubr.msk.bf16.mxu1 %vm6350_vm0, %v6349_v0 }
 0x439   :  { %v6512_v13 = vpop.f32.mrf.mxu0 }
 0x43b   :  { %v5511_v18 = vpop.f32.mrf.mxu0 }
 0x43d   :  { %v428_v19 = vpop.f32.mrf.mxu0  ;;  %v6514_v20 = vpop.f32.mrf.mxu1 }
 0x43e   :  { %v5273_v22 = vpack.c.bf16 %v6514_v20, %v6512_v13 }
 0x43f   :  { %v5512_v23 = vpop.f32.mrf.mxu0  ;;  %v5517_v24 = vpop.f32.mrf.mxu1 }
 0x441   :  { %v476_v27 = vpop.f32.mrf.mxu1  ;;  %v525_v28 = vpop.f32.mrf.mxu0 }
 0x442   :  { %v581_v29 = vsel %vm262_vm2, %v525_v28, -inf }
 0x443   :  { %582 = vmax.xlane.f32.xlu0 %v581_v29  ;;  %v5518_v31 = vpop.f32.mrf.mxu1  ;;  %v5523_v32 = vpop.f32.mrf.mxu0 }
 0x445   :  { %v528_v33 = vpop.f32.mrf.mxu0  ;;  %v575_v34 = vpop.f32.mrf.mxu1 }
 0x446   :  { %v584_v35 = vsel %vm262_vm2, %v575_v34, -inf }
 0x447   :  { %v5524_v36 = vpop.f32.mrf.mxu0  ;;  %585 = vmax.xlane.f32.xlu1 %v584_v35  ;;  %v5529_v37 = vpop.f32.mrf.mxu1 }
 0x449   :  { %v578_v38 = vpop.f32.mrf.mxu1 }
 0x44b   :  { %v5530_v39 = vpop.f32.mrf.mxu1 }
 0x458   :  { %605 = vrot.lane.b32.xlu1 %v6451_v21, %s6354_s12 }
 0x45c   :  { %809 = vrot.lane.b32.xlu1 %v6451_v21, %s6355_s13 }
 0x460   :  { %859 = vrot.lane.b32.xlu1 %v6456_v25, %s6355_s13 }
 0x464   :  { %857 = vrot.lane.b32.xlu1 %v6456_v25, %s6356_s14 }
 0x4cc   :  { %v583_v40 = vpop.xlane.xlu0 %582 }
 0x4cd   :  { %v587_v41 = vsub.f32 %v525_v28, %v583_v40 }
 0x4cf   :  { %v589_v42 = vmul.f32 1.442695, %v587_v41 }
 0x4d0   :  { %v586_v43 = vpop.xlane.xlu1 %585 }
 0x4d1   :  { %6078 = vpow2.f32 %v589_v42  ;;  %v588_v44 = vsub.f32 %v575_v34, %v586_v43 }
 0x4d3   :  { %v591_v45 = vmul.f32 1.442695, %v588_v44 }
 0x4d4   :  { %v606_v46 = vpop.permute.xlu1 %605 }
 0x4d5   :  { %6080 = vpow2.f32 %v591_v45  ;;  %v611_v47 = vsel %vm387_vm3, %v606_v46, 0 }
 0x4d6   :  { %5532 = vmatpush3.bf16.msra.mxu0 %v611_v47 }
 0x4d7   :  { %5543 = vmatprep.subr.bf16.mxu0 %v6349_v0 }
 0x4d8   :  { %v810_v1 = vpop.permute.xlu1 %809 }
 0x4d9   :  { %v815_v23 = vsel %vm262_vm2, %v810_v1, 0 }
 0x4dc   :  { %v860_v2 = vpop.permute.xlu1 %859 }
 0x4dd   :  { %v865_v6 = vsel %vm262_vm2, %v860_v2, 0 }
 0x4de   :  { %v6079_v48 = vpop.eup %6078 }
 0x4df   :  { %v593_v49 = vsel %vm262_vm2, %v6079_v48, 0.0 }
 0x4e0   :  { %594 = vadd.xlane.f32.xlu0 %v593_v49  ;;  %v858_v8 = vpop.permute.xlu1 %857 }
 0x4e2   :  { %v6081_v50 = vpop.eup %6080 }
 0x4e3   :  { %v596_v51 = vsel %vm262_vm2, %v6081_v50, 0.0 }
 0x4e4   :  { %597 = vadd.xlane.f32.xlu0 %v596_v51 }
 0x4fa   :  { %653 = vrot.lane.b32.xlu0 %v6456_v25, %s6354_s12 }
 0x4fe   :  { %807 = vrot.lane.b32.xlu0 %v6451_v21, %s6356_s14 }
 0x569   :  { %v595_v52 = vpop.xlane.xlu0 %594 }
 0x56a   :  { %6082 = vrcp.f32 %v595_v52 }
 0x56d   :  { %v598_v53 = vpop.xlane.xlu0 %597 }
 0x56e   :  { %6084 = vrcp.f32 %v598_v53 }
 0x571   :  { %v654_v54 = vpop.permute.xlu0 %653 }
 0x572   :  { %v659_v55 = vsel %vm387_vm3, %v654_v54, 0 }
 0x573   :  { %5538 = vmatpush3.bf16.msra.mxu1 %v659_v55 }
 0x574   :  { %5549 = vmatprep.subr.bf16.mxu1 %v6349_v0 }
 0x575   :  { %v808_v29 = vpop.permute.xlu0 %807 }
 0x577   :  { %v6083_v56 = vpop.eup %6082 }
 0x578   :  { %v601_v57 = vmul.f32 %v6083_v56, %v6079_v48 }
 0x57a   :  { %v603_v58 = vpack.c.bf16 %v601_v57, %v601_v57 }
 0x57b   :  { %v6085_v59 = vpop.eup %6084 }
 0x57c   :  { %5534 = vmatmul.mubr.msk.bf16.vlgmr.msra.gmra.mxu0 %vm262_vm2, %v603_v58  ;;  %v602_v61 = vmul.f32 %v6085_v59, %v6081_v50 }
 0x57d   :  { %5545 = vmatprep.mubr.msk.bf16.mxu0 %vm6350_vm0, %v6349_v0  ;;  %5544 = vmatpush3.bf16.msra.mxu0 %v6561_v10 }
 0x57e   :  { %v604_v62 = vpack.c.bf16 %v602_v61, %v602_v61  ;;  %5555 = vmatprep.subr.bf16.mxu0 %v6349_v0 }
 0x580   :  { %5540 = vmatmul.mubr.msk.bf16.vlgmr.msra.gmra.mxu1 %vm262_vm2, %v604_v62 }
 0x581   :  { %5550 = vmatpush3.bf16.msra.mxu1 %v6542_v63  ;;  %5551 = vmatprep.mubr.msk.bf16.mxu1 %vm6350_vm0, %v6349_v0 }
 0x582   :  { %5561 = vmatprep.subr.bf16.mxu1 %v6349_v0 }
 0x588   :  { %5552 = vmatmul.mubr.msk.bf16.vlgmr.msra.gmra.mxu1 %vm262_vm2, %v5273_v22 }
 0x589   :  { %5562 = vmatpush3.bf16.xpose.msra.mxu1 %v865_v6  ;;  %5563 = vmatprep.mubr.msk.bf16.mxu1 %vm6350_vm0, %v6349_v0 }
 0x58a   :  { %5573 = vmatprep.subr.bf16.mxu1 %v6349_v0 }
 0x590   :  { %5564 = vmatmul.mubr.msk.bf16.vlgmr.msra.gmra.mxu1 %vm262_vm2, %v858_v8 }
 0x591   :  { %5575 = vmatprep.mubr.msk.bf16.mxu1 %vm6350_vm0, %v6349_v0 }
 0x63c   :  { %v647_v11 = vpop.f32.mrf.mxu0 }
 0x63e   :  { %v5535_v12 = vpop.f32.mrf.mxu0 }
 0x640   :  { %v650_v13 = vpop.f32.mrf.mxu0  ;;  %v695_v18 = vpop.f32.mrf.mxu1 }
 0x641   :  { %v5272_v19 = vpack.c.bf16 %v695_v18, %v647_v11 }
 0x642   :  { %v5536_v20 = vpop.f32.mrf.mxu0  ;;  %v5541_v22 = vpop.f32.mrf.mxu1 }
 0x643   :  { %5546 = vmatmul.mubr.msk.bf16.vlgmr.msra.gmra.mxu0 %vm262_vm2, %v5272_v19  ;;  %v85_v20 = vld [vmem:[#allocation7 + $0x18] sm:$0xf] }
 0x644   :  { %5556 = vmatpush3.bf16.xpose.msra.mxu0 %v815_v23  ;;  %v698_v24 = vpop.f32.mrf.mxu1  ;;  %5557 = vmatprep.mubr.msk.bf16.mxu0 %vm6350_vm0, %v6349_v0  ;;  %v6613_v22 = vsel %vm387_vm3, %v85_v20, 0 }
 0x645   :  { %5567 = vmatprep.subr.bf16.mxu0 %v6349_v0 }
 0x646   :  { %v5542_v27 = vpop.f32.mrf.mxu1 }
 0x648   :  { %v6570_v28 = vpop.f32.mrf.mxu1 }
 0x64a   :  { %v5553_v31 = vpop.f32.mrf.mxu1 }
 0x64b   :  { %5558 = vmatmul.mubr.msk.bf16.vlgmr.msra.gmra.mxu0 %vm262_vm2, %v808_v29 }
 0x64c   :  { %v6573_v32 = vpop.f32.mrf.mxu1  ;;  %5569 = vmatprep.mubr.msk.bf16.mxu0 %vm6350_vm0, %v6349_v0 }
 0x64e   :  { %v5554_v33 = vpop.f32.mrf.mxu1 }
 0x650   :  { %v901_v34 = vpop.f32.mrf.mxu1 }
 0x651   :  { %v910_v35 = vsel %vm262_vm2, %v901_v34, -inf }
 0x652   :  { %911 = vmax.xlane.f32.xlu1 %v910_v35  ;;  %v5565_v36 = vpop.f32.mrf.mxu1 }
 0x654   :  { %v904_v37 = vpop.f32.mrf.mxu1 }
 0x656   :  { %v5566_v38 = vpop.f32.mrf.mxu1 }
 0x663   :  { %931 = vrot.lane.b32.xlu1 %v6451_v21, %s6357_s15 }
 0x667   :  { %1085 = vrot.lane.b32.xlu1 %v6451_v21, %s6358_s16 }
 0x66b   :  { %1135 = vrot.lane.b32.xlu1 %v6456_v25, %s6358_s16 }
 0x66f   :  { %1133 = vrot.lane.b32.xlu1 %v6456_v25, %s6359_s17 }
 0x6db   :  { %v912_v39 = vpop.xlane.xlu1 %911 }
 0x6dc   :  { %v914_v42 = vsub.f32 %v901_v34, %v912_v39 }
 0x6de   :  { %v917_v43 = vmul.f32 1.442695, %v914_v42 }
 0x6df   :  { %v932_v40 = vpop.permute.xlu1 %931 }
 0x6e0   :  { %v937_v41 = vsel %vm387_vm3, %v932_v40, 0  ;;  %6086 = vpow2.f32 %v917_v43 }
 0x6e1   :  { %5568 = vmatpush3.bf16.msra.mxu0 %v937_v41 }
 0x6e2   :  { %5579 = vmatprep.subr.bf16.mxu0 %v6349_v0 }
 0x6e3   :  { %v1086_v8 = vpop.permute.xlu1 %1085 }
 0x6e4   :  { %v1091_v11 = vsel %vm262_vm2, %v1086_v8, 0 }
 0x6e7   :  { %v1136_v33 = vpop.permute.xlu1 %1135 }
 0x6e8   :  { %v1141_v40 = vsel %vm262_vm2, %v1136_v33, 0 }
 0x6ed   :  { %v6087_v50 = vpop.eup %6086 }
 0x6ee   :  { %v922_v53 = vsel %vm262_vm2, %v6087_v50, 0.0 }
 0x703   :  { %v6588_v44 = vpop.f32.mrf.mxu0 }
 0x705   :  { %v5547_v45 = vpop.f32.mrf.mxu0 }
 0x706   :  { %v1134_v45 = vpop.permute.xlu1 %1133 }
 0x707   :  { %v6590_v46 = vpop.f32.mrf.mxu0 }
 0x709   :  { %v5548_v47 = vpop.f32.mrf.mxu0 }
 0x70b   :  { %v851_v48 = vpop.f32.mrf.mxu0 }
 0x70c   :  { %v907_v49 = vsel %vm262_vm2, %v851_v48, -inf }
 0x70d   :  { %908 = vmax.xlane.f32.xlu0 %v907_v49  ;;  %v5559_v51 = vpop.f32.mrf.mxu0 }
 0x70f   :  { %v854_v52 = vpop.f32.mrf.mxu0 }
 0x710   :  { %v801_v52 = vadd.f32 %v6570_v28, %v6588_v44 }
 0x711   :  { %v5560_v54 = vpop.f32.mrf.mxu0  ;;  %923 = vadd.xlane.f32.xlu0 %v922_v53 }
 0x796   :  { %v909_v55 = vpop.xlane.xlu0 %908 }
 0x797   :  { %v913_v56 = vsub.f32 %v851_v48, %v909_v55 }
 0x799   :  { %v915_v57 = vmul.f32 1.442695, %v913_v56  ;;  %v804_v56 = vadd.f32 %v6573_v32, %v6590_v46 }
 0x79a   :  { %v924_v60 = vpop.xlane.xlu0 %923 }
 0x79b   :  { %6088 = vpow2.f32 %v915_v57 }
 0x79c   :  { %6090 = vrcp.f32 %v924_v60 }
 0x7a8   :  { %v6089_v58 = vpop.eup %6088 }
 0x7a9   :  { %v919_v59 = vsel %vm262_vm2, %v6089_v58, 0.0  ;;  %v6091_v61 = vpop.eup %6090 }
 0x7aa   :  { %920 = vadd.xlane.f32.xlu0 %v919_v59  ;;  %v928_v1 = vmul.f32 %v6091_v61, %v6087_v50 }
 0x7ac   :  { %v930_v9 = vpack.c.bf16 %v928_v1, %v928_v1 }
 0x7c0   :  { %979 = vrot.lane.b32.xlu0 %v6456_v25, %s6357_s15 }
 0x7c4   :  { %1083 = vrot.lane.b32.xlu0 %v6451_v21, %s6359_s17 }
 0x833   :  { %v921_v62 = vpop.xlane.xlu0 %920 }
 0x834   :  { %6092 = vrcp.f32 %v921_v62 }
 0x837   :  { %v980_v2 = vpop.permute.xlu0 %979 }
 0x838   :  { %v985_v6 = vsel %vm387_vm3, %v980_v2, 0 }
 0x839   :  { %5574 = vmatpush3.bf16.msra.mxu1 %v985_v6 }
 0x83a   :  { %5585 = vmatprep.subr.bf16.mxu1 %v6349_v0 }
 0x83b   :  { %v1084_v18 = vpop.permute.xlu0 %1083 }
 0x83c   :  { %5576 = vmatmul.mubr.msk.bf16.vlgmr.msra.gmra.mxu1 %vm262_vm2, %v930_v9 }
 0x83d   :  { %5586 = vmatpush3.bf16.xpose.msra.mxu1 %v1091_v11  ;;  %5587 = vmatprep.mubr.msk.bf16.mxu1 %vm6350_vm0, %v6349_v0 }
 0x83e   :  { %5597 = vmatprep.subr.bf16.mxu1 %v6349_v0 }
 0x841   :  { %v6093_v12 = vpop.eup %6092 }
 0x842   :  { %v927_v13 = vmul.f32 %v6093_v12, %v6089_v58 }
 0x844   :  { %5588 = vmatmul.mubr.msk.bf16.vlgmr.msra.gmra.mxu1 %vm262_vm2, %v1084_v18  ;;  %v929_v19 = vpack.c.bf16 %v927_v13, %v927_v13  ;;  %v86_v18 = vld [vmem:[#allocation7 + $0x1c] sm:$0xf] }
 0x845   :  { %5599 = vmatprep.mubr.msk.bf16.mxu1 %vm6350_vm0, %v6349_v0 }
 0x846   :  { %5570 = vmatmul.mubr.msk.bf16.vlgmr.msra.gmra.mxu0 %vm262_vm2, %v929_v19  ;;  %v6647_v19 = vsel %vm387_vm3, %v86_v18, 0  ;;  %v1392_v18 = vsub.s32 6, %v6440_v14 }
 0x847   :  { %5581 = vmatprep.mubr.msk.bf16.mxu0 %vm6350_vm0, %v6349_v0  ;;  %5580 = vmatpush3.bf16.msra.mxu0 %v6613_v22 }
 0x848   :  { %5591 = vmatprep.subr.bf16.mxu0 %v6349_v0 }
 0x8fc   :  { %v1021_v23 = vpop.f32.mrf.mxu1 }
 0x8fe   :  { %v5577_v24 = vpop.f32.mrf.mxu1 }
 0x900   :  { %v1024_v27 = vpop.f32.mrf.mxu1 }
 0x902   :  { %v5578_v29 = vpop.f32.mrf.mxu1 }
 0x904   :  { %v1127_v31 = vpop.f32.mrf.mxu1 }
 0x905   :  { %v1183_v34 = vsel %vm262_vm2, %v1127_v31, -inf }
 0x906   :  { %v973_v35 = vpop.f32.mrf.mxu0  ;;  %1184 = vmax.xlane.f32.xlu0 %v1183_v34  ;;  %v5589_v36 = vpop.f32.mrf.mxu1 }
 0x907   :  { %v5274_v37 = vpack.c.bf16 %v1021_v23, %v973_v35 }
 0x908   :  { %v5571_v38 = vpop.f32.mrf.mxu0  ;;  %v1130_v39 = vpop.f32.mrf.mxu1 }
 0x909   :  { %5582 = vmatmul.mubr.msk.bf16.vlgmr.msra.gmra.mxu0 %vm262_vm2, %v5274_v37 }
 0x90a   :  { %5592 = vmatpush3.bf16.xpose.msra.mxu0 %v1141_v40  ;;  %v976_v41 = vpop.f32.mrf.mxu0  ;;  %v5590_v42 = vpop.f32.mrf.mxu1  ;;  %5593 = vmatprep.mubr.msk.bf16.mxu0 %vm6350_vm0, %v6349_v0  ;;  %v115_v40 = vsub.s32 1, %v6440_v14 }
 0x90b   :  { %5603 = vmatprep.subr.bf16.mxu0 %v6349_v0 }
 0x90c   :  { %v5572_v43 = vpop.f32.mrf.mxu0  ;;  %v6668_v42 = vrot.slane %v6443_v16, %v115_v40 }
 0x911   :  { %5594 = vmatmul.mubr.msk.bf16.vlgmr.msra.gmra.mxu0 %vm262_vm2, %v1134_v45 }
 0x912   :  { %5605 = vmatprep.mubr.msk.bf16.mxu0 %vm6350_vm0, %v6349_v0 }
 0x98f   :  { %v1185_v47 = vpop.xlane.xlu0 %1184 }
 0x990   :  { %v1189_v48 = vsub.f32 %v1127_v31, %v1185_v47 }
 0x992   :  { %v1191_v49 = vmul.f32 1.442695, %v1189_v48 }
 0x994   :  { %6094 = vpow2.f32 %v1191_v49 }
 0x9a1   :  { %v6095_v50 = vpop.eup %6094 }
 0x9a2   :  { %v1195_v51 = vsel %vm262_vm2, %v6095_v50, 0.0 }
 0x9a3   :  { %1196 = vadd.xlane.f32.xlu0 %v1195_v51 }
 0x9c9   :  { %v1074_v53 = vpop.f32.mrf.mxu0 }
 0x9ca   :  { %v6629_v54 = vadd.f32 %v1074_v53, %v801_v52 }
 0x9cb   :  { %v5583_v55 = vpop.f32.mrf.mxu0 }
 0x9cd   :  { %v1077_v57 = vpop.f32.mrf.mxu0 }
 0x9ce   :  { %v6633_v58 = vadd.f32 %v1077_v57, %v804_v56 }
 0x9cf   :  { %v5584_v59 = vpop.f32.mrf.mxu0 }
 0x9d1   :  { %v1177_v60 = vpop.f32.mrf.mxu0 }
 0x9d2   :  { %v1186_v61 = vsel %vm262_vm2, %v1177_v60, -inf }
 0x9d3   :  { %1187 = vmax.xlane.f32.xlu1 %v1186_v61  ;;  %v5595_v62 = vpop.f32.mrf.mxu0 }
 0x9d5   :  { %v1180_v1 = vpop.f32.mrf.mxu0 }
 0x9d6   :  { %v119_v1 = vsub.s32 2, %v6440_v14 }
 0x9d7   :  { %v5596_v2 = vpop.f32.mrf.mxu0 }
 0x9d8   :  { %v6683_v2 = vrot.slane %v6443_v16, %v119_v1 }
 0x9e4   :  { %1207 = vrot.lane.b32.xlu1 %v6451_v21, %s6360_s18 }
 0xa2c   :  { %v1197_v28 = vpop.xlane.xlu0 %1196 }
 0xa2d   :  { %6096 = vrcp.f32 %v1197_v28 }
 0xa3a   :  { %v6097_v44 = vpop.eup %6096 }
 0xa3b   :  { %v1203_v8 = vmul.f32 %v6097_v44, %v6095_v50 }
 0xa3d   :  { %v1205_v12 = vpack.c.bf16 %v1203_v8, %v1203_v8 }
 0xa5c   :  { %v1188_v6 = vpop.xlane.xlu1 %1187 }
 0xa5d   :  { %v1190_v32 = vsub.f32 %v1177_v60, %v1188_v6 }
 0xa5f   :  { %v1193_v46 = vmul.f32 1.442695, %v1190_v32 }
 0xa60   :  { %v1208_v9 = vpop.permute.xlu1 %1207 }
 0xa61   :  { %6098 = vpow2.f32 %v1193_v46  ;;  %v1213_v11 = vsel %vm387_vm3, %v1208_v9, 0 }
 0xa62   :  { %5598 = vmatpush3.bf16.msra.mxu1 %v1213_v11 }
 0xa63   :  { %5609 = vmatprep.subr.bf16.mxu1 %v6349_v0 }
 0xa65   :  { %5600 = vmatmul.mubr.msk.bf16.vlgmr.msra.gmra.mxu1 %vm262_vm2, %v1205_v12 }
 0xa66   :  { %5611 = vmatprep.mubr.msk.bf16.mxu1 %vm6350_vm0, %v6349_v0  ;;  %5610 = vmatpush3.bf16.msra.mxu1 %v6647_v19 }
 0xa67   :  { %5623 = vmatprep.subr.bf16.mxu1 %v6349_v0 }
 0xa6e   :  { %v6099_v21 = vpop.eup %6098 }
 0xa6f   :  { %v1198_v13 = vsel %vm262_vm2, %v6099_v21, 0.0 }
 0xa70   :  { %1199 = vadd.xlane.f32.xlu0 %v1198_v13 }
 0xa86   :  { %1255 = vrot.lane.b32.xlu0 %v6456_v25, %s6360_s18 }
 0xaf9   :  { %v1200_v20 = vpop.xlane.xlu0 %1199 }
 0xafa   :  { %6100 = vrcp.f32 %v1200_v20 }
 0xafd   :  { %v1256_v23 = vpop.permute.xlu0 %1255 }
 0xafe   :  { %v1261_v24 = vsel %vm387_vm3, %v1256_v23, 0 }
 0xaff   :  { %5604 = vmatpush3.bf16.msra.mxu0 %v1261_v24  ;;  %v6707_v24 = vrot.slane %v6443_v16, %v1392_v18 }
 0xb00   :  { %5615 = vmatprep.subr.bf16.mxu0 %v6349_v0 }
 0xb07   :  { %v6101_v27 = vpop.eup %6100 }
 0xb08   :  { %v1204_v29 = vmul.f32 %v6101_v27, %v6099_v21  ;;  %v1398_v27 = vsub.s32 7, %v6440_v14 }
 0xb0a   :  { %v1206_v31 = vpack.c.bf16 %v1204_v29, %v1204_v29 }
 0xb0c   :  { %5606 = vmatmul.mubr.msk.bf16.vlgmr.msra.gmra.mxu0 %vm262_vm2, %v1206_v31 }
 0xb0d   :  { %5616 = vmatpush3.bf16.msra.mxu0 %v6421_v5  ;;  %5619 = vmatprep.mubr.msk.bf16.mxu0 %vm6350_vm0, %v6349_v0 }
 0xb0e   :  { %5617 = vmatprep.subr.bf16.mxu0 %v6349_v0 }
 0xb11   :  { %5618 = vmatpush3.bf16.msra.mxu0 %v6427_v7 }
 0xb12   :  { %5629 = vmatprep.subr.bf16.mxu0 %v6349_v0 }
 0xb25   :  { %v1249_v25 = vpop.f32.mrf.mxu1 }
 0xb27   :  { %v5601_v33 = vpop.f32.mrf.mxu1 }
 0xb29   :  { %v1252_v34 = vpop.f32.mrf.mxu1 }
 0xb2b   :  { %v5602_v35 = vpop.f32.mrf.mxu1 }
 0xbcc   :  { %v1297_v36 = vpop.f32.mrf.mxu0 }
 0xbcd   :  { %v5275_v37 = vpack.c.bf16 %v1297_v36, %v1249_v25  ;;  %v6712_v25 = vrot.slane %v6443_v16, %v1398_v27 }
 0xbce   :  { %v5607_v38 = vpop.f32.mrf.mxu0 }
 0xbcf   :  { %5612 = vmatmul.mubr.msk.bf16.vlgmr.msra.gmra.mxu1 %vm262_vm2, %v5275_v37 }
 0xbd0   :  { %v1300_v39 = vpop.f32.mrf.mxu0  ;;  %5625 = vmatprep.mubr.msk.bf16.mxu1 %vm6350_vm0, %v6349_v0 }
 0xbd2   :  { %v5608_v5 = vpop.f32.mrf.mxu0 }
 0xc8f   :  { %v1350_v41 = vpop.f32.mrf.mxu1 }
 0xc90   :  { %v1357_v7 = vadd.f32 %v1350_v41, %v6629_v54 }
 0xc91   :  { %v5613_v43 = vpop.f32.mrf.mxu1 }
 0xc92   :  { %v1359_v45 = vadd.f32 %v1357_v7, %v6416_v3 }
 0xc93   :  { %v1353_v47 = vpop.f32.mrf.mxu1 }
 0xc94   :  { %v1358_v48 = vadd.f32 %v1353_v47, %v6633_v58  ;;  %v1361_v49 = vadd.f32 %v1359_v45, %v6668_v42 }
 0xc95   :  { %v5614_v50 = vpop.f32.mrf.mxu1 }
 0xc96   :  { %v1360_v51 = vadd.f32 %v1358_v48, %v6418_v4  ;;  %v1363_v52 = vsel %vm153_vm1, %v1361_v49, 0.0 }
 0xc97   :  { %1364 = vadd.xlane.f32.xlu1 %v1363_v52 }
 0xc98   :  { %v1362_v53 = vadd.f32 %v1360_v51, %v6668_v42 }
 0xc9a   :  { %v1366_v54 = vsel %vm153_vm1, %v1362_v53, 0.0 }
 0xc9b   :  { %1367 = vadd.xlane.f32.xlu0 %v1366_v54 }
 0xd20   :  { %v1365_v55 = vpop.xlane.xlu1 %1364 }
 0xd21   :  { %v1370_v56 = vmul.f32 0.03125, %v1365_v55 }
 0xd23   :  { %v1372_v57 = vsub.f32 %v1361_v49, %v1370_v56 }
 0xd24   :  { %v1368_v3 = vpop.xlane.xlu0 %1367 }
 0xd25   :  { %v1371_v59 = vmul.f32 0.03125, %v1368_v3  ;;  %v1374_v60 = vmul.f32 %v1372_v57, %v1372_v57 }
 0xd27   :  { %v1373_v58 = vsub.f32 %v1362_v53, %v1371_v59  ;;  %v1376_v61 = vsel %vm153_vm1, %v1374_v60, 0.0 }
 0xd28   :  { %1377 = vadd.xlane.f32.xlu1 %v1376_v61 }
 0xd29   :  { %v1375_v62 = vmul.f32 %v1373_v58, %v1373_v58 }
 0xd2b   :  { %v1379_v4 = vsel %vm153_vm1, %v1375_v62, 0.0 }
 0xd2c   :  { %1380 = vadd.xlane.f32.xlu0 %v1379_v4 }
 0xd39   :  { %150 = vrot.lane.b32.xlu1 %v6683_v2, %s6351_s2 }
 0xdb1   :  { %v1378_v28 = vpop.xlane.xlu1 %1377 }
 0xdb2   :  { %v1382_v44 = vmul.f32 0.03125, %v1378_v28 }
 0xdb4   :  { %v1384_v6 = vadd.f32 1e-05, %v1382_v44 }
 0xdb5   :  { %v151_v32 = vpop.permute.xlu1 %150  ;;  %v1381_v46 = vpop.xlane.xlu0 %1380 }
 0xdb6   :  { %6102 = vrsqrt.f32 %v1384_v6  ;;  %v192_v8 = vadd.f32 %v6460_v26, %v151_v32  ;;  %v1383_v9 = vmul.f32 0.03125, %v1381_v46  ;;  %v195_v13 = vadd.f32 %v6463_v30, %v151_v32 }
 0xdb8   :  { %v6688_v11 = vpack.c.bf16 %v192_v8, %v192_v8  ;;  %v1385_v12 = vadd.f32 1e-05, %v1383_v9  ;;  %v6701_v26 = vpack.c.bf16 %v195_v13, %v195_v13 }
 0xdba   :  { %6104 = vrsqrt.f32 %v1385_v12  ;;  %1568 = vrot.lane.b32.xlu1 %v6688_v11, %s6351_s2  ;;  %v6694_v21 = vsel %vm262_vm2, %v6688_v11, 0  ;;  %v6726_v37 = vsel %vm262_vm2, %v6701_v26, 0 }
 0xdbb   :  { %5624 = vmatpush3.bf16.xpose.msra.mxu1 %v6694_v21 }
 0xdbc   :  { %5635 = vmatprep.subr.bf16.mxu1 %v6349_v0 }
 0xdbe   :  { %1670 = vrot.lane.b32.xlu1 %v6688_v11, %s6353_s11 }
 0xdc2   :  { %1721 = vrot.lane.b32.xlu1 %v6701_v26, %s6353_s11 }
 0xdc3   :  { %v6103_v20 = vpop.eup %6102 }
 0xdc4   :  { %v1388_v23 = vmul.f32 %v6103_v20, %v1372_v57 }
 0xdc6   :  { %v1394_v31 = vmul.f32 %v6707_v24, %v1388_v23 }
 0xdc7   :  { %v6105_v30 = vpop.eup %6104 }
 0xdc8   :  { %v1389_v29 = vmul.f32 %v6105_v30, %v1373_v58  ;;  %v6716_v34 = vadd.f32 %v6712_v25, %v1394_v31 }
 0xdca   :  { %v1395_v33 = vmul.f32 %v6707_v24, %v1389_v29 }
 0xdcc   :  { %v6719_v35 = vadd.f32 %v6712_v25, %v1395_v33 }
 0xdce   :  { %v1402_v36 = vpack.c.bf16 %v6719_v35, %v6716_v34 }
 0xdd0   :  { %5620 = vmatmul.mubr.msk.bf16.vlgmr.msra.gmra.mxu0 %vm153_vm1, %v1402_v36 }
 0xdd1   :  { %5630 = vmatpush3.bf16.xpose.msra.mxu0 %v6726_v37  ;;  %5631 = vmatprep.mubr.msk.bf16.mxu0 %vm6350_vm0, %v6349_v0 }
 0xdd2   :  { %5641 = vmatprep.subr.bf16.mxu0 %v6349_v0 }
 0xe2c   :  { %v1569_v39 = vpop.permute.xlu1 %1568 }
 0xe2d   :  { %v6736_v43 = vsel %vm387_vm3, %v1569_v39, 0 }
 0xe30   :  { %v1671_v18 = vpop.permute.xlu1 %1670 }
 0xe31   :  { %v6767_v30 = vsel %vm262_vm2, %v1671_v18, 0 }
 0xe34   :  { %v1722_v31 = vpop.permute.xlu1 %1721 }
 0xe35   :  { %v6775_v36 = vsel %vm262_vm2, %v1722_v31, 0 }
 0xe90   :  { %v1442_v16 = vpop.f32.mrf.mxu0 }
 0xe91   :  { %v1443_v38 = vadd.f32 %v1442_v16, %v6683_v2 }
 0xe92   :  { %v5621_v5 = vpop.f32.mrf.mxu0 }
 0xe93   :  { %v6733_v41 = vpack.c.bf16 %v1443_v38, %v1443_v38 }
 0xe94   :  { %v1445_v7 = vpop.f32.mrf.mxu0 }
 0xe95   :  { %v1446_v45 = vadd.f32 %v1445_v7, %v6683_v2  ;;  %1668 = vrot.lane.b32.xlu1 %v6733_v41, %s6353_s11  ;;  %5626 = vmatmul.mubr.msk.bf16.vlgmr.msra.gmra.mxu1 %vm262_vm2, %v6733_v41 }
 0xe96   :  { %5636 = vmatpush3.bf16.msra.mxu1 %v6736_v43  ;;  %v5622_v47 = vpop.f32.mrf.mxu0  ;;  %5637 = vmatprep.mubr.msk.bf16.mxu1 %vm6350_vm0, %v6349_v0 }
 0xe97   :  { %v6746_v48 = vpack.c.bf16 %v1446_v45, %v1446_v45  ;;  %5647 = vmatprep.subr.bf16.mxu1 %v6349_v0 }
 0xe99   :  { %1719 = vrot.lane.b32.xlu1 %v6746_v48, %s6353_s11  ;;  %5632 = vmatmul.mubr.msk.bf16.vlgmr.msra.gmra.mxu0 %vm262_vm2, %v6746_v48 }
 0xe9a   :  { %5643 = vmatprep.mubr.msk.bf16.mxu0 %vm6350_vm0, %v6349_v0 }
 0xf07   :  { %v1669_v16 = vpop.permute.xlu1 %1668 }
 0xf0b   :  { %v1720_v38 = vpop.permute.xlu1 %1719 }
 0xf55   :  { %v1491_v49 = vpop.f32.mrf.mxu1 }
 0xf56   :  { %v1543_v50 = vsel %vm262_vm2, %v1491_v49, -inf }
 0xf57   :  { %1544 = vmax.xlane.f32.xlu0 %v1543_v50  ;;  %v5627_v51 = vpop.f32.mrf.mxu1 }
 0xf59   :  { %v1494_v52 = vpop.f32.mrf.mxu1  ;;  %v1537_v53 = vpop.f32.mrf.mxu0 }
 0xf5a   :  { %v1546_v54 = vsel %vm262_vm2, %v1537_v53, -inf }
 0xf5b   :  { %v5633_v55 = vpop.f32.mrf.mxu0  ;;  %1547 = vmax.xlane.f32.xlu0 %v1546_v54  ;;  %v5628_v56 = vpop.f32.mrf.mxu1 }
 0xf5d   :  { %v1540_v57 = vpop.f32.mrf.mxu0 }
 0xf5f   :  { %v5634_v3 = vpop.f32.mrf.mxu0 }
 0xfe0   :  { %v1545_v59 = vpop.xlane.xlu0 %1544 }
 0xfe1   :  { %v1549_v60 = vsub.f32 %v1491_v49, %v1545_v59 }
 0xfe3   :  { %v1551_v58 = vmul.f32 1.442695, %v1549_v60 }
 0xfe4   :  { %v1548_v61 = vpop.xlane.xlu0 %1547 }
 0xfe5   :  { %6106 = vpow2.f32 %v1551_v58  ;;  %v1550_v62 = vsub.f32 %v1537_v53, %v1548_v61 }
 0xfe7   :  { %v1553_v4 = vmul.f32 1.442695, %v1550_v62 }
 0xfe9   :  { %6108 = vpow2.f32 %v1553_v4 }
 0xff2   :  { %v6107_v28 = vpop.eup %6106 }
 0xff3   :  { %v1555_v44 = vsel %vm262_vm2, %v6107_v28, 0.0 }
 0xff4   :  { %1556 = vadd.xlane.f32.xlu0 %v1555_v44 }
 0xff6   :  { %v6109_v6 = vpop.eup %6108 }
 0xff7   :  { %v1558_v32 = vsel %vm262_vm2, %v6109_v6, 0.0 }
 0xff8   :  { %1559 = vadd.xlane.f32.xlu0 %v1558_v32 }
0x100e   :  { %1617 = vrot.lane.b32.xlu0 %v6701_v26, %s6351_s2 }
0x107d   :  { %v1557_v46 = vpop.xlane.xlu0 %1556 }
0x107e   :  { %6110 = vrcp.f32 %v1557_v46 }
0x1081   :  { %v1560_v8 = vpop.xlane.xlu0 %1559 }
0x1082   :  { %6112 = vrcp.f32 %v1560_v8 }
0x1085   :  { %v1618_v9 = vpop.permute.xlu0 %1617 }
0x1086   :  { %v6762_v12 = vsel %vm387_vm3, %v1618_v9, 0 }
0x1087   :  { %5642 = vmatpush3.bf16.msra.mxu0 %v6762_v12 }
0x1088   :  { %5653 = vmatprep.subr.bf16.mxu0 %v6349_v0 }
0x108b   :  { %v6111_v13 = vpop.eup %6110 }
0x108c   :  { %v1563_v20 = vmul.f32 %v6111_v13, %v6107_v28 }
0x108e   :  { %v1565_v23 = vpack.c.bf16 %v1563_v20, %v1563_v20 }
0x108f   :  { %v6113_v27 = vpop.eup %6112 }
0x1090   :  { %5638 = vmatmul.mubr.msk.bf16.vlgmr.msra.gmra.mxu1 %vm262_vm2, %v1565_v23  ;;  %v1564_v29 = vmul.f32 %v6113_v27, %v6109_v6 }
0x1091   :  { %5648 = vmatpush3.bf16.xpose.msra.mxu1 %v6767_v30  ;;  %5649 = vmatprep.mubr.msk.bf16.mxu1 %vm6350_vm0, %v6349_v0 }
0x1092   :  { %v1566_v33 = vpack.c.bf16 %v1564_v29, %v1564_v29  ;;  %5659 = vmatprep.subr.bf16.mxu1 %v6349_v0 }
0x1094   :  { %5644 = vmatmul.mubr.msk.bf16.vlgmr.msra.gmra.mxu0 %vm262_vm2, %v1566_v33 }
0x1095   :  { %5654 = vmatpush3.bf16.xpose.msra.mxu0 %v6775_v36  ;;  %5655 = vmatprep.mubr.msk.bf16.mxu0 %vm6350_vm0, %v6349_v0 }
0x1096   :  { %5665 = vmatprep.subr.bf16.mxu0 %v6349_v0 }
0x1098   :  { %5650 = vmatmul.mubr.msk.bf16.vlgmr.msra.gmra.mxu1 %vm262_vm2, %v1669_v16 }
0x1099   :  { %5661 = vmatprep.mubr.msk.bf16.mxu1 %vm6350_vm0, %v6349_v0 }
0x109c   :  { %5656 = vmatmul.mubr.msk.bf16.vlgmr.msra.gmra.mxu0 %vm262_vm2, %v1720_v38 }
0x109d   :  { %5667 = vmatprep.mubr.msk.bf16.mxu0 %vm6350_vm0, %v6349_v0 }
0x1150   :  { %v6788_v39 = vpop.f32.mrf.mxu1 }
0x1152   :  { %v5639_v5 = vpop.f32.mrf.mxu1 }
0x1154   :  { %v1613_v7 = vpop.f32.mrf.mxu1  ;;  %v6790_v45 = vpop.f32.mrf.mxu0 }
0x1155   :  { %v5277_v47 = vpack.c.bf16 %v6790_v45, %v6788_v39  ;;  %v91_v7 = vld [vmem:[#allocation7 + $0x30] sm:$0xf] }
0x1156   :  { %v5640_v49 = vpop.f32.mrf.mxu1  ;;  %v5645_v50 = vpop.f32.mrf.mxu0 }
0x1158   :  { %v1662_v51 = vpop.f32.mrf.mxu0  ;;  %v1712_v52 = vpop.f32.mrf.mxu1 }
0x1159   :  { %v1769_v53 = vsel %vm262_vm2, %v1712_v52, -inf  ;;  %v6824_v51 = vsel %vm387_vm3, %v91_v7, 0 }
0x115a   :  { %v5646_v54 = vpop.f32.mrf.mxu0  ;;  %1770 = vmax.xlane.f32.xlu1 %v1769_v53  ;;  %v5651_v55 = vpop.f32.mrf.mxu1 }
0x115b   :  { %v92_v55 = vld [vmem:[#allocation7 + $0x34] sm:$0xf] }
0x115c   :  { %v1715_v56 = vpop.f32.mrf.mxu1  ;;  %v1763_v57 = vpop.f32.mrf.mxu0 }
0x115d   :  { %v1772_v3 = vsel %vm262_vm2, %v1763_v57, -inf  ;;  %v6846_v56 = vsel %vm387_vm3, %v92_v55, 0 }
0x115e   :  { %1773 = vmax.xlane.f32.xlu0 %v1772_v3  ;;  %v5652_v59 = vpop.f32.mrf.mxu1  ;;  %v5657_v60 = vpop.f32.mrf.mxu0 }
0x1160   :  { %v1766_v58 = vpop.f32.mrf.mxu0 }
0x1162   :  { %v5658_v61 = vpop.f32.mrf.mxu0 }
0x11e3   :  { %v1771_v62 = vpop.xlane.xlu1 %1770 }
0x11e4   :  { %v1775_v4 = vsub.f32 %v1712_v52, %v1771_v62 }
0x11e6   :  { %v1777_v28 = vmul.f32 1.442695, %v1775_v4 }
0x11e7   :  { %v1774_v44 = vpop.xlane.xlu0 %1773 }
0x11e8   :  { %6114 = vpow2.f32 %v1777_v28  ;;  %v1776_v6 = vsub.f32 %v1763_v57, %v1774_v44 }
0x11ea   :  { %v1779_v32 = vmul.f32 1.442695, %v1776_v6 }
0x11ec   :  { %6116 = vpow2.f32 %v1779_v32 }
0x11f5   :  { %v6115_v46 = vpop.eup %6114 }
0x11f6   :  { %v1781_v8 = vsel %vm262_vm2, %v6115_v46, 0.0 }
0x11f7   :  { %1782 = vadd.xlane.f32.xlu0 %v1781_v8 }
0x11f9   :  { %v6117_v9 = vpop.eup %6116 }
0x11fa   :  { %v1784_v13 = vsel %vm262_vm2, %v6117_v9, 0.0 }
0x11fb   :  { %1785 = vadd.xlane.f32.xlu1 %v1784_v13 }
0x120c   :  { %1841 = vrot.lane.b32.xlu1 %v6701_v26, %s6352_s3 }
0x120d   :  { %1793 = vrot.lane.b32.xlu0 %v6688_v11, %s6352_s3 }
0x1210   :  { %1997 = vrot.lane.b32.xlu1 %v6688_v11, %s6356_s14 }
0x1211   :  { %2047 = vrot.lane.b32.xlu0 %v6701_v26, %s6356_s14 }
0x1214   :  { %1995 = vrot.lane.b32.xlu1 %v6733_v41, %s6356_s14 }
0x1215   :  { %2045 = vrot.lane.b32.xlu0 %v6746_v48, %s6356_s14 }
0x1280   :  { %v1783_v18 = vpop.xlane.xlu0 %1782 }
0x1281   :  { %6118 = vrcp.f32 %v1783_v18 }
0x1284   :  { %v1794_v20 = vpop.permute.xlu0 %1793  ;;  %v1786_v23 = vpop.xlane.xlu1 %1785 }
0x1285   :  { %v6811_v27 = vsel %vm387_vm3, %v1794_v20, 0  ;;  %6120 = vrcp.f32 %v1786_v23 }
0x1286   :  { %5660 = vmatpush3.bf16.msra.mxu1 %v6811_v27 }
0x1287   :  { %5671 = vmatprep.subr.bf16.mxu1 %v6349_v0 }
0x1288   :  { %v1842_v29 = vpop.permute.xlu1 %1841  ;;  %v2048_v52 = vpop.permute.xlu0 %2047 }
0x1289   :  { %v6816_v31 = vsel %vm387_vm3, %v1842_v29, 0  ;;  %v6832_v53 = vsel %vm262_vm2, %v2048_v52, 0 }
0x128a   :  { %5666 = vmatpush3.bf16.msra.mxu0 %v6816_v31 }
0x128b   :  { %5677 = vmatprep.subr.bf16.mxu0 %v6349_v0 }
0x128c   :  { %v2046_v54 = vpop.permute.xlu0 %2045 }
0x128e   :  { %v6119_v33 = vpop.eup %6118 }
0x128f   :  { %v1789_v16 = vmul.f32 %v6119_v33, %v6115_v46 }
0x1291   :  { %v1791_v38 = vpack.c.bf16 %v1789_v16, %v1789_v16 }
0x1292   :  { %v6121_v5 = vpop.eup %6120 }
0x1293   :  { %5662 = vmatmul.mubr.msk.bf16.vlgmr.msra.gmra.mxu1 %vm262_vm2, %v1791_v38  ;;  %v1790_v49 = vmul.f32 %v6121_v5, %v6117_v9 }
0x1294   :  { %5673 = vmatprep.mubr.msk.bf16.mxu1 %vm6350_vm0, %v6349_v0  ;;  %5672 = vmatpush3.bf16.msra.mxu1 %v6846_v56 }
0x1295   :  { %v1792_v50 = vpack.c.bf16 %v1790_v49, %v1790_v49  ;;  %5683 = vmatprep.subr.bf16.mxu1 %v6349_v0 }
0x1297   :  { %5668 = vmatmul.mubr.msk.bf16.vlgmr.msra.gmra.mxu0 %vm262_vm2, %v1792_v50 }
0x1298   :  { %5678 = vmatpush3.bf16.msra.mxu0 %v6824_v51  ;;  %5679 = vmatprep.mubr.msk.bf16.mxu0 %vm6350_vm0, %v6349_v0 }
0x1299   :  { %5689 = vmatprep.subr.bf16.mxu0 %v6349_v0 }
0x129f   :  { %5680 = vmatmul.mubr.msk.bf16.vlgmr.msra.gmra.mxu0 %vm262_vm2, %v5277_v47  ;;  %v1998_v47 = vpop.permute.xlu1 %1997 }
0x12a0   :  { %5690 = vmatpush3.bf16.xpose.msra.mxu0 %v6832_v53  ;;  %5691 = vmatprep.mubr.msk.bf16.mxu0 %vm6350_vm0, %v6349_v0  ;;  %v6851_v61 = vsel %vm262_vm2, %v1998_v47, 0 }
0x12a1   :  { %5701 = vmatprep.subr.bf16.mxu0 %v6349_v0 }
0x12a3   :  { %v1996_v44 = vpop.permute.xlu1 %1995 }
0x12a7   :  { %5692 = vmatmul.mubr.msk.bf16.vlgmr.msra.gmra.mxu0 %vm262_vm2, %v2046_v54 }
0x12a8   :  { %5703 = vmatprep.mubr.msk.bf16.mxu0 %vm6350_vm0, %v6349_v0 }
0x1353   :  { %v1835_v39 = vpop.f32.mrf.mxu1 }
0x1355   :  { %v5663_v45 = vpop.f32.mrf.mxu1 }
0x1357   :  { %v1838_v57 = vpop.f32.mrf.mxu1  ;;  %v1883_v3 = vpop.f32.mrf.mxu0 }
0x1358   :  { %v5276_v59 = vpack.c.bf16 %v1883_v3, %v1835_v39 }
0x1359   :  { %v5664_v60 = vpop.f32.mrf.mxu1  ;;  %v5669_v58 = vpop.f32.mrf.mxu0 }
0x135a   :  { %5674 = vmatmul.mubr.msk.bf16.vlgmr.msra.gmra.mxu1 %vm262_vm2, %v5276_v59 }
0x135b   :  { %5684 = vmatpush3.bf16.xpose.msra.mxu1 %v6851_v61  ;;  %v1886_v62 = vpop.f32.mrf.mxu0  ;;  %5685 = vmatprep.mubr.msk.bf16.mxu1 %vm6350_vm0, %v6349_v0 }
0x135c   :  { %5695 = vmatprep.subr.bf16.mxu1 %v6349_v0 }
0x135d   :  { %v5670_v4 = vpop.f32.mrf.mxu0 }
0x135f   :  { %v6858_v28 = vpop.f32.mrf.mxu0 }
0x1361   :  { %v5681_v6 = vpop.f32.mrf.mxu0 }
0x1362   :  { %5686 = vmatmul.mubr.msk.bf16.vlgmr.msra.gmra.mxu1 %vm262_vm2, %v1996_v44 }
0x1363   :  { %v6861_v32 = vpop.f32.mrf.mxu0  ;;  %5697 = vmatprep.mubr.msk.bf16.mxu1 %vm6350_vm0, %v6349_v0 }
0x1365   :  { %v5682_v46 = vpop.f32.mrf.mxu0 }
0x1367   :  { %v2089_v8 = vpop.f32.mrf.mxu0 }
0x1368   :  { %v2098_v9 = vsel %vm262_vm2, %v2089_v8, -inf }
0x1369   :  { %2099 = vmax.xlane.f32.xlu0 %v2098_v9  ;;  %v5693_v13 = vpop.f32.mrf.mxu0 }
0x136b   :  { %v2092_v18 = vpop.f32.mrf.mxu0 }
0x136d   :  { %v5694_v20 = vpop.f32.mrf.mxu0 }
0x13f2   :  { %v2100_v23 = vpop.xlane.xlu0 %2099 }
0x13f3   :  { %v2102_v29 = vsub.f32 %v2089_v8, %v2100_v23 }
0x13f5   :  { %v2105_v33 = vmul.f32 1.442695, %v2102_v29 }
0x13f7   :  { %6122 = vpow2.f32 %v2105_v33 }
0x1404   :  { %v6123_v52 = vpop.eup %6122 }
0x1405   :  { %v2110_v39 = vsel %vm262_vm2, %v6123_v52, 0.0 }
0x141a   :  { %v6866_v16 = vpop.f32.mrf.mxu1 }
0x141c   :  { %v5675_v38 = vpop.f32.mrf.mxu1 }
0x141e   :  { %v6868_v5 = vpop.f32.mrf.mxu1 }
0x1420   :  { %v5676_v7 = vpop.f32.mrf.mxu1 }
0x1422   :  { %v2039_v49 = vpop.f32.mrf.mxu1 }
0x1423   :  { %v2095_v50 = vsel %vm262_vm2, %v2039_v49, -inf }
0x1424   :  { %2096 = vmax.xlane.f32.xlu1 %v2095_v50  ;;  %v5687_v54 = vpop.f32.mrf.mxu1 }
0x1426   :  { %v2042_v55 = vpop.f32.mrf.mxu1 }
0x1428   :  { %2111 = vadd.xlane.f32.xlu1 %v2110_v39  ;;  %v5688_v45 = vpop.f32.mrf.mxu1 }
0x1429   :  { %v93_v45 = vld [vmem:[#allocation7 + $0x38] sm:$0xf] }
0x1439   :  { %2167 = vrot.lane.b32.xlu1 %v6701_v26, %s6355_s13 }
0x143d   :  { %2273 = vrot.lane.b32.xlu1 %v6688_v11, %s6359_s17 }
0x1441   :  { %2271 = vrot.lane.b32.xlu1 %v6733_v41, %s6359_s17 }
0x14ad   :  { %v2097_v47 = vpop.xlane.xlu1 %2096 }
0x14ae   :  { %v2101_v57 = vsub.f32 %v2039_v49, %v2097_v47  ;;  %v6911_v47 = vsel %vm387_vm3, %v93_v45, 0 }
0x14b0   :  { %v2103_v3 = vmul.f32 1.442695, %v2101_v57 }
0x14b1   :  { %v2112_v59 = vpop.xlane.xlu1 %2111 }
0x14b2   :  { %6124 = vpow2.f32 %v2103_v3 }
0x14b3   :  { %6126 = vrcp.f32 %v2112_v59 }
0x14b5   :  { %v2168_v60 = vpop.permute.xlu1 %2167 }
0x14b6   :  { %v6879_v58 = vsel %vm387_vm3, %v2168_v60, 0 }
0x14b7   :  { %5702 = vmatpush3.bf16.msra.mxu0 %v6879_v58 }
0x14b8   :  { %5713 = vmatprep.subr.bf16.mxu0 %v6349_v0 }
0x14b9   :  { %v2274_v6 = vpop.permute.xlu1 %2273 }
0x14ba   :  { %v6885_v8 = vsel %vm262_vm2, %v2274_v6, 0 }
0x14bd   :  { %v2272_v9 = vpop.permute.xlu1 %2271 }
0x14bf   :  { %v6125_v62 = vpop.eup %6124 }
0x14c0   :  { %v6127_v4 = vpop.eup %6126  ;;  %v2107_v44 = vsel %vm262_vm2, %v6125_v62, 0.0 }
0x14c1   :  { %2108 = vadd.xlane.f32.xlu0 %v2107_v44  ;;  %v2116_v41 = vmul.f32 %v6127_v4, %v6123_v52 }
0x14c3   :  { %v2118_v46 = vpack.c.bf16 %v2116_v41, %v2116_v41 }
0x14c5   :  { %5704 = vmatmul.mubr.msk.bf16.vlgmr.msra.gmra.mxu0 %vm262_vm2, %v2118_v46 }
0x14c6   :  { %5714 = vmatpush3.bf16.xpose.msra.mxu0 %v6885_v8  ;;  %5715 = vmatprep.mubr.msk.bf16.mxu0 %vm6350_vm0, %v6349_v0 }
0x14c7   :  { %5725 = vmatprep.subr.bf16.mxu0 %v6349_v0 }
0x14cd   :  { %5716 = vmatmul.mubr.msk.bf16.vlgmr.msra.gmra.mxu0 %vm262_vm2, %v2272_v9 }
0x14ce   :  { %5727 = vmatprep.mubr.msk.bf16.mxu0 %vm6350_vm0, %v6349_v0 }
0x14d7   :  { %2119 = vrot.lane.b32.xlu0 %v6688_v11, %s6355_s13 }
0x14db   :  { %2323 = vrot.lane.b32.xlu0 %v6701_v26, %s6359_s17 }
0x14df   :  { %2321 = vrot.lane.b32.xlu0 %v6746_v48, %s6359_s17 }
0x154a   :  { %v2109_v13 = vpop.xlane.xlu0 %2108 }
0x154b   :  { %6128 = vrcp.f32 %v2109_v13  ;;  %v1989_v13 = vadd.f32 %v6858_v28, %v6866_v16 }
0x154e   :  { %v2120_v18 = vpop.permute.xlu0 %2119 }
0x154f   :  { %v6902_v20 = vsel %vm387_vm3, %v2120_v18, 0 }
0x1550   :  { %5696 = vmatpush3.bf16.msra.mxu1 %v6902_v20 }
0x1551   :  { %5707 = vmatprep.subr.bf16.mxu1 %v6349_v0 }
0x1552   :  { %v2324_v57 = vpop.permute.xlu0 %2323 }
0x1556   :  { %v2322_v41 = vpop.permute.xlu0 %2321 }
0x1558   :  { %v6129_v23 = vpop.eup %6128 }
0x1559   :  { %v2115_v29 = vmul.f32 %v6129_v23, %v6125_v62  ;;  %v6916_v62 = vsel %vm262_vm2, %v2324_v57, 0 }
0x155b   :  { %v2117_v33 = vpack.c.bf16 %v2115_v29, %v2115_v29 }
0x155d   :  { %5698 = vmatmul.mubr.msk.bf16.vlgmr.msra.gmra.mxu1 %vm262_vm2, %v2117_v33  ;;  %v1992_v33 = vadd.f32 %v6861_v32, %v6868_v5 }
0x155e   :  { %5709 = vmatprep.mubr.msk.bf16.mxu1 %vm6350_vm0, %v6349_v0  ;;  %5708 = vmatpush3.bf16.msra.mxu1 %v6911_v47 }
0x155f   :  { %5719 = vmatprep.subr.bf16.mxu1 %v6349_v0 }
0x1585   :  { %v2209_v38 = vpop.f32.mrf.mxu0 }
0x1587   :  { %v5705_v48 = vpop.f32.mrf.mxu0 }
0x1589   :  { %v2212_v7 = vpop.f32.mrf.mxu0 }
0x158b   :  { %v5706_v49 = vpop.f32.mrf.mxu0 }
0x158d   :  { %v2315_v50 = vpop.f32.mrf.mxu0 }
0x158e   :  { %v2371_v52 = vsel %vm262_vm2, %v2315_v50, -inf }
0x158f   :  { %2372 = vmax.xlane.f32.xlu1 %v2371_v52  ;;  %v5717_v54 = vpop.f32.mrf.mxu0 }
0x1591   :  { %v2318_v55 = vpop.f32.mrf.mxu0 }
0x1593   :  { %v5718_v39 = vpop.f32.mrf.mxu0 }
0x1618   :  { %v2373_v6 = vpop.xlane.xlu1 %2372 }
0x1619   :  { %v2377_v46 = vsub.f32 %v2315_v50, %v2373_v6 }
0x161b   :  { %v2379_v9 = vmul.f32 1.442695, %v2377_v46 }
0x161d   :  { %v2161_v3 = vpop.f32.mrf.mxu1  ;;  %6130 = vpow2.f32 %v2379_v9 }
0x161e   :  { %v5278_v59 = vpack.c.bf16 %v2209_v38, %v2161_v3 }
0x161f   :  { %v5699_v60 = vpop.f32.mrf.mxu1 }
0x1620   :  { %5710 = vmatmul.mubr.msk.bf16.vlgmr.msra.gmra.mxu1 %vm262_vm2, %v5278_v59 }
0x1621   :  { %5720 = vmatpush3.bf16.xpose.msra.mxu1 %v6916_v62  ;;  %v2164_v4 = vpop.f32.mrf.mxu1  ;;  %5721 = vmatprep.mubr.msk.bf16.mxu1 %vm6350_vm0, %v6349_v0 }
0x1622   :  { %5731 = vmatprep.subr.bf16.mxu1 %v6349_v0 }
0x1623   :  { %v5700_v44 = vpop.f32.mrf.mxu1 }
0x1628   :  { %5722 = vmatmul.mubr.msk.bf16.vlgmr.msra.gmra.mxu1 %vm262_vm2, %v2322_v41  ;;  %v94_v41 = vld [vmem:[#allocation7 + $0x3c] sm:$0xf] }
0x1629   :  { %5733 = vmatprep.mubr.msk.bf16.mxu1 %vm6350_vm0, %v6349_v0  ;;  %v6950_v6 = vsel %vm387_vm3, %v94_v41, 0 }
0x162a   :  { %v6131_v50 = vpop.eup %6130 }
0x162b   :  { %v2383_v28 = vsel %vm262_vm2, %v6131_v50, 0.0 }
0x16e0   :  { %v2262_v18 = vpop.f32.mrf.mxu1 }
0x16e1   :  { %v6928_v23 = vadd.f32 %v2262_v18, %v1989_v13 }
0x16e2   :  { %v5711_v29 = vpop.f32.mrf.mxu1 }
0x16e4   :  { %v2265_v38 = vpop.f32.mrf.mxu1 }
0x16e5   :  { %v6932_v48 = vadd.f32 %v2265_v38, %v1992_v33 }
0x16e6   :  { %v5712_v7 = vpop.f32.mrf.mxu1 }
0x16e8   :  { %v2365_v49 = vpop.f32.mrf.mxu1 }
0x16e9   :  { %v2374_v52 = vsel %vm262_vm2, %v2365_v49, -inf }
0x16ea   :  { %2375 = vmax.xlane.f32.xlu0 %v2374_v52  ;;  %v5723_v54 = vpop.f32.mrf.mxu1 }
0x16ec   :  { %v2368_v55 = vpop.f32.mrf.mxu1 }
0x16ee   :  { %2384 = vadd.xlane.f32.xlu0 %v2383_v28  ;;  %v5724_v16 = vpop.f32.mrf.mxu1 }
0x16ef   :  { %v123_v16 = vsub.s32 3, %v6440_v14 }
0x1704   :  { %2395 = vrot.lane.b32.xlu0 %v6688_v11, %s6358_s16 }
0x1773   :  { %v2376_v39 = vpop.xlane.xlu0 %2375 }
0x1774   :  { %v2378_v32 = vsub.f32 %v2365_v49, %v2376_v39 }
0x1776   :  { %v2381_v5 = vmul.f32 1.442695, %v2378_v32 }
0x1777   :  { %v2385_v45 = vpop.xlane.xlu0 %2384 }
0x1778   :  { %6132 = vpow2.f32 %v2381_v5  ;;  %v6967_v5 = vld [vmem:[#allocation8] sm:$0xff] }
0x1779   :  { %6134 = vrcp.f32 %v2385_v45  ;;  %v6972_v45 = vrot.slane %v6967_v5, %v123_v16 }
0x177b   :  { %v2396_v57 = vpop.permute.xlu0 %2395 }
0x177c   :  { %v6939_v3 = vsel %vm387_vm3, %v2396_v57, 0 }
0x177d   :  { %5726 = vmatpush3.bf16.msra.mxu0 %v6939_v3 }
0x177e   :  { %5737 = vmatprep.subr.bf16.mxu0 %v6349_v0 }
0x1785   :  { %v6133_v59 = vpop.eup %6132 }
0x1786   :  { %v6135_v60 = vpop.eup %6134  ;;  %v2386_v4 = vsel %vm262_vm2, %v6133_v59, 0.0 }
0x1787   :  { %2387 = vadd.xlane.f32.xlu1 %v2386_v4  ;;  %v2391_v11 = vmul.f32 %v6135_v60, %v6131_v50 }
0x1789   :  { %v2393_v44 = vpack.c.bf16 %v2391_v11, %v2391_v11 }
0x178b   :  { %5728 = vmatmul.mubr.msk.bf16.vlgmr.msra.gmra.mxu0 %vm262_vm2, %v2393_v44 }
0x178c   :  { %5739 = vmatprep.mubr.msk.bf16.mxu0 %vm6350_vm0, %v6349_v0  ;;  %5738 = vmatpush3.bf16.msra.mxu0 %v6950_v6 }
0x178d   :  { %5751 = vmatprep.subr.bf16.mxu0 %v6349_v0 }
0x1798   :  { %2443 = vrot.lane.b32.xlu1 %v6701_v26, %s6358_s16 }
0x1810   :  { %v2388_v46 = vpop.xlane.xlu1 %2387 }
0x1811   :  { %6136 = vrcp.f32 %v2388_v46 }
0x1814   :  { %v2444_v9 = vpop.permute.xlu1 %2443 }
0x1815   :  { %v6955_v13 = vsel %vm387_vm3, %v2444_v9, 0 }
0x1816   :  { %5732 = vmatpush3.bf16.msra.mxu1 %v6955_v13 }
0x1817   :  { %5743 = vmatprep.subr.bf16.mxu1 %v6349_v0 }
0x181e   :  { %v6137_v18 = vpop.eup %6136 }
0x181f   :  { %v2392_v26 = vmul.f32 %v6137_v18, %v6133_v59 }
0x1821   :  { %v2394_v29 = vpack.c.bf16 %v2392_v26, %v2392_v26 }
0x1823   :  { %5734 = vmatmul.mubr.msk.bf16.vlgmr.msra.gmra.mxu1 %vm262_vm2, %v2394_v29 }
0x1824   :  { %5747 = vmatprep.mubr.msk.bf16.mxu1 %vm6350_vm0, %v6349_v0 }
0x184b   :  { %v2437_v33 = vpop.f32.mrf.mxu0 }
0x184d   :  { %v5729_v38 = vpop.f32.mrf.mxu0 }
0x184f   :  { %v2440_v7 = vpop.f32.mrf.mxu0 }
0x1851   :  { %v5730_v49 = vpop.f32.mrf.mxu0 }
0x18e3   :  { %v2485_v52 = vpop.f32.mrf.mxu1 }
0x18e4   :  { %v5279_v50 = vpack.c.bf16 %v2485_v52, %v2437_v33  ;;  %v6064_v52 = vld [vmem:[#allocation7 + $0x48] sm:$0xff]  }
0x18e5   :  { %v5735_v54 = vpop.f32.mrf.mxu1  ;;  %5744 = vmatpush3.bf16.msra.mxu1 %v6064_v52 }
0x18e6   :  { %5740 = vmatmul.mubr.msk.bf16.vlgmr.msra.gmra.mxu0 %vm262_vm2, %v5279_v50  ;;  %v6065_v50 = vld [vmem:[#allocation7 + $0x40] sm:$0xff]   ;;  %5745 = vmatprep.subr.bf16.mxu1 %v6349_v0  ;;  %v6066_v54 = vld [vmem:[#allocation7 + $0x68] sm:$0xff]  }
0x18e7   :  { %v2488_v55 = vpop.f32.mrf.mxu1  ;;  %5759 = vmatprep.mubr.msk.bf16.mxu0 %vm6350_vm0, %v6349_v0  ;;  %5752 = vmatpush3.bf16.msra.mxu0 %v6066_v54 }
0x18e8   :  { %5753 = vmatprep.subr.bf16.mxu0 %v6349_v0 }
0x18e9   :  { %v5736_v28 = vpop.f32.mrf.mxu1  ;;  %5746 = vmatpush3.bf16.msra.mxu1 %v6065_v50 }
0x18ea   :  { %5763 = vmatprep.subr.bf16.mxu1 %v6349_v0 }
0x19a6   :  { %v2538_v39 = vpop.f32.mrf.mxu0 }
0x19a7   :  { %v2545_v32 = vadd.f32 %v2538_v39, %v6928_v23 }
0x19a8   :  { %v5741_v57 = vpop.f32.mrf.mxu0 }
0x19a9   :  { %v2547_v59 = vadd.f32 %v2545_v32, %v6716_v34 }
0x19aa   :  { %v2541_v60 = vpop.f32.mrf.mxu0 }
0x19ab   :  { %v2546_v4 = vadd.f32 %v2541_v60, %v6932_v48  ;;  %v2549_v11 = vadd.f32 %v2547_v59, %v6972_v45  ;;  %v6986_v60 = vld [vmem:[#allocation8 + $0x8] sm:$0xf] }
0x19ac   :  { %v5742_v44 = vpop.f32.mrf.mxu0 }
0x19ad   :  { %v2548_v41 = vadd.f32 %v2546_v4, %v6719_v35  ;;  %v2551_v23 = vsel %vm153_vm1, %v2549_v11, 0.0 }
0x19ae   :  { %2552 = vadd.xlane.f32.xlu1 %v2551_v23  ;;  %v6996_v23 = vrot.slane %v6986_v60, %v115_v40  ;;  %v6224_v40 = vld [vmem:[#allocation7] sm:$0xff]  }
0x19af   :  { %v2550_v46 = vadd.f32 %v2548_v41, %v6972_v45 }
0x19b1   :  { %v2554_v9 = vsel %vm153_vm1, %v2550_v46, 0.0 }
0x19b2   :  { %2555 = vadd.xlane.f32.xlu0 %v2554_v9 }
0x1a37   :  { %v2553_v18 = vpop.xlane.xlu1 %2552 }
0x1a38   :  { %v2557_v26 = vmul.f32 0.03125, %v2553_v18 }
0x1a3a   :  { %v2559_v29 = vsub.f32 %v2549_v11, %v2557_v26  ;;  %v6991_v11 = vrot.slane %v6986_v60, %v111_v15  ;;  %v6223_v15 = vld [vmem:[#allocation7 + $0x8] sm:$0xff]  }
0x1a3b   :  { %v2556_v34 = vpop.xlane.xlu0 %2555 }
0x1a3c   :  { %v2558_v33 = vmul.f32 0.03125, %v2556_v34  ;;  %v2561_v38 = vmul.f32 %v2559_v29, %v2559_v29 }
0x1a3e   :  { %v2560_v48 = vsub.f32 %v2550_v46, %v2558_v33  ;;  %v2563_v7 = vsel %vm153_vm1, %v2561_v38, 0.0  ;;  %v6068_v38 = vld [vmem:[#allocation7 + $0x58] sm:$0xff]  }
0x1a3f   :  { %2564 = vadd.xlane.f32.xlu0 %v2563_v7  ;;  %v127_v7 = vsub.s32 4, %v6440_v14 }
0x1a40   :  { %v2562_v49 = vmul.f32 %v2560_v48, %v2560_v48 }
0x1a42   :  { %v2566_v35 = vsel %vm153_vm1, %v2562_v49, 0.0  ;;  %v7012_v49 = vrot.slane %v6967_v5, %v127_v7 }
0x1a43   :  { %2567 = vadd.xlane.f32.xlu1 %v2566_v35 }
0x1ac8   :  { %v2565_v55 = vpop.xlane.xlu0 %2564 }
0x1ac9   :  { %v2569_v28 = vmul.f32 0.03125, %v2565_v55 }
0x1acb   :  { %v2571_v39 = vadd.f32 1e-05, %v2569_v28 }
0x1acc   :  { %v2568_v32 = vpop.xlane.xlu1 %2567 }
0x1acd   :  { %6138 = vrsqrt.f32 %v2571_v39  ;;  %v2570_v57 = vmul.f32 0.03125, %v2568_v32 }
0x1acf   :  { %v2572_v59 = vadd.f32 1e-05, %v2570_v57 }
0x1ad1   :  { %6140 = vrsqrt.f32 %v2572_v59  ;;  %v131_v59 = vsub.s32 5, %v6440_v14 }
0x1ada   :  { %v6139_v4 = vpop.eup %6138 }
0x1adb   :  { %v2575_v44 = vmul.f32 %v6139_v4, %v2559_v29  ;;  %v6067_v29 = vld [vmem:[#allocation7 + $0x60] sm:$0xff]   ;;  %v7021_v4 = vrot.slane %v6967_v5, %v131_v59 }
0x1adc   :  { %5754 = vmatpush3.bf16.msra.mxu0 %v6067_v29 }
0x1add   :  { %v2581_v9 = vmul.f32 %v6991_v11, %v2575_v44  ;;  %5755 = vmatprep.subr.bf16.mxu0 %v6349_v0 }
0x1ade   :  { %v6141_v41 = vpop.eup %6140 }
0x1adf   :  { %v2576_v46 = vmul.f32 %v6141_v41, %v2560_v48  ;;  %v2587_v26 = vadd.f32 %v6996_v23, %v2581_v9  ;;  %v6069_v48 = vld [vmem:[#allocation7 + $0x50] sm:$0xff]  }
0x1ae0   :  { %5756 = vmatpush3.bf16.msra.mxu0 %v6068_v38 }
0x1ae1   :  { %v2582_v18 = vmul.f32 %v6991_v11, %v2576_v46  ;;  %5757 = vmatprep.subr.bf16.mxu0 %v6349_v0 }
0x1ae3   :  { %v2588_v34 = vadd.f32 %v6996_v23, %v2582_v18 }
0x1ae4   :  { %5758 = vmatpush3.bf16.msra.mxu0 %v6069_v48 }
0x1ae5   :  { %v2589_v33 = vpack.c.bf16 %v2588_v34, %v2587_v26  ;;  %5777 = vmatprep.subr.bf16.mxu0 %v6349_v0 }
0x1ae7   :  { %5748 = vmatmul.mubr.msk.bf16.vlgmr.msra.gmra.mxu1 %vm153_vm1, %v2589_v33 }
0x1ae8   :  { %5764 = vmatpush3.bf16.msra.mxu1 %v6223_v15  ;;  %5767 = vmatprep.mubr.msk.bf16.mxu1 %vm6350_vm0, %v6349_v0 }
0x1ae9   :  { %5765 = vmatprep.subr.bf16.mxu1 %v6349_v0 }
0x1aec   :  { %5766 = vmatpush3.bf16.msra.mxu1 %v6224_v40 }
0x1aed   :  { %5771 = vmatprep.subr.bf16.mxu1 %v6349_v0 }
0x1ba7   :  { %v2639_v35 = vpop.f32.mrf.mxu1 }
0x1ba8   :  { %v2640_v50 = vadd.f32 %v2639_v35, %v7012_v49 }
0x1ba9   :  { %v5749_v52 = vpop.f32.mrf.mxu1 }
0x1baa   :  { %v2646_v39 = vmax.f32 %v2640_v50, 0.0 }
0x1bab   :  { %v2642_v54 = vpop.f32.mrf.mxu1 }
0x1bac   :  { %v2643_v55 = vadd.f32 %v2642_v54, %v7012_v49 }
0x1bad   :  { %v5750_v28 = vpop.f32.mrf.mxu1 }
0x1bae   :  { %v2647_v32 = vmax.f32 %v2643_v55, 0.0 }
0x1bb0   :  { %v2648_v57 = vpack.c.bf16 %v2647_v32, %v2646_v39 }
0x1bb2   :  { %5760 = vmatmul.mubr.msk.bf16.vlgmr.msra.gmra.mxu0 %vm2673_vm4, %v2648_v57 }
0x1bb3   :  { %5779 = vmatprep.mubr.msk.bf16.mxu0 %vm6350_vm0, %v6349_v0 }
0x1c72   :  { %v2711_v44 = vpop.f32.mrf.mxu0 }
0x1c73   :  { %v2712_v41 = vadd.f32 %v2711_v44, %v7021_v4 }
0x1c74   :  { %v5761_v46 = vpop.f32.mrf.mxu0 }
0x1c75   :  { %v2718_v9 = vadd.f32 %v2712_v41, %v2587_v26  ;;  %v7032_v46 = vrot.slane %v6986_v60, %v119_v1 }
0x1c76   :  { %v2714_v18 = vpop.f32.mrf.mxu0 }
0x1c77   :  { %v2715_v33 = vadd.f32 %v2714_v18, %v7021_v4  ;;  %v2720_v15 = vsel %vm153_vm1, %v2718_v9, 0.0 }
0x1c78   :  { %2721 = vadd.xlane.f32.xlu0 %v2720_v15  ;;  %v5762_v40 = vpop.f32.mrf.mxu0 }
0x1c79   :  { %v2719_v29 = vadd.f32 %v2715_v33, %v2588_v34  ;;  %v7037_v33 = vrot.slane %v6986_v60, %v123_v16 }
0x1c7b   :  { %v2723_v38 = vsel %vm153_vm1, %v2719_v29, 0.0 }
0x1c7c   :  { %2724 = vadd.xlane.f32.xlu1 %v2723_v38 }
0x1d01   :  { %v2722_v48 = vpop.xlane.xlu0 %2721 }
0x1d02   :  { %v2726_v7 = vmul.f32 0.03125, %v2722_v48 }
0x1d04   :  { %v2728_v5 = vsub.f32 %v2718_v9, %v2726_v7 }
0x1d05   :  { %v2725_v35 = vpop.xlane.xlu1 %2724 }
0x1d06   :  { %v2727_v52 = vmul.f32 0.03125, %v2725_v35  ;;  %v2730_v50 = vmul.f32 %v2728_v5, %v2728_v5 }
0x1d08   :  { %v2729_v54 = vsub.f32 %v2719_v29, %v2727_v52  ;;  %v2732_v26 = vsel %vm153_vm1, %v2730_v50, 0.0 }
0x1d09   :  { %2733 = vadd.xlane.f32.xlu0 %v2732_v26 }
0x1d0a   :  { %v2731_v55 = vmul.f32 %v2729_v54, %v2729_v54 }
0x1d0c   :  { %v2735_v28 = vsel %vm153_vm1, %v2731_v55, 0.0 }
0x1d0d   :  { %2736 = vadd.xlane.f32.xlu1 %v2735_v28 }
0x1d92   :  { %v2734_v39 = vpop.xlane.xlu0 %2733 }
0x1d93   :  { %v2738_v32 = vmul.f32 0.03125, %v2734_v39 }
0x1d95   :  { %v2740_v34 = vadd.f32 1e-05, %v2738_v32 }
0x1d96   :  { %v2737_v57 = vpop.xlane.xlu1 %2736 }
0x1d97   :  { %6142 = vrsqrt.f32 %v2740_v34  ;;  %v2739_v59 = vmul.f32 0.03125, %v2737_v57 }
0x1d99   :  { %v2741_v44 = vadd.f32 1e-05, %v2739_v59 }
0x1d9b   :  { %6144 = vrsqrt.f32 %v2741_v44 }
0x1da4   :  { %v6143_v41 = vpop.eup %6142 }
0x1da5   :  { %v2744_v9 = vmul.f32 %v6143_v41, %v2728_v5 }
0x1da7   :  { %v2750_v40 = vmul.f32 %v7032_v46, %v2744_v9 }
0x1da8   :  { %v6145_v18 = vpop.eup %6144 }
0x1da9   :  { %v2745_v15 = vmul.f32 %v6145_v18, %v2729_v54  ;;  %v7042_v38 = vadd.f32 %v7037_v33, %v2750_v40 }
0x1dab   :  { %v2751_v29 = vmul.f32 %v7032_v46, %v2745_v15 }
0x1dad   :  { %v7045_v48 = vadd.f32 %v7037_v33, %v2751_v29 }
0x1daf   :  { %v2758_v1 = vpack.c.bf16 %v7045_v48, %v7042_v38 }
0x1db1   :  { %5768 = vmatmul.mubr.msk.bf16.vlgmr.msra.gmra.mxu1 %vm153_vm1, %v2758_v1 }
0x1db2   :  { %5773 = vmatprep.mubr.msk.bf16.mxu1 %vm6350_vm0, %v6349_v0 }
0x1e71   :  { %v2796_v14 = vpop.f32.mrf.mxu1 }
0x1e72   :  { %v2797_v16 = vadd.f32 %v2796_v14, %v6448_v17 }
0x1e73   :  { %v5769_v60 = vpop.f32.mrf.mxu1 }
0x1e74   :  { %v7053_v7 = vpack.c.bf16 %v2797_v16, %v2797_v16 }
0x1e75   :  { %v2799_v5 = vpop.f32.mrf.mxu1 }
0x1e76   :  { %v2800_v35 = vadd.f32 %v2799_v5, %v6448_v17  ;;  %2806 = vrot.lane.b32.xlu0 %v7053_v7, %s6351_s2 }
0x1e77   :  { %v5770_v52 = vpop.f32.mrf.mxu1 }
0x1e78   :  { %v7058_v50 = vpack.c.bf16 %v2800_v35, %v2800_v35 }
0x1e7a   :  { %2855 = vrot.lane.b32.xlu1 %v7058_v50, %s6351_s2 }
0x1ee8   :  { %v2807_v54 = vpop.permute.xlu0 %2806 }
0x1ee9   :  { %v2812_v26 = vsel %vm262_vm2, %v2807_v54, 0 }
0x1eea   :  { %5772 = vmatpush3.bf16.xpose.msra.mxu1 %v2812_v26 }
0x1eeb   :  { %5783 = vmatprep.subr.bf16.mxu1 %v6349_v0 }
0x1eec   :  { %v2856_v55 = vpop.permute.xlu1 %2855 }
0x1eed   :  { %v2861_v28 = vsel %vm262_vm2, %v2856_v55, 0 }
0x1eee   :  { %5778 = vmatpush3.bf16.xpose.msra.mxu0 %v2861_v28 }
0x1eef   :  { %5789 = vmatprep.subr.bf16.mxu0 %v6349_v0 }
0x1ef1   :  { %5774 = vmatmul.mubr.msk.bf16.vlgmr.msra.gmra.mxu1 %vm262_vm2, %v7053_v7 }
0x1ef2   :  { %5785 = vmatprep.mubr.msk.bf16.mxu1 %vm6350_vm0, %v6349_v0 }
0x1ef5   :  { %5780 = vmatmul.mubr.msk.bf16.vlgmr.msra.gmra.mxu0 %vm262_vm2, %v7058_v50 }
0x1ef6   :  { %5791 = vmatprep.mubr.msk.bf16.mxu0 %vm6350_vm0, %v6349_v0 }
0x1fb1   :  { %v2848_v17 = vpop.f32.mrf.mxu1 }
0x1fb2   :  { %v2903_v39 = vsel %vm262_vm2, %v2848_v17, -inf }
0x1fb3   :  { %2904 = vmax.xlane.f32.xlu1 %v2903_v39  ;;  %v5775_v32 = vpop.f32.mrf.mxu1 }
0x1fb5   :  { %v2851_v34 = vpop.f32.mrf.mxu1  ;;  %v2897_v57 = vpop.f32.mrf.mxu0 }
0x1fb6   :  { %v2906_v59 = vsel %vm262_vm2, %v2897_v57, -inf }
0x1fb7   :  { %2907 = vmax.xlane.f32.xlu0 %v2906_v59  ;;  %v5776_v44 = vpop.f32.mrf.mxu1  ;;  %v5781_v41 = vpop.f32.mrf.mxu0 }
0x1fb9   :  { %v2900_v9 = vpop.f32.mrf.mxu0 }
0x1fbb   :  { %v5782_v18 = vpop.f32.mrf.mxu0 }
0x1fc4   :  { %2975 = vrot.lane.b32.xlu1 %v7058_v50, %s6346_s1 }
0x1fcd   :  { %2927 = vrot.lane.b32.xlu0 %v7053_v7, %s6346_s1 }
0x203c   :  { %v2905_v15 = vpop.xlane.xlu1 %2904 }
0x203d   :  { %v2909_v40 = vsub.f32 %v2848_v17, %v2905_v15 }
0x203f   :  { %v2911_v29 = vmul.f32 1.442695, %v2909_v40 }
0x2040   :  { %v2908_v1 = vpop.xlane.xlu0 %2907  ;;  %v2976_v14 = vpop.permute.xlu1 %2975 }
0x2041   :  { %6146 = vpow2.f32 %v2911_v29  ;;  %v2910_v16 = vsub.f32 %v2897_v57, %v2908_v1  ;;  %v2981_v60 = vsel %vm387_vm3, %v2976_v14, 0 }
0x2042   :  { %5790 = vmatpush3.bf16.msra.mxu0 %v2981_v60 }
0x2043   :  { %v2913_v5 = vmul.f32 1.442695, %v2910_v16  ;;  %5801 = vmatprep.subr.bf16.mxu0 %v6349_v0 }
0x2044   :  { %v2928_v35 = vpop.permute.xlu0 %2927 }
0x2045   :  { %6148 = vpow2.f32 %v2913_v5  ;;  %v2933_v52 = vsel %vm387_vm3, %v2928_v35, 0 }
0x2046   :  { %5784 = vmatpush3.bf16.msra.mxu1 %v2933_v52 }
0x2047   :  { %5795 = vmatprep.subr.bf16.mxu1 %v6349_v0 }
0x204e   :  { %v6147_v54 = vpop.eup %6146 }
0x204f   :  { %v2915_v26 = vsel %vm262_vm2, %v6147_v54, 0.0 }
0x2050   :  { %2916 = vadd.xlane.f32.xlu0 %v2915_v26 }
0x2052   :  { %v6149_v55 = vpop.eup %6148 }
0x2053   :  { %v2918_v28 = vsel %vm262_vm2, %v6149_v55, 0.0 }
0x2054   :  { %2919 = vadd.xlane.f32.xlu1 %v2918_v28 }
0x2065   :  { %3027 = vrot.lane.b32.xlu1 %v7053_v7, %s6352_s3 }
0x2066   :  { %3077 = vrot.lane.b32.xlu0 %v7058_v50, %s6352_s3 }
0x2069   :  { %3025 = vrot.lane.b32.xlu1 %v7053_v7, %s6353_s11 }
0x206a   :  { %3075 = vrot.lane.b32.xlu0 %v7058_v50, %s6353_s11 }
0x20d9   :  { %v2917_v17 = vpop.xlane.xlu0 %2916 }
0x20da   :  { %6150 = vrcp.f32 %v2917_v17 }
0x20dd   :  { %v2920_v39 = vpop.xlane.xlu1 %2919  ;;  %v3078_v18 = vpop.permute.xlu0 %3077 }
0x20de   :  { %6152 = vrcp.f32 %v2920_v39  ;;  %v3083_v40 = vsel %vm262_vm2, %v3078_v18, 0 }
0x20e1   :  { %v3028_v57 = vpop.permute.xlu1 %3027  ;;  %v3076_v1 = vpop.permute.xlu0 %3075 }
0x20e2   :  { %v3033_v41 = vsel %vm262_vm2, %v3028_v57, 0 }
0x20e5   :  { %v3026_v29 = vpop.permute.xlu1 %3025 }
0x20e7   :  { %v6151_v32 = vpop.eup %6150 }
0x20e8   :  { %v2923_v34 = vmul.f32 %v6151_v32, %v6147_v54 }
0x20ea   :  { %v2925_v59 = vpack.c.bf16 %v2923_v34, %v2923_v34 }
0x20eb   :  { %v6153_v44 = vpop.eup %6152 }
0x20ec   :  { %5786 = vmatmul.mubr.msk.bf16.vlgmr.msra.gmra.mxu1 %vm262_vm2, %v2925_v59  ;;  %v2924_v9 = vmul.f32 %v6153_v44, %v6149_v55 }
0x20ed   :  { %5796 = vmatpush3.bf16.xpose.msra.mxu1 %v3033_v41  ;;  %5797 = vmatprep.mubr.msk.bf16.mxu1 %vm6350_vm0, %v6349_v0 }
0x20ee   :  { %v2926_v15 = vpack.c.bf16 %v2924_v9, %v2924_v9  ;;  %5807 = vmatprep.subr.bf16.mxu1 %v6349_v0 }
0x20f0   :  { %5792 = vmatmul.mubr.msk.bf16.vlgmr.msra.gmra.mxu0 %vm262_vm2, %v2926_v15 }
0x20f1   :  { %5802 = vmatpush3.bf16.xpose.msra.mxu0 %v3083_v40  ;;  %5803 = vmatprep.mubr.msk.bf16.mxu0 %vm6350_vm0, %v6349_v0 }
0x20f2   :  { %5813 = vmatprep.subr.bf16.mxu0 %v6349_v0 }
0x20f4   :  { %5798 = vmatmul.mubr.msk.bf16.vlgmr.msra.gmra.mxu1 %vm262_vm2, %v3026_v29 }
0x20f5   :  { %5809 = vmatprep.mubr.msk.bf16.mxu1 %vm6350_vm0, %v6349_v0 }
0x20f8   :  { %5804 = vmatmul.mubr.msk.bf16.vlgmr.msra.gmra.mxu0 %vm262_vm2, %v3076_v1 }
0x20f9   :  { %5815 = vmatprep.mubr.msk.bf16.mxu0 %vm6350_vm0, %v6349_v0 }
0x21ac   :  { %v7110_v14 = vpop.f32.mrf.mxu1 }
0x21ae   :  { %v5787_v16 = vpop.f32.mrf.mxu1 }
0x21b0   :  { %v2972_v60 = vpop.f32.mrf.mxu1  ;;  %v7112_v5 = vpop.f32.mrf.mxu0 }
0x21b1   :  { %v5281_v35 = vpack.c.bf16 %v7112_v5, %v7110_v14 }
0x21b2   :  { %v5788_v52 = vpop.f32.mrf.mxu1  ;;  %v5793_v54 = vpop.f32.mrf.mxu0 }
0x21b4   :  { %v3020_v26 = vpop.f32.mrf.mxu0  ;;  %v3069_v55 = vpop.f32.mrf.mxu1 }
0x21b5   :  { %v3125_v28 = vsel %vm262_vm2, %v3069_v55, -inf }
0x21b6   :  { %v5794_v17 = vpop.f32.mrf.mxu0  ;;  %3126 = vmax.xlane.f32.xlu1 %v3125_v28  ;;  %v5799_v39 = vpop.f32.mrf.mxu1 }
0x21b8   :  { %v3072_v32 = vpop.f32.mrf.mxu1  ;;  %v3119_v34 = vpop.f32.mrf.mxu0 }
0x21b9   :  { %v3128_v57 = vsel %vm262_vm2, %v3119_v34, -inf }
0x21ba   :  { %3129 = vmax.xlane.f32.xlu0 %v3128_v57  ;;  %v5800_v59 = vpop.f32.mrf.mxu1  ;;  %v5805_v44 = vpop.f32.mrf.mxu0 }
0x21bc   :  { %v3122_v41 = vpop.f32.mrf.mxu0 }
0x21be   :  { %v5806_v9 = vpop.f32.mrf.mxu0 }
0x223f   :  { %v3127_v18 = vpop.xlane.xlu1 %3126 }
0x2240   :  { %v3131_v15 = vsub.f32 %v3069_v55, %v3127_v18 }
0x2242   :  { %v3133_v40 = vmul.f32 1.442695, %v3131_v15 }
0x2243   :  { %v3130_v29 = vpop.xlane.xlu0 %3129 }
0x2244   :  { %6154 = vpow2.f32 %v3133_v40  ;;  %v3132_v1 = vsub.f32 %v3119_v34, %v3130_v29 }
0x2246   :  { %v3135_v16 = vmul.f32 1.442695, %v3132_v1 }
0x2248   :  { %6156 = vpow2.f32 %v3135_v16 }
0x2251   :  { %v6155_v60 = vpop.eup %6154 }
0x2252   :  { %v3137_v52 = vsel %vm262_vm2, %v6155_v60, 0.0 }
0x2253   :  { %3138 = vadd.xlane.f32.xlu0 %v3137_v52 }
0x2255   :  { %v6157_v54 = vpop.eup %6156 }
0x2256   :  { %v3140_v26 = vsel %vm262_vm2, %v6157_v54, 0.0 }
0x2257   :  { %3141 = vadd.xlane.f32.xlu1 %v3140_v26 }
0x2268   :  { %3197 = vrot.lane.b32.xlu1 %v7058_v50, %s6354_s12 }
0x2269   :  { %3149 = vrot.lane.b32.xlu0 %v7053_v7, %s6354_s12 }
0x226c   :  { %3347 = vrot.lane.b32.xlu1 %v7053_v7, %s6355_s13 }
0x226d   :  { %3397 = vrot.lane.b32.xlu0 %v7058_v50, %s6355_s13 }
0x2270   :  { %3345 = vrot.lane.b32.xlu1 %v7053_v7, %s6356_s14 }
0x2271   :  { %3395 = vrot.lane.b32.xlu0 %v7058_v50, %s6356_s14 }
0x22dc   :  { %v3139_v55 = vpop.xlane.xlu0 %3138 }
0x22dd   :  { %6158 = vrcp.f32 %v3139_v55 }
0x22e0   :  { %v3150_v28 = vpop.permute.xlu0 %3149  ;;  %v3142_v17 = vpop.xlane.xlu1 %3141 }
0x22e1   :  { %v3155_v39 = vsel %vm387_vm3, %v3150_v28, 0  ;;  %6160 = vrcp.f32 %v3142_v17 }
0x22e2   :  { %5808 = vmatpush3.bf16.msra.mxu1 %v3155_v39 }
0x22e3   :  { %5819 = vmatprep.subr.bf16.mxu1 %v6349_v0 }
0x22e4   :  { %v3198_v32 = vpop.permute.xlu1 %3197  ;;  %v3398_v15 = vpop.permute.xlu0 %3397 }
0x22e5   :  { %v3203_v34 = vsel %vm387_vm3, %v3198_v32, 0  ;;  %v3403_v40 = vsel %vm262_vm2, %v3398_v15, 0 }
0x22e6   :  { %5814 = vmatpush3.bf16.msra.mxu0 %v3203_v34 }
0x22e7   :  { %5825 = vmatprep.subr.bf16.mxu0 %v6349_v0 }
0x22e8   :  { %v3348_v1 = vpop.permute.xlu1 %3347 }
0x22e9   :  { %v3353_v52 = vsel %vm262_vm2, %v3348_v1, 0 }
0x22ea   :  { %v6159_v57 = vpop.eup %6158 }
0x22eb   :  { %v3145_v59 = vmul.f32 %v6159_v57, %v6155_v60 }
0x22ec   :  { %v3346_v28 = vpop.permute.xlu1 %3345 }
0x22ed   :  { %v3147_v44 = vpack.c.bf16 %v3145_v59, %v3145_v59 }
0x22ee   :  { %v6161_v41 = vpop.eup %6160 }
0x22ef   :  { %5810 = vmatmul.mubr.msk.bf16.vlgmr.msra.gmra.mxu1 %vm262_vm2, %v3147_v44  ;;  %v3146_v9 = vmul.f32 %v6161_v41, %v6157_v54 }
0x22f0   :  { %5820 = vmatpush3.bf16.msra.mxu1 %v6561_v10  ;;  %5821 = vmatprep.mubr.msk.bf16.mxu1 %vm6350_vm0, %v6349_v0 }
0x22f1   :  { %v3148_v18 = vpack.c.bf16 %v3146_v9, %v3146_v9  ;;  %5831 = vmatprep.subr.bf16.mxu1 %v6349_v0 }
0x22f3   :  { %5816 = vmatmul.mubr.msk.bf16.vlgmr.msra.gmra.mxu0 %vm262_vm2, %v3148_v18 }
0x22f4   :  { %5826 = vmatpush3.bf16.msra.mxu0 %v6542_v63  ;;  %5827 = vmatprep.mubr.msk.bf16.mxu0 %vm6350_vm0, %v6349_v0  ;;  %v3396_v63 = vpop.permute.xlu0 %3395 }
0x22f5   :  { %5837 = vmatprep.subr.bf16.mxu0 %v6349_v0 }
0x22fb   :  { %5828 = vmatmul.mubr.msk.bf16.vlgmr.msra.gmra.mxu0 %vm262_vm2, %v5281_v35 }
0x22fc   :  { %5838 = vmatpush3.bf16.xpose.msra.mxu0 %v3403_v40  ;;  %5839 = vmatprep.mubr.msk.bf16.mxu0 %vm6350_vm0, %v6349_v0 }
0x22fd   :  { %5849 = vmatprep.subr.bf16.mxu0 %v6349_v0 }
0x2303   :  { %5840 = vmatmul.mubr.msk.bf16.vlgmr.msra.gmra.mxu0 %vm262_vm2, %v3396_v63 }
0x2304   :  { %5851 = vmatprep.mubr.msk.bf16.mxu0 %vm6350_vm0, %v6349_v0 }
0x23af   :  { %v3191_v10 = vpop.f32.mrf.mxu1 }
0x23b1   :  { %v5811_v29 = vpop.f32.mrf.mxu1 }
0x23b3   :  { %v3194_v16 = vpop.f32.mrf.mxu1  ;;  %v3239_v60 = vpop.f32.mrf.mxu0 }
0x23b4   :  { %v5280_v14 = vpack.c.bf16 %v3239_v60, %v3191_v10 }
0x23b5   :  { %v5812_v5 = vpop.f32.mrf.mxu1  ;;  %v5817_v35 = vpop.f32.mrf.mxu0 }
0x23b6   :  { %5822 = vmatmul.mubr.msk.bf16.vlgmr.msra.gmra.mxu1 %vm262_vm2, %v5280_v14 }
0x23b7   :  { %5832 = vmatpush3.bf16.xpose.msra.mxu1 %v3353_v52  ;;  %v3242_v54 = vpop.f32.mrf.mxu0  ;;  %5833 = vmatprep.mubr.msk.bf16.mxu1 %vm6350_vm0, %v6349_v0 }
0x23b8   :  { %5843 = vmatprep.subr.bf16.mxu1 %v6349_v0 }
0x23b9   :  { %v5818_v26 = vpop.f32.mrf.mxu0 }
0x23bb   :  { %v7162_v55 = vpop.f32.mrf.mxu0 }
0x23bd   :  { %v5829_v17 = vpop.f32.mrf.mxu0 }
0x23be   :  { %5834 = vmatmul.mubr.msk.bf16.vlgmr.msra.gmra.mxu1 %vm262_vm2, %v3346_v28 }
0x23bf   :  { %v7165_v39 = vpop.f32.mrf.mxu0  ;;  %5845 = vmatprep.mubr.msk.bf16.mxu1 %vm6350_vm0, %v6349_v0 }
0x23c1   :  { %v5830_v32 = vpop.f32.mrf.mxu0 }
0x23c3   :  { %v3439_v34 = vpop.f32.mrf.mxu0 }
0x23c4   :  { %v3448_v57 = vsel %vm262_vm2, %v3439_v34, -inf }
0x23c5   :  { %3449 = vmax.xlane.f32.xlu0 %v3448_v57  ;;  %v5841_v59 = vpop.f32.mrf.mxu0 }
0x23c7   :  { %v3442_v44 = vpop.f32.mrf.mxu0 }
0x23c9   :  { %v5842_v41 = vpop.f32.mrf.mxu0 }
0x244e   :  { %v3450_v9 = vpop.xlane.xlu0 %3449 }
0x244f   :  { %v3452_v18 = vsub.f32 %v3439_v34, %v3450_v9 }
0x2451   :  { %v3455_v15 = vmul.f32 1.442695, %v3452_v18 }
0x2453   :  { %6162 = vpow2.f32 %v3455_v15 }
0x2460   :  { %v6163_v60 = vpop.eup %6162 }
0x2461   :  { %v3460_v35 = vsel %vm262_vm2, %v6163_v60, 0.0 }
0x2476   :  { %v7170_v40 = vpop.f32.mrf.mxu1 }
0x2478   :  { %v5823_v63 = vpop.f32.mrf.mxu1 }
0x247a   :  { %v7172_v10 = vpop.f32.mrf.mxu1 }
0x247c   :  { %v5824_v29 = vpop.f32.mrf.mxu1 }
0x247e   :  { %v3389_v1 = vpop.f32.mrf.mxu1 }
0x247f   :  { %v3445_v16 = vsel %vm262_vm2, %v3389_v1, -inf }
0x2480   :  { %3446 = vmax.xlane.f32.xlu1 %v3445_v16  ;;  %v5835_v14 = vpop.f32.mrf.mxu1 }
0x2482   :  { %v3392_v5 = vpop.f32.mrf.mxu1 }
0x2484   :  { %3461 = vadd.xlane.f32.xlu1 %v3460_v35  ;;  %v5836_v52 = vpop.f32.mrf.mxu1 }
0x2495   :  { %3517 = vrot.lane.b32.xlu1 %v7058_v50, %s6357_s15 }
0x2499   :  { %3620 = vrot.lane.b32.xlu1 %v7053_v7, %s6358_s16 }
0x249d   :  { %3618 = vrot.lane.b32.xlu1 %v7053_v7, %s6359_s17 }
0x2509   :  { %v3447_v54 = vpop.xlane.xlu1 %3446 }
0x250a   :  { %v3451_v26 = vsub.f32 %v3389_v1, %v3447_v54 }
0x250c   :  { %v3453_v28 = vmul.f32 1.442695, %v3451_v26 }
0x250d   :  { %v3462_v17 = vpop.xlane.xlu1 %3461 }
0x250e   :  { %6164 = vpow2.f32 %v3453_v28 }
0x250f   :  { %6166 = vrcp.f32 %v3462_v17 }
0x2511   :  { %v3518_v32 = vpop.permute.xlu1 %3517 }
0x2512   :  { %v3523_v34 = vsel %vm387_vm3, %v3518_v32, 0 }
0x2513   :  { %5850 = vmatpush3.bf16.msra.mxu0 %v3523_v34 }
0x2514   :  { %5861 = vmatprep.subr.bf16.mxu0 %v6349_v0 }
0x2515   :  { %v3621_v9 = vpop.permute.xlu1 %3620 }
0x2516   :  { %v3626_v15 = vsel %vm262_vm2, %v3621_v9, 0 }
0x2519   :  { %v3619_v63 = vpop.permute.xlu1 %3618 }
0x251b   :  { %v6165_v57 = vpop.eup %6164 }
0x251c   :  { %v6167_v59 = vpop.eup %6166  ;;  %v3457_v44 = vsel %vm262_vm2, %v6165_v57, 0.0 }
0x251d   :  { %v3466_v41 = vmul.f32 %v6167_v59, %v6163_v60  ;;  %3458 = vadd.xlane.f32.xlu0 %v3457_v44 }
0x251f   :  { %v3468_v18 = vpack.c.bf16 %v3466_v41, %v3466_v41 }
0x2521   :  { %5852 = vmatmul.mubr.msk.bf16.vlgmr.msra.gmra.mxu0 %vm262_vm2, %v3468_v18 }
0x2522   :  { %5862 = vmatpush3.bf16.xpose.msra.mxu0 %v3626_v15  ;;  %5863 = vmatprep.mubr.msk.bf16.mxu0 %vm6350_vm0, %v6349_v0 }
0x2523   :  { %5873 = vmatprep.subr.bf16.mxu0 %v6349_v0 }
0x2529   :  { %5864 = vmatmul.mubr.msk.bf16.vlgmr.msra.gmra.mxu0 %vm262_vm2, %v3619_v63 }
0x252a   :  { %5875 = vmatprep.mubr.msk.bf16.mxu0 %vm6350_vm0, %v6349_v0 }
0x2533   :  { %3469 = vrot.lane.b32.xlu0 %v7053_v7, %s6357_s15 }
0x2537   :  { %3670 = vrot.lane.b32.xlu0 %v7058_v50, %s6358_s16 }
0x253b   :  { %3668 = vrot.lane.b32.xlu0 %v7058_v50, %s6359_s17 }
0x25a6   :  { %v3459_v29 = vpop.xlane.xlu0 %3458 }
0x25a7   :  { %6168 = vrcp.f32 %v3459_v29 }
0x25aa   :  { %v3470_v1 = vpop.permute.xlu0 %3469 }
0x25ab   :  { %v3475_v16 = vsel %vm387_vm3, %v3470_v1, 0 }
0x25ac   :  { %5844 = vmatpush3.bf16.msra.mxu1 %v3475_v16 }
0x25ad   :  { %5855 = vmatprep.subr.bf16.mxu1 %v6349_v0 }
0x25ae   :  { %v3671_v59 = vpop.permute.xlu0 %3670 }
0x25af   :  { %v3676_v9 = vsel %vm262_vm2, %v3671_v59, 0 }
0x25b2   :  { %v3669_v63 = vpop.permute.xlu0 %3668 }
0x25b4   :  { %v6169_v60 = vpop.eup %6168 }
0x25b5   :  { %v3465_v14 = vmul.f32 %v6169_v60, %v6165_v57  ;;  %v3339_v60 = vadd.f32 %v7162_v55, %v7170_v40 }
0x25b7   :  { %v3467_v5 = vpack.c.bf16 %v3465_v14, %v3465_v14 }
0x25b9   :  { %5846 = vmatmul.mubr.msk.bf16.vlgmr.msra.gmra.mxu1 %vm262_vm2, %v3467_v5 }
0x25ba   :  { %5856 = vmatpush3.bf16.msra.mxu1 %v6613_v22  ;;  %5857 = vmatprep.mubr.msk.bf16.mxu1 %vm6350_vm0, %v6349_v0 }
0x25bb   :  { %5867 = vmatprep.subr.bf16.mxu1 %v6349_v0 }
0x25e1   :  { %v3559_v35 = vpop.f32.mrf.mxu0 }
0x25e3   :  { %v5853_v52 = vpop.f32.mrf.mxu0 }
0x25e4   :  { %v3342_v52 = vadd.f32 %v7165_v39, %v7172_v10 }
0x25e5   :  { %v3562_v54 = vpop.f32.mrf.mxu0 }
0x25e7   :  { %v5854_v26 = vpop.f32.mrf.mxu0 }
0x25e9   :  { %v3662_v28 = vpop.f32.mrf.mxu0 }
0x25ea   :  { %v3718_v17 = vsel %vm262_vm2, %v3662_v28, -inf }
0x25eb   :  { %3719 = vmax.xlane.f32.xlu1 %v3718_v17  ;;  %v5865_v32 = vpop.f32.mrf.mxu0 }
0x25ed   :  { %v3665_v34 = vpop.f32.mrf.mxu0 }
0x25ef   :  { %v5866_v57 = vpop.f32.mrf.mxu0 }
0x2674   :  { %v3720_v29 = vpop.xlane.xlu1 %3719 }
0x2675   :  { %v3724_v1 = vsub.f32 %v3662_v28, %v3720_v29 }
0x2677   :  { %v3726_v16 = vmul.f32 1.442695, %v3724_v1 }
0x2679   :  { %v3511_v44 = vpop.f32.mrf.mxu1  ;;  %6170 = vpow2.f32 %v3726_v16 }
0x267a   :  { %v5282_v41 = vpack.c.bf16 %v3559_v35, %v3511_v44 }
0x267b   :  { %v5847_v22 = vpop.f32.mrf.mxu1 }
0x267c   :  { %5858 = vmatmul.mubr.msk.bf16.vlgmr.msra.gmra.mxu1 %vm262_vm2, %v5282_v41 }
0x267d   :  { %5868 = vmatpush3.bf16.xpose.msra.mxu1 %v3676_v9  ;;  %v3514_v18 = vpop.f32.mrf.mxu1  ;;  %5869 = vmatprep.mubr.msk.bf16.mxu1 %vm6350_vm0, %v6349_v0 }
0x267e   :  { %5879 = vmatprep.subr.bf16.mxu1 %v6349_v0 }
0x267f   :  { %v5848_v15 = vpop.f32.mrf.mxu1 }
0x2684   :  { %5870 = vmatmul.mubr.msk.bf16.vlgmr.msra.gmra.mxu1 %vm262_vm2, %v3669_v63 }
0x2685   :  { %5881 = vmatprep.mubr.msk.bf16.mxu1 %vm6350_vm0, %v6349_v0 }
0x2686   :  { %v6171_v28 = vpop.eup %6170 }
0x2687   :  { %v3730_v55 = vsel %vm262_vm2, %v6171_v28, 0.0 }
0x273c   :  { %v3609_v14 = vpop.f32.mrf.mxu1 }
0x273d   :  { %v7217_v5 = vadd.f32 %v3609_v14, %v3339_v60 }
0x273e   :  { %v5859_v35 = vpop.f32.mrf.mxu1 }
0x2740   :  { %v3612_v54 = vpop.f32.mrf.mxu1 }
0x2741   :  { %v7221_v26 = vadd.f32 %v3612_v54, %v3342_v52 }
0x2742   :  { %v5860_v17 = vpop.f32.mrf.mxu1 }
0x2744   :  { %v3712_v32 = vpop.f32.mrf.mxu1 }
0x2745   :  { %v3721_v34 = vsel %vm262_vm2, %v3712_v32, -inf }
0x2746   :  { %3722 = vmax.xlane.f32.xlu0 %v3721_v34  ;;  %v5871_v57 = vpop.f32.mrf.mxu1 }
0x2748   :  { %v3715_v59 = vpop.f32.mrf.mxu1 }
0x274a   :  { %3731 = vadd.xlane.f32.xlu0 %v3730_v55  ;;  %v5872_v40 = vpop.f32.mrf.mxu1 }
0x2760   :  { %3742 = vrot.lane.b32.xlu0 %v7053_v7, %s6360_s18 }
0x27cf   :  { %v3723_v44 = vpop.xlane.xlu0 %3722 }
0x27d0   :  { %v3725_v39 = vsub.f32 %v3712_v32, %v3723_v44 }
0x27d2   :  { %v3728_v10 = vmul.f32 1.442695, %v3725_v39 }
0x27d3   :  { %v3732_v41 = vpop.xlane.xlu0 %3731 }
0x27d4   :  { %6172 = vpow2.f32 %v3728_v10 }
0x27d5   :  { %6174 = vrcp.f32 %v3732_v41 }
0x27d7   :  { %v3743_v22 = vpop.permute.xlu0 %3742 }
0x27d8   :  { %v3748_v9 = vsel %vm387_vm3, %v3743_v22, 0 }
0x27d9   :  { %5874 = vmatpush3.bf16.msra.mxu0 %v3748_v9 }
0x27da   :  { %5885 = vmatprep.subr.bf16.mxu0 %v6349_v0 }
0x27e1   :  { %v6173_v18 = vpop.eup %6172 }
0x27e2   :  { %v6175_v15 = vpop.eup %6174  ;;  %v3733_v63 = vsel %vm262_vm2, %v6173_v18, 0.0 }
0x27e3   :  { %v3738_v29 = vmul.f32 %v6175_v15, %v6171_v28  ;;  %3734 = vadd.xlane.f32.xlu1 %v3733_v63 }
0x27e5   :  { %v3740_v1 = vpack.c.bf16 %v3738_v29, %v3738_v29 }
0x27e7   :  { %5876 = vmatmul.mubr.msk.bf16.vlgmr.msra.gmra.mxu0 %vm262_vm2, %v3740_v1 }
0x27e8   :  { %5886 = vmatpush3.bf16.msra.mxu0 %v6647_v19  ;;  %5887 = vmatprep.mubr.msk.bf16.mxu0 %vm6350_vm0, %v6349_v0  ;;  %v6225_v19 = vld [vmem:[#allocation7 + $0x28] sm:$0xff]  }
0x27e9   :  { %5899 = vmatprep.subr.bf16.mxu0 %v6349_v0 }
0x27f4   :  { %3790 = vrot.lane.b32.xlu1 %v7058_v50, %s6360_s18  ;;  %v6226_v50 = vld [vmem:[#allocation7 + $0x20] sm:$0xff]  }
0x286c   :  { %v3735_v7 = vpop.xlane.xlu1 %3734 }
0x286d   :  { %6176 = vrcp.f32 %v3735_v7 }
0x2870   :  { %v3791_v16 = vpop.permute.xlu1 %3790 }
0x2871   :  { %v3796_v60 = vsel %vm387_vm3, %v3791_v16, 0 }
0x2872   :  { %5880 = vmatpush3.bf16.msra.mxu1 %v3796_v60 }
0x2873   :  { %5891 = vmatprep.subr.bf16.mxu1 %v6349_v0 }
0x287a   :  { %v6177_v14 = vpop.eup %6176 }
0x287b   :  { %v3739_v35 = vmul.f32 %v6177_v14, %v6173_v18 }
0x287d   :  { %v3741_v52 = vpack.c.bf16 %v3739_v35, %v3739_v35 }
0x287f   :  { %5882 = vmatmul.mubr.msk.bf16.vlgmr.msra.gmra.mxu1 %vm262_vm2, %v3741_v52 }
0x2880   :  { %5892 = vmatpush3.bf16.msra.mxu1 %v6225_v19  ;;  %5895 = vmatprep.mubr.msk.bf16.mxu1 %vm6350_vm0, %v6349_v0 }
0x2881   :  { %5893 = vmatprep.subr.bf16.mxu1 %v6349_v0 }
0x2884   :  { %5894 = vmatpush3.bf16.msra.mxu1 %v6226_v50 }
0x2885   :  { %5905 = vmatprep.subr.bf16.mxu1 %v6349_v0 }
0x28a7   :  { %v3784_v54 = vpop.f32.mrf.mxu0 }
0x28a9   :  { %v5877_v17 = vpop.f32.mrf.mxu0 }
0x28ab   :  { %v3787_v32 = vpop.f32.mrf.mxu0 }
0x28ad   :  { %v5878_v34 = vpop.f32.mrf.mxu0 }
0x293f   :  { %v3832_v28 = vpop.f32.mrf.mxu1 }
0x2940   :  { %v5283_v57 = vpack.c.bf16 %v3832_v28, %v3784_v54 }
0x2941   :  { %v5883_v59 = vpop.f32.mrf.mxu1 }
0x2942   :  { %5888 = vmatmul.mubr.msk.bf16.vlgmr.msra.gmra.mxu0 %vm262_vm2, %v5283_v57 }
0x2943   :  { %5900 = vmatpush3.bf16.xpose.msra.mxu0 %v6694_v21  ;;  %v3835_v55 = vpop.f32.mrf.mxu1  ;;  %5901 = vmatprep.mubr.msk.bf16.mxu0 %vm6350_vm0, %v6349_v0 }
0x2944   :  { %5911 = vmatprep.subr.bf16.mxu0 %v6349_v0 }
0x2945   :  { %v5884_v40 = vpop.f32.mrf.mxu1 }
0x2a02   :  { %v3882_v44 = vpop.f32.mrf.mxu0 }
0x2a03   :  { %v3889_v39 = vadd.f32 %v3882_v44, %v7217_v5 }
0x2a04   :  { %v5889_v10 = vpop.f32.mrf.mxu0 }
0x2a05   :  { %v3891_v41 = vadd.f32 %v3889_v39, %v7042_v38 }
0x2a06   :  { %v3885_v22 = vpop.f32.mrf.mxu0 }
0x2a07   :  { %v3890_v9 = vadd.f32 %v3885_v22, %v7221_v26  ;;  %v3893_v18 = vadd.f32 %v3891_v41, %v6668_v42 }
0x2a08   :  { %v5890_v15 = vpop.f32.mrf.mxu0 }
0x2a09   :  { %v3892_v21 = vadd.f32 %v3890_v9, %v7045_v48  ;;  %v3895_v63 = vsel %vm153_vm1, %v3893_v18, 0.0 }
0x2a0a   :  { %3896 = vadd.xlane.f32.xlu1 %v3895_v63 }
0x2a0b   :  { %v3894_v29 = vadd.f32 %v3892_v21, %v6668_v42 }
0x2a0d   :  { %v3898_v1 = vsel %vm153_vm1, %v3894_v29, 0.0 }
0x2a0e   :  { %3899 = vadd.xlane.f32.xlu0 %v3898_v1 }
0x2a93   :  { %v3897_v5 = vpop.xlane.xlu1 %3896 }
0x2a94   :  { %v3901_v7 = vmul.f32 0.03125, %v3897_v5 }
0x2a96   :  { %v3903_v16 = vsub.f32 %v3893_v18, %v3901_v7 }
0x2a97   :  { %v3900_v38 = vpop.xlane.xlu0 %3899 }
0x2a98   :  { %v3902_v60 = vmul.f32 0.03125, %v3900_v38  ;;  %v3905_v14 = vmul.f32 %v3903_v16, %v3903_v16 }
0x2a9a   :  { %v3904_v26 = vsub.f32 %v3894_v29, %v3902_v60  ;;  %v3907_v35 = vsel %vm153_vm1, %v3905_v14, 0.0 }
0x2a9b   :  { %3908 = vadd.xlane.f32.xlu0 %v3907_v35 }
0x2a9c   :  { %v3906_v52 = vmul.f32 %v3904_v26, %v3904_v26 }
0x2a9e   :  { %v3910_v48 = vsel %vm153_vm1, %v3906_v52, 0.0 }
0x2a9f   :  { %3911 = vadd.xlane.f32.xlu1 %v3910_v48 }
0x2b24   :  { %v3909_v19 = vpop.xlane.xlu0 %3908 }
0x2b25   :  { %v3913_v50 = vmul.f32 0.03125, %v3909_v19 }
0x2b27   :  { %v3915_v42 = vadd.f32 1e-05, %v3913_v50 }
0x2b28   :  { %v3912_v54 = vpop.xlane.xlu1 %3911 }
0x2b29   :  { %6178 = vrsqrt.f32 %v3915_v42  ;;  %v3914_v17 = vmul.f32 0.03125, %v3912_v54 }
0x2b2b   :  { %v3916_v32 = vadd.f32 1e-05, %v3914_v17 }
0x2b2d   :  { %6180 = vrsqrt.f32 %v3916_v32 }
0x2b36   :  { %v6179_v34 = vpop.eup %6178 }
0x2b37   :  { %v3919_v28 = vmul.f32 %v6179_v34, %v3903_v16 }
0x2b39   :  { %v3921_v59 = vmul.f32 %v3919_v28, %v6707_v24 }
0x2b3a   :  { %v6181_v57 = vpop.eup %6180 }
0x2b3b   :  { %v3920_v55 = vmul.f32 %v6181_v57, %v3904_v26  ;;  %v7262_v44 = vadd.f32 %v3921_v59, %v6712_v25 }
0x2b3d   :  { %v3922_v40 = vmul.f32 %v3920_v55, %v6707_v24 }
0x2b3f   :  { %v7265_v39 = vadd.f32 %v3922_v40, %v6712_v25 }
0x2b41   :  { %v3925_v10 = vpack.c.bf16 %v7265_v39, %v7262_v44 }
0x2b43   :  { %5896 = vmatmul.mubr.msk.bf16.vlgmr.msra.gmra.mxu1 %vm153_vm1, %v3925_v10 }
0x2b44   :  { %5906 = vmatpush3.bf16.xpose.msra.mxu1 %v6726_v37  ;;  %5907 = vmatprep.mubr.msk.bf16.mxu1 %vm6350_vm0, %v6349_v0 }
0x2b45   :  { %5917 = vmatprep.subr.bf16.mxu1 %v6349_v0 }
0x2c03   :  { %v3963_v41 = vpop.f32.mrf.mxu1 }
0x2c04   :  { %v3964_v24 = vadd.f32 %v3963_v41, %v6683_v2 }
0x2c05   :  { %v5897_v22 = vpop.f32.mrf.mxu1 }
0x2c06   :  { %v7275_v9 = vpack.c.bf16 %v3964_v24, %v3964_v24 }
0x2c07   :  { %v3966_v25 = vpop.f32.mrf.mxu1 }
0x2c08   :  { %v3967_v18 = vadd.f32 %v3966_v25, %v6683_v2  ;;  %5902 = vmatmul.mubr.msk.bf16.vlgmr.msra.gmra.mxu0 %vm262_vm2, %v7275_v9 }
0x2c09   :  { %5912 = vmatpush3.bf16.msra.mxu0 %v6736_v43  ;;  %v5898_v37 = vpop.f32.mrf.mxu1  ;;  %5913 = vmatprep.mubr.msk.bf16.mxu0 %vm6350_vm0, %v6349_v0 }
0x2c0a   :  { %v7283_v15 = vpack.c.bf16 %v3967_v18, %v3967_v18  ;;  %5923 = vmatprep.subr.bf16.mxu0 %v6349_v0 }
0x2c0c   :  { %5908 = vmatmul.mubr.msk.bf16.vlgmr.msra.gmra.mxu1 %vm262_vm2, %v7283_v15 }
0x2c0d   :  { %5918 = vmatpush3.bf16.msra.mxu1 %v6762_v12  ;;  %5919 = vmatprep.mubr.msk.bf16.mxu1 %vm6350_vm0, %v6349_v0 }
0x2c0e   :  { %5929 = vmatprep.subr.bf16.mxu1 %v6349_v0 }
0x2cc8   :  { %v4009_v2 = vpop.f32.mrf.mxu0 }
0x2cc9   :  { %v4058_v43 = vsel %vm262_vm2, %v4009_v2, -inf }
0x2cca   :  { %4059 = vmax.xlane.f32.xlu0 %v4058_v43  ;;  %v5903_v21 = vpop.f32.mrf.mxu0 }
0x2ccc   :  { %v4012_v63 = vpop.f32.mrf.mxu0  ;;  %v4052_v29 = vpop.f32.mrf.mxu1 }
0x2ccd   :  { %v4061_v1 = vsel %vm262_vm2, %v4052_v29, -inf }
0x2cce   :  { %v5904_v5 = vpop.f32.mrf.mxu0  ;;  %4062 = vmax.xlane.f32.xlu1 %v4061_v1  ;;  %v5909_v7 = vpop.f32.mrf.mxu1 }
0x2cd0   :  { %v4055_v16 = vpop.f32.mrf.mxu1 }
0x2cd2   :  { %v5910_v38 = vpop.f32.mrf.mxu1 }
0x2d53   :  { %v4060_v12 = vpop.xlane.xlu0 %4059 }
0x2d54   :  { %v4064_v60 = vsub.f32 %v4009_v2, %v4060_v12 }
0x2d56   :  { %v4066_v14 = vmul.f32 1.442695, %v4064_v60 }
0x2d57   :  { %v4063_v26 = vpop.xlane.xlu1 %4062 }
0x2d58   :  { %6182 = vpow2.f32 %v4066_v14  ;;  %v4065_v35 = vsub.f32 %v4052_v29, %v4063_v26 }
0x2d5a   :  { %v4068_v52 = vmul.f32 1.442695, %v4065_v35 }
0x2d5c   :  { %6184 = vpow2.f32 %v4068_v52 }
0x2d65   :  { %v6183_v48 = vpop.eup %6182 }
0x2d66   :  { %v4070_v19 = vsel %vm262_vm2, %v6183_v48, 0.0 }
0x2d67   :  { %4071 = vadd.xlane.f32.xlu0 %v4070_v19 }
0x2d69   :  { %v6185_v50 = vpop.eup %6184 }
0x2d6a   :  { %v4073_v42 = vsel %vm262_vm2, %v6185_v50, 0.0 }
0x2d6b   :  { %4074 = vadd.xlane.f32.xlu1 %v4073_v42 }
0x2d7c   :  { %4217 = vrot.lane.b32.xlu1 %v7283_v15, %s6353_s11 }
0x2d7d   :  { %4171 = vrot.lane.b32.xlu0 %v7275_v9, %s6353_s11 }
0x2df0   :  { %v4072_v54 = vpop.xlane.xlu0 %4071 }
0x2df1   :  { %6186 = vrcp.f32 %v4072_v54 }
0x2df4   :  { %v4075_v17 = vpop.xlane.xlu1 %4074  ;;  %v4172_v40 = vpop.permute.xlu0 %4171 }
0x2df5   :  { %6188 = vrcp.f32 %v4075_v17 }
0x2dfe   :  { %v6187_v32 = vpop.eup %6186 }
0x2dff   :  { %v4078_v34 = vmul.f32 %v6187_v32, %v6183_v48 }
0x2e01   :  { %v4080_v28 = vpack.c.bf16 %v4078_v34, %v4078_v34 }
0x2e02   :  { %v6189_v57 = vpop.eup %6188 }
0x2e03   :  { %v4079_v59 = vmul.f32 %v6189_v57, %v6185_v50  ;;  %5914 = vmatmul.mubr.msk.bf16.vlgmr.msra.gmra.mxu0 %vm262_vm2, %v4080_v28 }
0x2e04   :  { %5924 = vmatpush3.bf16.xpose.msra.mxu0 %v6767_v30  ;;  %5925 = vmatprep.mubr.msk.bf16.mxu0 %vm6350_vm0, %v6349_v0  ;;  %v4218_v30 = vpop.permute.xlu1 %4217 }
0x2e05   :  { %v4081_v55 = vpack.c.bf16 %v4079_v59, %v4079_v59  ;;  %5935 = vmatprep.subr.bf16.mxu0 %v6349_v0 }
0x2e07   :  { %5920 = vmatmul.mubr.msk.bf16.vlgmr.msra.gmra.mxu1 %vm262_vm2, %v4081_v55 }
0x2e08   :  { %5930 = vmatpush3.bf16.xpose.msra.mxu1 %v6775_v36  ;;  %5931 = vmatprep.mubr.msk.bf16.mxu1 %vm6350_vm0, %v6349_v0 }
0x2e09   :  { %5941 = vmatprep.subr.bf16.mxu1 %v6349_v0 }
0x2e0b   :  { %5926 = vmatmul.mubr.msk.bf16.vlgmr.msra.gmra.mxu0 %vm262_vm2, %v4172_v40 }
0x2e0c   :  { %5936 = vmatpush3.bf16.msra.mxu0 %v6811_v27  ;;  %5937 = vmatprep.mubr.msk.bf16.mxu0 %vm6350_vm0, %v6349_v0 }
0x2e0d   :  { %5947 = vmatprep.subr.bf16.mxu0 %v6349_v0 }
0x2e0f   :  { %5932 = vmatmul.mubr.msk.bf16.vlgmr.msra.gmra.mxu1 %vm262_vm2, %v4218_v30 }
0x2e10   :  { %5942 = vmatpush3.bf16.msra.mxu1 %v6816_v31  ;;  %5943 = vmatprep.mubr.msk.bf16.mxu1 %vm6350_vm0, %v6349_v0 }
0x2e11   :  { %5953 = vmatprep.subr.bf16.mxu1 %v6349_v0 }
0x2ec3   :  { %v4119_v36 = vpop.f32.mrf.mxu0 }
0x2ec5   :  { %v5915_v10 = vpop.f32.mrf.mxu0 }
0x2ec7   :  { %v4122_v41 = vpop.f32.mrf.mxu0  ;;  %v4162_v24 = vpop.f32.mrf.mxu1 }
0x2ec8   :  { %v5285_v27 = vpack.c.bf16 %v4162_v24, %v4119_v36 }
0x2ec9   :  { %v5916_v22 = vpop.f32.mrf.mxu0  ;;  %v5921_v25 = vpop.f32.mrf.mxu1 }
0x2ecb   :  { %v4165_v18 = vpop.f32.mrf.mxu1  ;;  %v4210_v37 = vpop.f32.mrf.mxu0 }
0x2ecc   :  { %v4262_v2 = vsel %vm262_vm2, %v4210_v37, -inf }
0x2ecd   :  { %v5927_v43 = vpop.f32.mrf.mxu0  ;;  %4263 = vmax.xlane.f32.xlu1 %v4262_v2  ;;  %v5922_v21 = vpop.f32.mrf.mxu1 }
0x2ecf   :  { %v4213_v31 = vpop.f32.mrf.mxu0  ;;  %v4256_v63 = vpop.f32.mrf.mxu1 }
0x2ed0   :  { %v4265_v29 = vsel %vm262_vm2, %v4256_v63, -inf }
0x2ed1   :  { %v5928_v1 = vpop.f32.mrf.mxu0  ;;  %4266 = vmax.xlane.f32.xlu0 %v4265_v29  ;;  %v5933_v5 = vpop.f32.mrf.mxu1 }
0x2ed3   :  { %v4259_v7 = vpop.f32.mrf.mxu1 }
0x2ed5   :  { %v5934_v16 = vpop.f32.mrf.mxu1 }
0x2f56   :  { %v4264_v38 = vpop.xlane.xlu1 %4263 }
0x2f57   :  { %v4268_v12 = vsub.f32 %v4210_v37, %v4264_v38 }
0x2f59   :  { %v4270_v60 = vmul.f32 1.442695, %v4268_v12 }
0x2f5a   :  { %v4267_v14 = vpop.xlane.xlu0 %4266 }
0x2f5b   :  { %6190 = vpow2.f32 %v4270_v60  ;;  %v4269_v26 = vsub.f32 %v4256_v63, %v4267_v14 }
0x2f5d   :  { %v4272_v35 = vmul.f32 1.442695, %v4269_v26 }
0x2f5f   :  { %6192 = vpow2.f32 %v4272_v35 }
0x2f68   :  { %v6191_v52 = vpop.eup %6190 }
0x2f69   :  { %v4274_v48 = vsel %vm262_vm2, %v6191_v52, 0.0 }
0x2f6a   :  { %4275 = vadd.xlane.f32.xlu0 %v4274_v48 }
0x2f6c   :  { %v6193_v19 = vpop.eup %6192 }
0x2f6d   :  { %v4277_v50 = vsel %vm262_vm2, %v6193_v19, 0.0 }
0x2f6e   :  { %4278 = vadd.xlane.f32.xlu1 %v4277_v50 }
0x2f7f   :  { %4517 = vrot.lane.b32.xlu1 %v7283_v15, %s6356_s14 }
0x2f80   :  { %4472 = vrot.lane.b32.xlu0 %v7275_v9, %s6356_s14 }
0x2ff3   :  { %v4276_v42 = vpop.xlane.xlu0 %4275 }
0x2ff4   :  { %6194 = vrcp.f32 %v4276_v42 }
0x2ff7   :  { %v4279_v54 = vpop.xlane.xlu1 %4278 }
0x2ff8   :  { %6196 = vrcp.f32 %v4279_v54 }
0x3001   :  { %v6195_v17 = vpop.eup %6194 }
0x3002   :  { %v4282_v32 = vmul.f32 %v6195_v17, %v6191_v52 }
0x3004   :  { %v4284_v34 = vpack.c.bf16 %v4282_v32, %v4282_v32 }
0x3005   :  { %v6197_v28 = vpop.eup %6196 }
0x3006   :  { %v4283_v57 = vmul.f32 %v6197_v28, %v6193_v19  ;;  %5938 = vmatmul.mubr.msk.bf16.vlgmr.msra.gmra.mxu0 %vm262_vm2, %v4284_v34 }
0x3007   :  { %5948 = vmatpush3.bf16.msra.mxu0 %v6846_v56  ;;  %5949 = vmatprep.mubr.msk.bf16.mxu0 %vm6350_vm0, %v6349_v0  ;;  %v4518_v56 = vpop.permute.xlu1 %4517 }
0x3008   :  { %v4285_v59 = vpack.c.bf16 %v4283_v57, %v4283_v57  ;;  %5959 = vmatprep.subr.bf16.mxu0 %v6349_v0 }
0x300a   :  { %5944 = vmatmul.mubr.msk.bf16.vlgmr.msra.gmra.mxu1 %vm262_vm2, %v4285_v59 }
0x300b   :  { %5954 = vmatpush3.bf16.msra.mxu1 %v6824_v51  ;;  %5955 = vmatprep.mubr.msk.bf16.mxu1 %vm6350_vm0, %v6349_v0 }
0x300c   :  { %5965 = vmatprep.subr.bf16.mxu1 %v6349_v0 }
0x3012   :  { %5956 = vmatmul.mubr.msk.bf16.vlgmr.msra.gmra.mxu1 %vm262_vm2, %v5285_v27  ;;  %v4473_v27 = vpop.permute.xlu0 %4472 }
0x3013   :  { %5966 = vmatpush3.bf16.xpose.msra.mxu1 %v6832_v53  ;;  %5967 = vmatprep.mubr.msk.bf16.mxu1 %vm6350_vm0, %v6349_v0 }
0x3014   :  { %5977 = vmatprep.subr.bf16.mxu1 %v6349_v0 }
0x301a   :  { %5968 = vmatmul.mubr.msk.bf16.vlgmr.msra.gmra.mxu1 %vm262_vm2, %v4518_v56 }
0x301b   :  { %5978 = vmatpush3.bf16.msra.mxu1 %v6879_v58  ;;  %5979 = vmatprep.mubr.msk.bf16.mxu1 %vm6350_vm0, %v6349_v0 }
0x301c   :  { %5989 = vmatprep.subr.bf16.mxu1 %v6349_v0 }
0x30c6   :  { %v4323_v51 = vpop.f32.mrf.mxu0 }
0x30c8   :  { %v5939_v55 = vpop.f32.mrf.mxu0 }
0x30ca   :  { %v4326_v40 = vpop.f32.mrf.mxu0  ;;  %v4366_v30 = vpop.f32.mrf.mxu1 }
0x30cb   :  { %v5284_v53 = vpack.c.bf16 %v4366_v30, %v4323_v51 }
0x30cc   :  { %v5940_v36 = vpop.f32.mrf.mxu0  ;;  %v5945_v10 = vpop.f32.mrf.mxu1 }
0x30cd   :  { %5950 = vmatmul.mubr.msk.bf16.vlgmr.msra.gmra.mxu0 %vm262_vm2, %v5284_v53 }
0x30ce   :  { %5960 = vmatpush3.bf16.xpose.msra.mxu0 %v6851_v61  ;;  %v4369_v41 = vpop.f32.mrf.mxu1  ;;  %5961 = vmatprep.mubr.msk.bf16.mxu0 %vm6350_vm0, %v6349_v0 }
0x30cf   :  { %5971 = vmatprep.subr.bf16.mxu0 %v6349_v0 }
0x30d0   :  { %v5946_v58 = vpop.f32.mrf.mxu1 }
0x30d2   :  { %v7353_v24 = vpop.f32.mrf.mxu1 }
0x30d4   :  { %v5957_v22 = vpop.f32.mrf.mxu1 }
0x30d5   :  { %5962 = vmatmul.mubr.msk.bf16.vlgmr.msra.gmra.mxu0 %vm262_vm2, %v4473_v27 }
0x30d6   :  { %5972 = vmatpush3.bf16.msra.mxu0 %v6902_v20  ;;  %v7357_v25 = vpop.f32.mrf.mxu1  ;;  %5973 = vmatprep.mubr.msk.bf16.mxu0 %vm6350_vm0, %v6349_v0 }
0x30d7   :  { %5983 = vmatprep.subr.bf16.mxu0 %v6349_v0 }
0x30d8   :  { %v5958_v61 = vpop.f32.mrf.mxu1 }
0x30da   :  { %v4556_v18 = vpop.f32.mrf.mxu1 }
0x30db   :  { %v4565_v37 = vsel %vm262_vm2, %v4556_v18, -inf }
0x30dc   :  { %4566 = vmax.xlane.f32.xlu0 %v4565_v37  ;;  %v5969_v2 = vpop.f32.mrf.mxu1 }
0x30de   :  { %v4559_v43 = vpop.f32.mrf.mxu1 }
0x30e0   :  { %v5970_v21 = vpop.f32.mrf.mxu1 }
0x3165   :  { %v4567_v31 = vpop.xlane.xlu0 %4566 }
0x3166   :  { %v4569_v63 = vsub.f32 %v4556_v18, %v4567_v31 }
0x3168   :  { %v4572_v29 = vmul.f32 1.442695, %v4569_v63 }
0x316a   :  { %6198 = vpow2.f32 %v4572_v29 }
0x3177   :  { %v6199_v12 = vpop.eup %6198 }
0x3178   :  { %v4577_v26 = vsel %vm262_vm2, %v6199_v12, 0.0 }
0x318d   :  { %v7363_v20 = vpop.f32.mrf.mxu0 }
0x318e   :  { %v4466_v37 = vadd.f32 %v7353_v24, %v7363_v20 }
0x318f   :  { %v5951_v1 = vpop.f32.mrf.mxu0 }
0x3191   :  { %v7365_v5 = vpop.f32.mrf.mxu0 }
0x3192   :  { %v4469_v31 = vadd.f32 %v7357_v25, %v7365_v5 }
0x3193   :  { %v5952_v7 = vpop.f32.mrf.mxu0 }
0x3195   :  { %v4511_v16 = vpop.f32.mrf.mxu0 }
0x3196   :  { %v4562_v38 = vsel %vm262_vm2, %v4511_v16, -inf }
0x3197   :  { %4563 = vmax.xlane.f32.xlu1 %v4562_v38  ;;  %v5963_v60 = vpop.f32.mrf.mxu0 }
0x3199   :  { %v4514_v14 = vpop.f32.mrf.mxu0 }
0x319b   :  { %v5964_v35 = vpop.f32.mrf.mxu0  ;;  %4578 = vadd.xlane.f32.xlu1 %v4577_v26 }
0x31ac   :  { %4770 = vrot.lane.b32.xlu1 %v7283_v15, %s6359_s17 }
0x3220   :  { %v4564_v52 = vpop.xlane.xlu1 %4563 }
0x3221   :  { %v4568_v48 = vsub.f32 %v4511_v16, %v4564_v52 }
0x3223   :  { %v4570_v19 = vmul.f32 1.442695, %v4568_v48 }
0x3224   :  { %v4579_v50 = vpop.xlane.xlu1 %4578 }
0x3225   :  { %6200 = vpow2.f32 %v4570_v19 }
0x3226   :  { %6202 = vrcp.f32 %v4579_v50 }
0x3228   :  { %v4771_v22 = vpop.permute.xlu1 %4770 }
0x3232   :  { %v6201_v42 = vpop.eup %6200 }
0x3233   :  { %v6203_v54 = vpop.eup %6202  ;;  %v4574_v17 = vsel %vm262_vm2, %v6201_v42, 0.0 }
0x3234   :  { %v4583_v32 = vmul.f32 %v6203_v54, %v6199_v12  ;;  %4575 = vadd.xlane.f32.xlu0 %v4574_v17 }
0x3236   :  { %v4585_v34 = vpack.c.bf16 %v4583_v32, %v4583_v32  ;;  %v6227_v32 = vld [vmem:[#allocation7 + $0x48] sm:$0xff]  }
0x3238   :  { %5980 = vmatmul.mubr.msk.bf16.vlgmr.msra.gmra.mxu1 %vm262_vm2, %v4585_v34 }
0x3239   :  { %5990 = vmatpush3.bf16.xpose.msra.mxu1 %v6885_v8  ;;  %5991 = vmatprep.mubr.msk.bf16.mxu1 %vm6350_vm0, %v6349_v0 }
0x323a   :  { %6001 = vmatprep.subr.bf16.mxu1 %v6349_v0 }
0x324a   :  { %4725 = vrot.lane.b32.xlu0 %v7275_v9, %s6359_s17 }
0x32bd   :  { %v4576_v15 = vpop.xlane.xlu0 %4575 }
0x32be   :  { %6204 = vrcp.f32 %v4576_v15 }
0x32c1   :  { %v4726_v28 = vpop.permute.xlu0 %4725 }
0x32c2   :  { %5992 = vmatmul.mubr.msk.bf16.vlgmr.msra.gmra.mxu1 %vm262_vm2, %v4726_v28 }
0x32c3   :  { %6002 = vmatpush3.bf16.msra.mxu1 %v6939_v3  ;;  %6003 = vmatprep.mubr.msk.bf16.mxu1 %vm6350_vm0, %v6349_v0 }
0x32c4   :  { %6013 = vmatprep.subr.bf16.mxu1 %v6349_v0 }
0x32cb   :  { %v6205_v8 = vpop.eup %6204 }
0x32cc   :  { %v4582_v57 = vmul.f32 %v6205_v8, %v6201_v42 }
0x32ce   :  { %v4584_v59 = vpack.c.bf16 %v4582_v57, %v4582_v57 }
0x32d0   :  { %5974 = vmatmul.mubr.msk.bf16.vlgmr.msra.gmra.mxu0 %vm262_vm2, %v4584_v59 }
0x32d1   :  { %5984 = vmatpush3.bf16.msra.mxu0 %v6911_v47  ;;  %5985 = vmatprep.mubr.msk.bf16.mxu0 %vm6350_vm0, %v6349_v0 }
0x32d2   :  { %5995 = vmatprep.subr.bf16.mxu0 %v6349_v0 }
0x32f8   :  { %v4666_v9 = vpop.f32.mrf.mxu1 }
0x32fa   :  { %v5981_v56 = vpop.f32.mrf.mxu1 }
0x32fc   :  { %v4669_v3 = vpop.f32.mrf.mxu1 }
0x32fd   :  { %v6229_v3 = vld [vmem:[#allocation7 + $0x68] sm:$0xff]  }
0x32fe   :  { %v5982_v51 = vpop.f32.mrf.mxu1 }
0x3382   :  { %v4764_v55 = vpop.f32.mrf.mxu1 }
0x3383   :  { %v4815_v40 = vsel %vm262_vm2, %v4764_v55, -inf }
0x3384   :  { %4816 = vmax.xlane.f32.xlu1 %v4815_v40  ;;  %v5993_v30 = vpop.f32.mrf.mxu1  ;;  %v6231_v40 = vld [vmem:[#allocation7 + $0x58] sm:$0xff]  }
0x3385   :  { %v6232_v30 = vld [vmem:[#allocation7 + $0x50] sm:$0xff]  }
0x3386   :  { %v4767_v53 = vpop.f32.mrf.mxu1 }
0x3388   :  { %v5994_v36 = vpop.f32.mrf.mxu1 }
0x3390   :  { %v4623_v10 = vpop.f32.mrf.mxu0 }
0x3391   :  { %v5286_v41 = vpack.c.bf16 %v4666_v9, %v4623_v10 }
0x3392   :  { %v5975_v58 = vpop.f32.mrf.mxu0 }
0x3393   :  { %5986 = vmatmul.mubr.msk.bf16.vlgmr.msra.gmra.mxu0 %vm262_vm2, %v5286_v41 }
0x3394   :  { %5996 = vmatpush3.bf16.xpose.msra.mxu0 %v6916_v62  ;;  %v4626_v47 = vpop.f32.mrf.mxu0  ;;  %5997 = vmatprep.mubr.msk.bf16.mxu0 %vm6350_vm0, %v6349_v0 }
0x3395   :  { %6007 = vmatprep.subr.bf16.mxu0 %v6349_v0 }
0x3396   :  { %v5976_v27 = vpop.f32.mrf.mxu0 }
0x339b   :  { %5998 = vmatmul.mubr.msk.bf16.vlgmr.msra.gmra.mxu0 %vm262_vm2, %v4771_v22 }
0x339c   :  { %6008 = vmatpush3.bf16.msra.mxu0 %v6955_v13  ;;  %6009 = vmatprep.mubr.msk.bf16.mxu0 %vm6350_vm0, %v6349_v0 }
0x339d   :  { %6019 = vmatprep.subr.bf16.mxu0 %v6349_v0 }
0x340d   :  { %v4817_v61 = vpop.xlane.xlu1 %4816 }
0x340e   :  { %v4821_v18 = vsub.f32 %v4764_v55, %v4817_v61  ;;  %v6230_v55 = vld [vmem:[#allocation7 + $0x60] sm:$0xff]  }
0x3410   :  { %v4823_v62 = vmul.f32 1.442695, %v4821_v18 }
0x3412   :  { %6206 = vpow2.f32 %v4823_v62 }
0x341f   :  { %v6207_v16 = vpop.eup %6206 }
0x3420   :  { %v4827_v24 = vsel %vm262_vm2, %v6207_v16, 0.0 }
0x3453   :  { %v4716_v2 = vpop.f32.mrf.mxu0 }
0x3454   :  { %v7402_v43 = vadd.f32 %v4716_v2, %v4466_v37 }
0x3455   :  { %v5987_v21 = vpop.f32.mrf.mxu0 }
0x3457   :  { %v4719_v13 = vpop.f32.mrf.mxu0 }
0x3458   :  { %v7406_v63 = vadd.f32 %v4719_v13, %v4469_v31 }
0x3459   :  { %v5988_v29 = vpop.f32.mrf.mxu0 }
0x345b   :  { %v4809_v1 = vpop.f32.mrf.mxu0 }
0x345c   :  { %v4818_v7 = vsel %vm262_vm2, %v4809_v1, -inf }
0x345d   :  { %4819 = vmax.xlane.f32.xlu0 %v4818_v7  ;;  %v5999_v38 = vpop.f32.mrf.mxu0 }
0x345f   :  { %v4812_v12 = vpop.f32.mrf.mxu0 }
0x3461   :  { %v6000_v20 = vpop.f32.mrf.mxu0  ;;  %4828 = vadd.xlane.f32.xlu0 %v4827_v24 }
0x34e6   :  { %v4820_v60 = vpop.xlane.xlu0 %4819 }
0x34e7   :  { %v4822_v14 = vsub.f32 %v4809_v1, %v4820_v60 }
0x34e9   :  { %v4825_v26 = vmul.f32 1.442695, %v4822_v14 }
0x34ea   :  { %v4829_v35 = vpop.xlane.xlu0 %4828 }
0x34eb   :  { %6208 = vpow2.f32 %v4825_v26 }
0x34ec   :  { %6210 = vrcp.f32 %v4829_v35 }
0x34f8   :  { %v6209_v25 = vpop.eup %6208 }
0x34f9   :  { %v6211_v5 = vpop.eup %6210  ;;  %v4830_v52 = vsel %vm262_vm2, %v6209_v25, 0.0 }
0x34fa   :  { %v4835_v48 = vmul.f32 %v6211_v5, %v6207_v16  ;;  %4831 = vadd.xlane.f32.xlu1 %v4830_v52 }
0x34fc   :  { %v4837_v19 = vpack.c.bf16 %v4835_v48, %v4835_v48 }
0x34fe   :  { %6004 = vmatmul.mubr.msk.bf16.vlgmr.msra.gmra.mxu1 %vm262_vm2, %v4837_v19 }
0x34ff   :  { %6014 = vmatpush3.bf16.msra.mxu1 %v6950_v6  ;;  %6015 = vmatprep.mubr.msk.bf16.mxu1 %vm6350_vm0, %v6349_v0  ;;  %v6228_v6 = vld [vmem:[#allocation7 + $0x40] sm:$0xff]  }
0x3500   :  { %6027 = vmatprep.subr.bf16.mxu1 %v6349_v0 }
0x3583   :  { %v4832_v50 = vpop.xlane.xlu1 %4831 }
0x3584   :  { %6212 = vrcp.f32 %v4832_v50 }
0x3591   :  { %v6213_v42 = vpop.eup %6212 }
0x3592   :  { %v4836_v54 = vmul.f32 %v6213_v42, %v6209_v25 }
0x3594   :  { %v4838_v17 = vpack.c.bf16 %v4836_v54, %v4836_v54 }
0x3596   :  { %6010 = vmatmul.mubr.msk.bf16.vlgmr.msra.gmra.mxu0 %vm262_vm2, %v4838_v17 }
0x3597   :  { %6020 = vmatpush3.bf16.msra.mxu0 %v6227_v32  ;;  %6023 = vmatprep.mubr.msk.bf16.mxu0 %vm6350_vm0, %v6349_v0 }
0x3598   :  { %6021 = vmatprep.subr.bf16.mxu0 %v6349_v0 }
0x359b   :  { %6022 = vmatpush3.bf16.msra.mxu0 %v6228_v6 }
0x35be   :  { %v4876_v34 = vpop.f32.mrf.mxu1 }
0x35c0   :  { %v6005_v15 = vpop.f32.mrf.mxu1 }
0x35c2   :  { %v4879_v28 = vpop.f32.mrf.mxu1 }
0x35c4   :  { %v6006_v8 = vpop.f32.mrf.mxu1 }
0x3656   :  { %v4919_v57 = vpop.f32.mrf.mxu0 }
0x3657   :  { %v5287_v59 = vpack.c.bf16 %v4919_v57, %v4876_v34 }
0x3658   :  { %v6011_v9 = vpop.f32.mrf.mxu0 }
0x3659   :  { %6016 = vmatmul.mubr.msk.bf16.vlgmr.msra.gmra.mxu1 %vm262_vm2, %v5287_v59 }
0x365a   :  { %v4922_v56 = vpop.f32.mrf.mxu0  ;;  %6028 = vmatpush3.bf16.msra.mxu1 %v6229_v3  ;;  %6035 = vmatprep.mubr.msk.bf16.mxu1 %vm6350_vm0, %v6349_v0 }
0x365b   :  { %6029 = vmatprep.subr.bf16.mxu1 %v6349_v0 }
0x365c   :  { %v6012_v51 = vpop.f32.mrf.mxu0 }
0x365e   :  { %6030 = vmatpush3.bf16.msra.mxu1 %v6230_v55 }
0x365f   :  { %6031 = vmatprep.subr.bf16.mxu1 %v6349_v0 }
0x3662   :  { %6032 = vmatpush3.bf16.msra.mxu1 %v6231_v40 }
0x3663   :  { %6033 = vmatprep.subr.bf16.mxu1 %v6349_v0 }
0x3666   :  { %6034 = vmatpush3.bf16.msra.mxu1 %v6232_v30 }
0x3719   :  { %v4969_v53 = vpop.f32.mrf.mxu1 }
0x371a   :  { %v4976_v36 = vadd.f32 %v4969_v53, %v7402_v43 }
0x371b   :  { %v6017_v10 = vpop.f32.mrf.mxu1 }
0x371c   :  { %v4978_v41 = vadd.f32 %v4976_v36, %v7262_v44 }
0x371d   :  { %v4972_v58 = vpop.f32.mrf.mxu1 }
0x371e   :  { %v4977_v47 = vadd.f32 %v4972_v58, %v7406_v63  ;;  %v4980_v27 = vadd.f32 %v4978_v41, %v6972_v45 }
0x371f   :  { %v6018_v22 = vpop.f32.mrf.mxu1 }
0x3720   :  { %v4979_v61 = vadd.f32 %v4977_v47, %v7265_v39  ;;  %v4982_v18 = vsel %vm153_vm1, %v4980_v27, 0.0 }
0x3721   :  { %4983 = vadd.xlane.f32.xlu0 %v4982_v18 }
0x3722   :  { %v4981_v0 = vadd.f32 %v4979_v61, %v6972_v45 }
0x3724   :  { %v4985_v62 = vsel %vm153_vm1, %v4981_v0, 0.0 }
0x3725   :  { %4986 = vadd.xlane.f32.xlu1 %v4985_v62 }
0x37aa   :  { %v4984_v37 = vpop.xlane.xlu0 %4983 }
0x37ab   :  { %v4988_v2 = vmul.f32 0.03125, %v4984_v37 }
0x37ad   :  { %v4990_v43 = vsub.f32 %v4980_v27, %v4988_v2 }
0x37ae   :  { %v4987_v44 = vpop.xlane.xlu1 %4986 }
0x37af   :  { %v4989_v21 = vmul.f32 0.03125, %v4987_v44  ;;  %v4992_v31 = vmul.f32 %v4990_v43, %v4990_v43 }
0x37b1   :  { %v4991_v13 = vsub.f32 %v4981_v0, %v4989_v21  ;;  %v4994_v63 = vsel %vm153_vm1, %v4992_v31, 0.0 }
0x37b2   :  { %4995 = vadd.xlane.f32.xlu0 %v4994_v63 }
0x37b3   :  { %v4993_v29 = vmul.f32 %v4991_v13, %v4991_v13 }
0x37b5   :  { %v4997_v39 = vsel %vm153_vm1, %v4993_v29, 0.0 }
0x37b6   :  { %4998 = vadd.xlane.f32.xlu1 %v4997_v39 }
0x383b   :  { %v4996_v1 = vpop.xlane.xlu0 %4995 }
0x383c   :  { %v5000_v7 = vmul.f32 0.03125, %v4996_v1 }
0x383e   :  { %v5002_v45 = vadd.f32 1e-05, %v5000_v7 }
0x383f   :  { %v4999_v16 = vpop.xlane.xlu1 %4998 }
0x3840   :  { %6214 = vrsqrt.f32 %v5002_v45  ;;  %v5001_v38 = vmul.f32 0.03125, %v4999_v16 }
0x3842   :  { %v5003_v12 = vadd.f32 1e-05, %v5001_v38 }
0x3844   :  { %6216 = vrsqrt.f32 %v5003_v12 }
0x384d   :  { %v6215_v24 = vpop.eup %6214 }
0x384e   :  { %v5006_v20 = vmul.f32 %v6215_v24, %v4990_v43 }
0x3850   :  { %v5008_v14 = vmul.f32 %v5006_v20, %v6991_v11 }
0x3851   :  { %v6217_v60 = vpop.eup %6216 }
0x3852   :  { %v5007_v26 = vmul.f32 %v6217_v60, %v4991_v13  ;;  %v5010_v25 = vadd.f32 %v5008_v14, %v6996_v23 }
0x3854   :  { %v5009_v35 = vmul.f32 %v5007_v26, %v6991_v11 }
0x3856   :  { %v5011_v5 = vadd.f32 %v5009_v35, %v6996_v23 }
0x3858   :  { %v5012_v52 = vpack.c.bf16 %v5011_v5, %v5010_v25 }
0x385a   :  { %6024 = vmatmul.mubr.msk.bf16.vlgmr.msra.gmra.mxu0 %vm153_vm1, %v5012_v52 }
0x391a   :  { %v5050_v48 = vpop.f32.mrf.mxu0 }
0x391b   :  { %v5051_v50 = vadd.f32 %v5050_v48, %v7012_v49 }
0x391c   :  { %v6025_v19 = vpop.f32.mrf.mxu0 }
0x391d   :  { %v5057_v32 = vmax.f32 %v5051_v50, 0.0 }
0x391e   :  { %v5053_v42 = vpop.f32.mrf.mxu0 }
0x391f   :  { %v5054_v54 = vadd.f32 %v5053_v42, %v7012_v49 }
0x3920   :  { %v6026_v17 = vpop.f32.mrf.mxu0 }
0x3921   :  { %v5058_v6 = vmax.f32 %v5054_v54, 0.0 }
0x3923   :  { %v5059_v34 = vpack.c.bf16 %v5058_v6, %v5057_v32 }
0x3925   :  { %6036 = vmatmul.mubr.msk.bf16.vlgmr.msra.gmra.mxu1 %vm2673_vm4, %v5059_v34 }
0x39e5   :  { %v5097_v11 = vpop.f32.mrf.mxu1 }
0x39e6   :  { %v5098_v15 = vadd.f32 %v5097_v11, %v7021_v4 }
0x39e7   :  { %v6037_v23 = vpop.f32.mrf.mxu1 }
0x39e8   :  { %v5104_v28 = vadd.f32 %v5098_v15, %v5010_v25 }
0x39e9   :  { %v5100_v8 = vpop.f32.mrf.mxu1 }
0x39ea   :  { %v5101_v57 = vadd.f32 %v5100_v8, %v7021_v4  ;;  %v5106_v59 = vsel %vm153_vm1, %v5104_v28, 0.0 }
0x39eb   :  { %5107 = vadd.xlane.f32.xlu0 %v5106_v59  ;;  %v6038_v9 = vpop.f32.mrf.mxu1 }
0x39ec   :  { %v5105_v56 = vadd.f32 %v5101_v57, %v5011_v5 }
0x39ee   :  { %v5109_v49 = vsel %vm153_vm1, %v5105_v56, 0.0 }
0x39ef   :  { %5110 = vadd.xlane.f32.xlu1 %v5109_v49 }
0x3a74   :  { %v5108_v3 = vpop.xlane.xlu0 %5107 }
0x3a75   :  { %v5112_v51 = vmul.f32 0.03125, %v5108_v3 }
0x3a77   :  { %v5114_v55 = vsub.f32 %v5104_v28, %v5112_v51 }
0x3a78   :  { %v5111_v40 = vpop.xlane.xlu1 %5110 }
0x3a79   :  { %v5113_v30 = vmul.f32 0.03125, %v5111_v40  ;;  %v5116_v53 = vmul.f32 %v5114_v55, %v5114_v55 }
0x3a7b   :  { %v5115_v36 = vsub.f32 %v5105_v56, %v5113_v30  ;;  %v5118_v10 = vsel %vm153_vm1, %v5116_v53, 0.0 }
0x3a7c   :  { %5119 = vadd.xlane.f32.xlu0 %v5118_v10 }
0x3a7d   :  { %v5117_v41 = vmul.f32 %v5115_v36, %v5115_v36 }
0x3a7f   :  { %v5121_v4 = vsel %vm153_vm1, %v5117_v41, 0.0 }
0x3a80   :  { %5122 = vadd.xlane.f32.xlu1 %v5121_v4 }
0x3b05   :  { %v5120_v58 = vpop.xlane.xlu0 %5119 }
0x3b06   :  { %v5124_v47 = vmul.f32 0.03125, %v5120_v58 }
0x3b08   :  { %v5126_v27 = vadd.f32 1e-05, %v5124_v47 }
0x3b09   :  { %v5123_v22 = vpop.xlane.xlu1 %5122 }
0x3b0a   :  { %6218 = vrsqrt.f32 %v5126_v27  ;;  %v5125_v61 = vmul.f32 0.03125, %v5123_v22 }
0x3b0c   :  { %v5127_v18 = vadd.f32 1e-05, %v5125_v61 }
0x3b0e   :  { %6220 = vrsqrt.f32 %v5127_v18 }
0x3b17   :  { %v6219_v0 = vpop.eup %6218 }
0x3b18   :  { %v5130_v62 = vmul.f32 %v6219_v0, %v5114_v55 }
0x3b1a   :  { %v5132_v37 = vmul.f32 %v5130_v62, %v7032_v46 }
0x3b1b   :  { %v6221_v2 = vpop.eup %6220 }
0x3b1c   :  { %v5131_v43 = vmul.f32 %v6221_v2, %v5115_v36  ;;  %v5134_v44 = vadd.f32 %v5132_v37, %v7037_v33 }
0x3b1e   :  { %v5133_v21 = vmul.f32 %v5131_v43, %v7032_v46  ;;  %5136 = vst.msk [vmem:[#allocation10] sm:$0xff] %vm153_vm1, %v5134_v44 }
0x3b20   :  { %v5135_v31 = vadd.f32 %v5133_v21, %v7037_v33 }
0x3b22   :  { %5137 = vst.msk [vmem:[#allocation10 + $0x8] sm:$0xff] %vm153_vm1, %v5135_v31 }
0x3b23   :  { %6324 = shalt.err (!%p6321_p10)
}
0x3b24   :  { %5149 = dma.vmem_to_hbm [thread:$0]  %s5144_s22, 256, %s7466_s4, [#allocation4], %s6343_s20, %s6343_s20, %s6344_s21  }
0x3b25   :  { %6339 = dma.done.wait [#allocation4], 256  }
0x3b26   :  { %6340 = vsyncadd [#allocation4], 4294967040 }
0x3b27   :  { %5153 = vsyncpa [#allocation3], 1 }
0x3b28   :  { %5154 = vsyncpa [#allocation6], 1 }
0x3b29   :  { %5155 = vsyncpa [#allocation9], 1 }
0x3b2a   :  { %5156 = vsyncpa [#allocation4], 1 }

</bundles_post_ra>
